<compile_context>
chip_gen: v7x
topology: tpu7x:2x2x1
jax: 0.10.0
libtpu: 0.0.40
codegen_flags: <defaults>
</compile_context>

<pallas_src>
import functools

import jax
import jax.numpy as jnp
from jax.experimental import pallas as pl
from jax.experimental.pallas import tpu as pltpu

LANE = 128


def _silu(x):
    return x * jax.nn.sigmoid(x)


def _softplus(x):
    return jnp.logaddexp(x, 0.0)


# -----------------------------------------------------------------------------
# Kernel
# -----------------------------------------------------------------------------
def densenet_kernel(plan, K, compute_dtype, inp_ref, w_ref, v_ref, o_ref):
    """One batch tile of the full forward pass.

    inp_ref : (TB, 4+P) f32   columns = [x, t, r, q, paras...]
    w_ref   : (R, CW)   bf16  packed weight slab (lane-aligned static column blocks)
    v_ref   : (1, CV)   f32   packed row-vector slab (fused biases + rank-1 rows)
    o_ref   : (TB, 1)   f32
    """
    stack1_plan, head_plan, stack2_plan, singu_cols, final_plan = plan

    inp = inp_ref[...]
    x = inp[:, 0:1]
    t = inp[:, 1:2]
    r = inp[:, 2:3]
    q = inp[:, 3:4]

    def fused_matmul(a, entry):
        rows, wc0, wc1, bc0, bc1 = entry
        w = w_ref[0:rows, wc0:wc1]                      # static, lane-aligned slice (bf16)
        b = v_ref[0:1, bc0:bc1]                         # f32 row vector
        return jnp.dot(a.astype(compute_dtype), w,
                       preferred_element_type=jnp.float32) + b

    # ---- first dense/skip stack: one fused (dense || skip) matmul per layer ----
    mid = inp
    y = jnp.zeros_like(x)
    for entry in stack1_plan:
        res = fused_matmul(mid, entry)
        y = y + res[:, -1:]                             # skip column
        mid = _silu(res[:, :-1])                        # dense columns

    # ---- fused heads: [mul | bias | mul2 | bias2] in one matmul ----
    heads = fused_matmul(mid, head_plan)                # (TB, 4)
    mul = _softplus(heads[:, 0:1] + K / 10.0) + 1e-6
    bias = heads[:, 1:2]
    mul2 = _softplus(heads[:, 2:3] + K / 20.0) + 1e-6
    bias2 = heads[:, 3:4] * (K / 10.0)

    # ---- singularity terms (European exercise, call option) ----
    euro_mul_s = jnp.exp(-q * t)
    euro_mul_k = jnp.exp(-r * t)
    inv_sqrt_t = jax.lax.rsqrt(t + 1e-8)
    sqrt_t = (t + 1e-8) * inv_sqrt_t
    fwd = jnp.exp(x) * euro_mul_s - K * euro_mul_k

    inv_mul = pl.reciprocal(mul, approx=True)
    scaled = (fwd + bias * t) * inv_sqrt_t * inv_mul
    singu = _softplus(scaled) * sqrt_t * mul

    inv_mul2 = pl.reciprocal(mul2, approx=True)
    scaled2 = (fwd + bias2 * t) * inv_sqrt_t * inv_mul2
    singu2 = _silu(scaled2) * sqrt_t * mul2

    # ---- second stack, layer 0: no concat([mid, singu, singu2]) ----
    # the singu / singu2 weight rows are applied as rank-1 broadcasts on the VPU.
    rows, wc0, wc1, bc0, bc1 = stack2_plan[0]
    sc0, sc1, s2c0, s2c1 = singu_cols
    res = jnp.dot(mid.astype(compute_dtype), w_ref[0:rows, wc0:wc1],
                  preferred_element_type=jnp.float32)
    res = res + v_ref[0:1, bc0:bc1]
    res = res + singu * v_ref[0:1, sc0:sc1]
    res = res + singu2 * v_ref[0:1, s2c0:s2c1]
    y = y + res[:, -1:]
    mid = _silu(res[:, :-1])

    for entry in stack2_plan[1:]:
        res = fused_matmul(mid, entry)
        y = y + res[:, -1:]
        mid = _silu(res[:, :-1])

    # ---- final skip (applies to post-SiLU mid, so it cannot be folded into the
    #      last dense weight) ----
    y = y + fused_matmul(mid, final_plan)
    o_ref[...] = y


# -----------------------------------------------------------------------------
# Parameter init (mirrors the PyTorch module structure)
# -----------------------------------------------------------------------------
def _linear_params(key, fan_in, fan_out):
    kw, kb = jax.random.split(key)
    w = jax.random.normal(kw, (fan_in, fan_out), jnp.float32) * jnp.sqrt(2.0 / fan_in)
    b = jax.random.normal(kb, (1, fan_out), jnp.float32) * 0.01
    return w, b


def init_densenet_params(key, layer1_dims, layer2_dims):
    n1 = len(layer1_dims) - 1
    n2 = len(layer2_dims) - 1
    keys = iter(jax.random.split(key, 2 * (n1 + n2) + 5))
    p = {"dense1": [], "skip1": [], "dense2": [], "skip2": []}
    for i in range(n1):
        p["dense1"].append(_linear_params(next(keys), layer1_dims[i], layer1_dims[i + 1]))
        p["skip1"].append(_linear_params(next(keys), layer1_dims[i], 1))
    p["mul"] = _linear_params(next(keys), layer1_dims[-1], 1)
    p["bias"] = _linear_params(next(keys), layer1_dims[-1], 1)
    p["mul2"] = _linear_params(next(keys), layer1_dims[-1], 1)
    p["bias2"] = _linear_params(next(keys), layer1_dims[-1], 1)
    for i in range(n2):
        p["dense2"].append(_linear_params(next(keys), layer2_dims[i], layer2_dims[i + 1]))
        p["skip2"].append(_linear_params(next(keys), layer2_dims[i], 1))
    p["final"] = _linear_params(next(keys), layer2_dims[-1], 1)
    return p


# -----------------------------------------------------------------------------
# Host-side packing: fuse skip/heads, build 2 slabs + a static slicing plan
# -----------------------------------------------------------------------------
def pack_densenet_params(p, layer1_dims, layer2_dims, compute_dtype=jnp.bfloat16):
    n1 = len(layer1_dims) - 1
    n2 = len(layer2_dims) - 1
    h1 = layer1_dims[-1]
    assert layer2_dims[0] == h1 + 2, "layer2 input must be mid ++ singu ++ singu2"

    w_blocks, v_parts = [], []
    w_off, v_off = [0], [0]

    def add_w(W):
        c0 = w_off[0]
        w_blocks.append((c0, W))
        w_off[0] = c0 + (-(-W.shape[1] // LANE) * LANE)   # lane-align next block
        return W.shape[0], c0, c0 + W.shape[1]

    def add_v(vec):
        c0 = v_off[0]
        v_parts.append((c0, vec))
        v_off[0] = c0 + (-(-vec.shape[1] // LANE) * LANE)
        return c0, c0 + vec.shape[1]

    def fuse(dense, skip):
        (W, b), (sW, sb) = dense, skip
        return jnp.concatenate([W, sW], 1), jnp.concatenate([b, sb], 1)

    stack1_plan = []
    for i in range(n1):
        Wf, bf = fuse(p["dense1"][i], p["skip1"][i])
        rows, wc0, wc1 = add_w(Wf)
        bc0, bc1 = add_v(bf)
        stack1_plan.append((rows, wc0, wc1, bc0, bc1))

    Wh = jnp.concatenate([p["mul"][0], p["bias"][0], p["mul2"][0], p["bias2"][0]], 1)
    bh = jnp.concatenate([p["mul"][1], p["bias"][1], p["mul2"][1], p["bias2"][1]], 1)
    rows, wc0, wc1 = add_w(Wh)
    bc0, bc1 = add_v(bh)
    head_plan = (rows, wc0, wc1, bc0, bc1)

    # second stack layer 0: split rows into [mid | singu | singu2]
    Wf, bf = fuse(p["dense2"][0], p["skip2"][0])
    rows, wc0, wc1 = add_w(Wf[:h1])
    bc0, bc1 = add_v(bf)
    sc0, sc1 = add_v(Wf[h1:h1 + 1])
    s2c0, s2c1 = add_v(Wf[h1 + 1:h1 + 2])
    stack2_plan = [(rows, wc0, wc1, bc0, bc1)]
    singu_cols = (sc0, sc1, s2c0, s2c1)

    for i in range(1, n2):
        Wf, bf = fuse(p["dense2"][i], p["skip2"][i])
        rows, wc0, wc1 = add_w(Wf)
        bc0, bc1 = add_v(bf)
        stack2_plan.append((rows, wc0, wc1, bc0, bc1))

    fW, fb = p["final"]
    rows, wc0, wc1 = add_w(fW)
    bc0, bc1 = add_v(fb)
    final_plan = (rows, wc0, wc1, bc0, bc1)

    # Build the padded slabs (one weight slab, one row-vector slab -> 2 param DMAs).
    max_rows = max(W.shape[0] for _, W in w_blocks)
    R = -(-max_rows // 8) * 8
    w_slab = jnp.zeros((R, w_off[0]), jnp.float32)
    for c0, W in w_blocks:
        w_slab = w_slab.at[:W.shape[0], c0:c0 + W.shape[1]].set(W)
    w_slab = w_slab.astype(compute_dtype)

    v_slab = jnp.zeros((1, v_off[0]), jnp.float32)
    for c0, vec in v_parts:
        v_slab = v_slab.at[:, c0:c0 + vec.shape[1]].set(vec)

    plan = (tuple(stack1_plan), head_plan, tuple(stack2_plan), singu_cols, final_plan)
    return w_slab, v_slab, plan


# -----------------------------------------------------------------------------
# Wrapper: batch-gridded pallas_call with resident weights
# -----------------------------------------------------------------------------
def densenet_forward(x, t, r, q, paras, w_slab, v_slab, plan, K,
                     block_b=128, compute_dtype=jnp.bfloat16):
    inp = jnp.concatenate([x, t, r, q, paras], axis=-1).astype(jnp.float32)
    B, D0 = inp.shape
    TB = min(block_b, B)
    Bp = -(-B // TB) * TB
    if Bp != B:
        inp = jnp.pad(inp, ((0, Bp - B), (0, 0)))

    kernel = functools.partial(densenet_kernel, plan, float(K), compute_dtype)
    out = pl.pallas_call(
        kernel,
        out_shape=jax.ShapeDtypeStruct((Bp, 1), jnp.float32),
        grid_spec=pltpu.PrefetchScalarGridSpec(
            num_scalar_prefetch=0,
            grid=(Bp // TB,),
            in_specs=[
                pl.BlockSpec((TB, D0), lambda i: (i, 0)),         # batch-tiled input
                pl.BlockSpec(w_slab.shape, lambda i: (0, 0)),     # resident weight slab
                pl.BlockSpec(v_slab.shape, lambda i: (0, 0)),     # resident bias slab
            ],
            out_specs=pl.BlockSpec((TB, 1), lambda i: (i, 0)),
        ),
        compiler_params=pltpu.CompilerParams(
            dimension_semantics=("parallel",)),
    )(inp, w_slab, v_slab)
    return out[:B]


# -----------------------------------------------------------------------------
# Pure-JAX reference (mirrors the PyTorch forward) for a sanity check
# -----------------------------------------------------------------------------
def densenet_reference(x, t, r, q, paras, p, K):
    mid = jnp.concatenate([x, t, r, q, paras], -1)
    y = jnp.zeros_like(x)
    for (W, b), (sW, sb) in zip(p["dense1"], p["skip1"]):
        y = y + mid @ sW + sb
        mid = _silu(mid @ W + b)
    mul = _softplus(mid @ p["mul"][0] + p["mul"][1] + K / 10.0) + 1e-6
    bias = mid @ p["bias"][0] + p["bias"][1]
    mul2 = _softplus(mid @ p["mul2"][0] + p["mul2"][1] + K / 20.0) + 1e-6
    bias2 = (mid @ p["bias2"][0] + p["bias2"][1]) * (K / 10.0)
    es, ek = jnp.exp(-q * t), jnp.exp(-r * t)
    st = jnp.sqrt(t + 1e-8)
    fwd = jnp.exp(x) * es - K * ek
    singu = _softplus((fwd + bias * t) / st / mul) * st * mul
    singu2 = _silu((fwd + bias2 * t) / st / mul2) * st * mul2
    mid = jnp.concatenate([mid, singu, singu2], -1)
    for (W, b), (sW, sb) in zip(p["dense2"], p["skip2"]):
        y = y + mid @ sW + sb
        mid = _silu(mid @ W + b)
    return y + mid @ p["final"][0] + p["final"][1]


if __name__ == "__main__":
    B = 256
    P = 4                                         # paras_layer feature count
    layer1_dims = [4 + P, 32, 32]                 # concat(x,t,r,q,paras) -> 8 in
    layer2_dims = [layer1_dims[-1] + 2, 32, 16]   # mid ++ singu ++ singu2
    K = 1.0

    key = jax.random.PRNGKey(0)
    k_in, k_par = jax.random.split(key)
    kx, kt, kr, kq, kp = jax.random.split(k_in, 5)

    x = jax.random.normal(kx, (B, 1), jnp.float32) * 0.2                     # log-moneyness
    t = jax.random.uniform(kt, (B, 1), jnp.float32, minval=0.1, maxval=1.0)  # maturity
    r = jax.random.uniform(kr, (B, 1), jnp.float32, minval=0.0, maxval=0.05)
    q = jax.random.uniform(kq, (B, 1), jnp.float32, minval=0.0, maxval=0.03)
    paras = jax.random.normal(kp, (B, P), jnp.float32) * 0.5

    p = init_densenet_params(k_par, layer1_dims, layer2_dims)
    w_slab, v_slab, plan = pack_densenet_params(p, layer1_dims, layer2_dims)

    y = densenet_forward(x, t, r, q, paras, w_slab, v_slab, plan, K, block_b=128)
    y = jax.block_until_ready(y)

    y_ref = densenet_reference(x, t, r, q, paras, p, K)
    assert y.shape == (B, 1) and bool(jnp.all(jnp.isfinite(y)))
    err = float(jnp.max(jnp.abs(y - y_ref)))
    scale = float(jnp.max(jnp.abs(y_ref))) + 1.0
    assert err < 0.1 * scale, f"kernel/reference mismatch: {err} vs scale {scale}"
    print("KERNEL_OK")
</pallas_src>

<mosaic_0001>
module attributes {stable_mosaic.version = 11 : i64} {
  func.func @densenet_kernel(%arg0: i32, %arg1: memref<128x8xf32, #tpu.memory_space<vmem>>, %arg2: memref<32x768xbf16, #tpu.memory_space<vmem>>, %arg3: memref<1x1024xf32, #tpu.memory_space<vmem>>, %arg4: memref<128x1xf32, #tpu.memory_space<vmem>>) attributes {dimension_semantics = [#tpu.dimension_semantics<parallel>], iteration_bounds = array<i64: 2>, scalar_prefetch = 0 : i64, scratch_operands = 0 : i64, tpu.core_type = #tpu.core_type<tc>, window_params = [{transform_indices = @transform_0, window_bounds = array<i64: 128, 8>}, {pipeline_mode = #tpu.pipeline_mode<synchronous>, transform_indices = @transform_1, window_bounds = array<i64: 32, 768>}, {pipeline_mode = #tpu.pipeline_mode<synchronous>, transform_indices = @transform_2, window_bounds = array<i64: 1, 1024>}, {transform_indices = @transform_3, window_bounds = array<i64: 128, 1>}]} {
    %c0 = arith.constant 0 : index
    %c0_0 = arith.constant 0 : index
    %0 = vector.load %arg1[%c0, %c0_0] : memref<128x8xf32, #tpu.memory_space<vmem>>, vector<128x8xf32>
    %1 = vector.extract_strided_slice %0 {offsets = [0, 0], sizes = [128, 1], strides = [1, 1]} : vector<128x8xf32> to vector<128x1xf32>
    %2 = vector.extract_strided_slice %0 {offsets = [0, 1], sizes = [128, 1], strides = [1, 1]} : vector<128x8xf32> to vector<128x1xf32>
    %3 = vector.extract_strided_slice %0 {offsets = [0, 2], sizes = [128, 1], strides = [1, 1]} : vector<128x8xf32> to vector<128x1xf32>
    %4 = vector.extract_strided_slice %0 {offsets = [0, 3], sizes = [128, 1], strides = [1, 1]} : vector<128x8xf32> to vector<128x1xf32>
    %cst = arith.constant 0.000000e+00 : f32
    %5 = vector.broadcast %cst : f32 to vector<128x1xf32>
    %c0_1 = arith.constant 0 : index
    %c0_2 = arith.constant 0 : index
    %6 = vector.load %arg2[%c0_1, %c0_2] : memref<32x768xbf16, #tpu.memory_space<vmem>>, vector<8x33xbf16>
    %c0_3 = arith.constant 0 : index
    %c0_4 = arith.constant 0 : index
    %7 = vector.load %arg3[%c0_3, %c0_4] : memref<1x1024xf32, #tpu.memory_space<vmem>>, vector<1x33xf32>
    %8 = arith.truncf %0 : vector<128x8xf32> to vector<128x8xbf16>
    %cst_5 = arith.constant dense<0.000000e+00> : vector<128x33xf32>
    %9 = tpu.matmul %8, %6, %cst_5 {dimension_numbers = #tpu.dot_dimension_numbers<[1], [0], [0], [1], [0, 0, 1, 1], [], []>} : vector<128x8xbf16>, vector<8x33xbf16>, vector<128x33xf32> -> vector<128x33xf32>
    %10 = vector.broadcast %7 : vector<1x33xf32> to vector<128x33xf32>
    %11 = arith.addf %9, %10 : vector<128x33xf32>
    %12 = vector.extract_strided_slice %11 {offsets = [0, 32], sizes = [128, 1], strides = [1, 1]} : vector<128x33xf32> to vector<128x1xf32>
    %13 = arith.addf %5, %12 : vector<128x1xf32>
    %14 = vector.extract_strided_slice %11 {offsets = [0, 0], sizes = [128, 32], strides = [1, 1]} : vector<128x33xf32> to vector<128x32xf32>
    %15 = arith.negf %14 : vector<128x32xf32>
    %16 = math.exp %15 : vector<128x32xf32>
    %cst_6 = arith.constant 1.000000e+00 : f32
    %17 = vector.broadcast %cst_6 : f32 to vector<128x32xf32>
    %18 = arith.addf %17, %16 : vector<128x32xf32>
    %19 = arith.divf %17, %18 : vector<128x32xf32>
    %20 = arith.mulf %14, %19 : vector<128x32xf32>
    %c0_7 = arith.constant 0 : index
    %c128 = arith.constant 128 : index
    %21 = vector.load %arg2[%c0_7, %c128] : memref<32x768xbf16, #tpu.memory_space<vmem>>, vector<32x33xbf16>
    %c0_8 = arith.constant 0 : index
    %c128_9 = arith.constant 128 : index
    %22 = vector.load %arg3[%c0_8, %c128_9] : memref<1x1024xf32, #tpu.memory_space<vmem>>, vector<1x33xf32>
    %23 = arith.truncf %20 : vector<128x32xf32> to vector<128x32xbf16>
    %cst_10 = arith.constant dense<0.000000e+00> : vector<128x33xf32>
    %24 = tpu.matmul %23, %21, %cst_10 {dimension_numbers = #tpu.dot_dimension_numbers<[1], [0], [0], [1], [0, 0, 1, 1], [], []>} : vector<128x32xbf16>, vector<32x33xbf16>, vector<128x33xf32> -> vector<128x33xf32>
    %25 = vector.broadcast %22 : vector<1x33xf32> to vector<128x33xf32>
    %26 = arith.addf %24, %25 : vector<128x33xf32>
    %27 = vector.extract_strided_slice %26 {offsets = [0, 32], sizes = [128, 1], strides = [1, 1]} : vector<128x33xf32> to vector<128x1xf32>
    %28 = arith.addf %13, %27 : vector<128x1xf32>
    %29 = vector.extract_strided_slice %26 {offsets = [0, 0], sizes = [128, 32], strides = [1, 1]} : vector<128x33xf32> to vector<128x32xf32>
    %30 = arith.negf %29 : vector<128x32xf32>
    %31 = math.exp %30 : vector<128x32xf32>
    %cst_11 = arith.constant 1.000000e+00 : f32
    %32 = vector.broadcast %cst_11 : f32 to vector<128x32xf32>
    %33 = arith.addf %32, %31 : vector<128x32xf32>
    %34 = arith.divf %32, %33 : vector<128x32xf32>
    %35 = arith.mulf %29, %34 : vector<128x32xf32>
    %c0_12 = arith.constant 0 : index
    %c256 = arith.constant 256 : index
    %36 = vector.load %arg2[%c0_12, %c256] : memref<32x768xbf16, #tpu.memory_space<vmem>>, vector<32x4xbf16>
    %c0_13 = arith.constant 0 : index
    %c256_14 = arith.constant 256 : index
    %37 = vector.load %arg3[%c0_13, %c256_14] : memref<1x1024xf32, #tpu.memory_space<vmem>>, vector<1x4xf32>
    %38 = arith.truncf %35 : vector<128x32xf32> to vector<128x32xbf16>
    %cst_15 = arith.constant dense<0.000000e+00> : vector<128x4xf32>
    %39 = tpu.matmul %38, %36, %cst_15 {dimension_numbers = #tpu.dot_dimension_numbers<[1], [0], [0], [1], [0, 0, 1, 1], [], []>} : vector<128x32xbf16>, vector<32x4xbf16>, vector<128x4xf32> -> vector<128x4xf32>
    %40 = vector.broadcast %37 : vector<1x4xf32> to vector<128x4xf32>
    %41 = arith.addf %39, %40 : vector<128x4xf32>
    %42 = vector.extract_strided_slice %41 {offsets = [0, 0], sizes = [128, 1], strides = [1, 1]} : vector<128x4xf32> to vector<128x1xf32>
    %cst_16 = arith.constant 1.000000e-01 : f32
    %43 = vector.broadcast %cst_16 : f32 to vector<128x1xf32>
    %44 = arith.addf %42, %43 : vector<128x1xf32>
    %cst_17 = arith.constant 0.000000e+00 : f32
    %45 = vector.broadcast %cst_17 : f32 to vector<128x1xf32>
    %46 = arith.maximumf %44, %45 : vector<128x1xf32>
    %47 = vector.broadcast %cst_17 : f32 to vector<128x1xf32>
    %48 = arith.subf %44, %47 : vector<128x1xf32>
    %49 = arith.cmpf one, %48, %48 : vector<128x1xf32>
    %50 = vector.broadcast %cst_17 : f32 to vector<128x1xf32>
    %51 = arith.addf %44, %50 : vector<128x1xf32>
    %52 = math.absf %48 : vector<128x1xf32>
    %cst_18 = arith.constant 0.000000e+00 : f32
    %53 = vector.broadcast %cst_18 : f32 to vector<128x1xf32>
    %54 = arith.subf %53, %52 : vector<128x1xf32>
    %55 = math.exp %54 : vector<128x1xf32>
    %56 = math.log1p %55 : vector<128x1xf32>
    %57 = arith.addf %46, %56 : vector<128x1xf32>
    %58 = arith.select %49, %51, %57 : vector<128x1xi1>, vector<128x1xf32>
    %cst_19 = arith.constant 9.99999997E-7 : f32
    %59 = vector.broadcast %cst_19 : f32 to vector<128x1xf32>
    %60 = arith.addf %58, %59 : vector<128x1xf32>
    %61 = vector.extract_strided_slice %41 {offsets = [0, 1], sizes = [128, 1], strides = [1, 1]} : vector<128x4xf32> to vector<128x1xf32>
    %62 = vector.extract_strided_slice %41 {offsets = [0, 2], sizes = [128, 1], strides = [1, 1]} : vector<128x4xf32> to vector<128x1xf32>
    %cst_20 = arith.constant 5.000000e-02 : f32
    %63 = vector.broadcast %cst_20 : f32 to vector<128x1xf32>
    %64 = arith.addf %62, %63 : vector<128x1xf32>
    %cst_21 = arith.constant 0.000000e+00 : f32
    %65 = vector.broadcast %cst_21 : f32 to vector<128x1xf32>
    %66 = arith.maximumf %64, %65 : vector<128x1xf32>
    %67 = vector.broadcast %cst_21 : f32 to vector<128x1xf32>
    %68 = arith.subf %64, %67 : vector<128x1xf32>
    %69 = arith.cmpf one, %68, %68 : vector<128x1xf32>
    %70 = vector.broadcast %cst_21 : f32 to vector<128x1xf32>
    %71 = arith.addf %64, %70 : vector<128x1xf32>
    %72 = math.absf %68 : vector<128x1xf32>
    %cst_22 = arith.constant 0.000000e+00 : f32
    %73 = vector.broadcast %cst_22 : f32 to vector<128x1xf32>
    %74 = arith.subf %73, %72 : vector<128x1xf32>
    %75 = math.exp %74 : vector<128x1xf32>
    %76 = math.log1p %75 : vector<128x1xf32>
    %77 = arith.addf %66, %76 : vector<128x1xf32>
    %78 = arith.select %69, %71, %77 : vector<128x1xi1>, vector<128x1xf32>
    %cst_23 = arith.constant 9.99999997E-7 : f32
    %79 = vector.broadcast %cst_23 : f32 to vector<128x1xf32>
    %80 = arith.addf %78, %79 : vector<128x1xf32>
    %81 = vector.extract_strided_slice %41 {offsets = [0, 3], sizes = [128, 1], strides = [1, 1]} : vector<128x4xf32> to vector<128x1xf32>
    %cst_24 = arith.constant 1.000000e-01 : f32
    %82 = vector.broadcast %cst_24 : f32 to vector<128x1xf32>
    %83 = arith.mulf %81, %82 : vector<128x1xf32>
    %cst_25 = arith.constant 0.000000e+00 : f32
    %84 = vector.broadcast %cst_25 : f32 to vector<128x1xf32>
    %85 = arith.subf %84, %4 : vector<128x1xf32>
    %86 = arith.mulf %85, %2 : vector<128x1xf32>
    %87 = math.exp %86 : vector<128x1xf32>
    %cst_26 = arith.constant 0.000000e+00 : f32
    %88 = vector.broadcast %cst_26 : f32 to vector<128x1xf32>
    %89 = arith.subf %88, %3 : vector<128x1xf32>
    %90 = arith.mulf %89, %2 : vector<128x1xf32>
    %91 = math.exp %90 : vector<128x1xf32>
    %cst_27 = arith.constant 9.99999993E-9 : f32
    %92 = vector.broadcast %cst_27 : f32 to vector<128x1xf32>
    %93 = arith.addf %2, %92 : vector<128x1xf32>
    %94 = math.rsqrt %93 : vector<128x1xf32>
    %cst_28 = arith.constant 9.99999993E-9 : f32
    %95 = vector.broadcast %cst_28 : f32 to vector<128x1xf32>
    %96 = arith.addf %2, %95 : vector<128x1xf32>
    %97 = arith.mulf %96, %94 : vector<128x1xf32>
    %98 = math.exp %1 : vector<128x1xf32>
    %99 = arith.mulf %98, %87 : vector<128x1xf32>
    %cst_29 = arith.constant 1.000000e+00 : f32
    %100 = vector.broadcast %cst_29 : f32 to vector<128x1xf32>
    %101 = arith.mulf %100, %91 : vector<128x1xf32>
    %102 = arith.subf %99, %101 : vector<128x1xf32>
    %103 = tpu.reciprocal %60 {approx = true} : vector<128x1xf32> -> vector<128x1xf32>
    %104 = arith.mulf %61, %2 : vector<128x1xf32>
    %105 = arith.addf %102, %104 : vector<128x1xf32>
    %106 = arith.mulf %105, %94 : vector<128x1xf32>
    %107 = arith.mulf %106, %103 : vector<128x1xf32>
    %cst_30 = arith.constant 0.000000e+00 : f32
    %108 = vector.broadcast %cst_30 : f32 to vector<128x1xf32>
    %109 = arith.maximumf %107, %108 : vector<128x1xf32>
    %110 = vector.broadcast %cst_30 : f32 to vector<128x1xf32>
    %111 = arith.subf %107, %110 : vector<128x1xf32>
    %112 = arith.cmpf one, %111, %111 : vector<128x1xf32>
    %113 = vector.broadcast %cst_30 : f32 to vector<128x1xf32>
    %114 = arith.addf %107, %113 : vector<128x1xf32>
    %115 = math.absf %111 : vector<128x1xf32>
    %cst_31 = arith.constant 0.000000e+00 : f32
    %116 = vector.broadcast %cst_31 : f32 to vector<128x1xf32>
    %117 = arith.subf %116, %115 : vector<128x1xf32>
    %118 = math.exp %117 : vector<128x1xf32>
    %119 = math.log1p %118 : vector<128x1xf32>
    %120 = arith.addf %109, %119 : vector<128x1xf32>
    %121 = arith.select %112, %114, %120 : vector<128x1xi1>, vector<128x1xf32>
    %122 = arith.mulf %121, %97 : vector<128x1xf32>
    %123 = arith.mulf %122, %60 : vector<128x1xf32>
    %124 = tpu.reciprocal %80 {approx = true} : vector<128x1xf32> -> vector<128x1xf32>
    %125 = arith.mulf %83, %2 : vector<128x1xf32>
    %126 = arith.addf %102, %125 : vector<128x1xf32>
    %127 = arith.mulf %126, %94 : vector<128x1xf32>
    %128 = arith.mulf %127, %124 : vector<128x1xf32>
    %129 = arith.negf %128 : vector<128x1xf32>
    %130 = math.exp %129 : vector<128x1xf32>
    %cst_32 = arith.constant 1.000000e+00 : f32
    %131 = vector.broadcast %cst_32 : f32 to vector<128x1xf32>
    %132 = arith.addf %131, %130 : vector<128x1xf32>
    %133 = arith.divf %131, %132 : vector<128x1xf32>
    %134 = arith.mulf %128, %133 : vector<128x1xf32>
    %135 = arith.mulf %134, %97 : vector<128x1xf32>
    %136 = arith.mulf %135, %80 : vector<128x1xf32>
    %137 = arith.truncf %35 : vector<128x32xf32> to vector<128x32xbf16>
    %c0_33 = arith.constant 0 : index
    %c384 = arith.constant 384 : index
    %138 = vector.load %arg2[%c0_33, %c384] : memref<32x768xbf16, #tpu.memory_space<vmem>>, vector<32x33xbf16>
    %cst_34 = arith.constant dense<0.000000e+00> : vector<128x33xf32>
    %139 = tpu.matmul %137, %138, %cst_34 {dimension_numbers = #tpu.dot_dimension_numbers<[1], [0], [0], [1], [0, 0, 1, 1], [], []>} : vector<128x32xbf16>, vector<32x33xbf16>, vector<128x33xf32> -> vector<128x33xf32>
    %c0_35 = arith.constant 0 : index
    %c384_36 = arith.constant 384 : index
    %140 = vector.load %arg3[%c0_35, %c384_36] : memref<1x1024xf32, #tpu.memory_space<vmem>>, vector<1x33xf32>
    %141 = vector.broadcast %140 : vector<1x33xf32> to vector<128x33xf32>
    %142 = arith.addf %139, %141 : vector<128x33xf32>
    %c0_37 = arith.constant 0 : index
    %c512 = arith.constant 512 : index
    %143 = vector.load %arg3[%c0_37, %c512] : memref<1x1024xf32, #tpu.memory_space<vmem>>, vector<1x33xf32>
    %144 = vector.broadcast %123 : vector<128x1xf32> to vector<128x33xf32>
    %145 = vector.broadcast %143 : vector<1x33xf32> to vector<128x33xf32>
    %146 = arith.mulf %144, %145 : vector<128x33xf32>
    %147 = arith.addf %142, %146 : vector<128x33xf32>
    %c0_38 = arith.constant 0 : index
    %c640 = arith.constant 640 : index
    %148 = vector.load %arg3[%c0_38, %c640] : memref<1x1024xf32, #tpu.memory_space<vmem>>, vector<1x33xf32>
    %149 = vector.broadcast %136 : vector<128x1xf32> to vector<128x33xf32>
    %150 = vector.broadcast %148 : vector<1x33xf32> to vector<128x33xf32>
    %151 = arith.mulf %149, %150 : vector<128x33xf32>
    %152 = arith.addf %147, %151 : vector<128x33xf32>
    %153 = vector.extract_strided_slice %152 {offsets = [0, 32], sizes = [128, 1], strides = [1, 1]} : vector<128x33xf32> to vector<128x1xf32>
    %154 = arith.addf %28, %153 : vector<128x1xf32>
    %155 = vector.extract_strided_slice %152 {offsets = [0, 0], sizes = [128, 32], strides = [1, 1]} : vector<128x33xf32> to vector<128x32xf32>
    %156 = arith.negf %155 : vector<128x32xf32>
    %157 = math.exp %156 : vector<128x32xf32>
    %cst_39 = arith.constant 1.000000e+00 : f32
    %158 = vector.broadcast %cst_39 : f32 to vector<128x32xf32>
    %159 = arith.addf %158, %157 : vector<128x32xf32>
    %160 = arith.divf %158, %159 : vector<128x32xf32>
    %161 = arith.mulf %155, %160 : vector<128x32xf32>
    %c0_40 = arith.constant 0 : index
    %c512_41 = arith.constant 512 : index
    %162 = vector.load %arg2[%c0_40, %c512_41] : memref<32x768xbf16, #tpu.memory_space<vmem>>, vector<32x17xbf16>
    %c0_42 = arith.constant 0 : index
    %c768 = arith.constant 768 : index
    %163 = vector.load %arg3[%c0_42, %c768] : memref<1x1024xf32, #tpu.memory_space<vmem>>, vector<1x17xf32>
    %164 = arith.truncf %161 : vector<128x32xf32> to vector<128x32xbf16>
    %cst_43 = arith.constant dense<0.000000e+00> : vector<128x17xf32>
    %165 = tpu.matmul %164, %162, %cst_43 {dimension_numbers = #tpu.dot_dimension_numbers<[1], [0], [0], [1], [0, 0, 1, 1], [], []>} : vector<128x32xbf16>, vector<32x17xbf16>, vector<128x17xf32> -> vector<128x17xf32>
    %166 = vector.broadcast %163 : vector<1x17xf32> to vector<128x17xf32>
    %167 = arith.addf %165, %166 : vector<128x17xf32>
    %168 = vector.extract_strided_slice %167 {offsets = [0, 16], sizes = [128, 1], strides = [1, 1]} : vector<128x17xf32> to vector<128x1xf32>
    %169 = arith.addf %154, %168 : vector<128x1xf32>
    %170 = vector.extract_strided_slice %167 {offsets = [0, 0], sizes = [128, 16], strides = [1, 1]} : vector<128x17xf32> to vector<128x16xf32>
    %171 = arith.negf %170 : vector<128x16xf32>
    %172 = math.exp %171 : vector<128x16xf32>
    %cst_44 = arith.constant 1.000000e+00 : f32
    %173 = vector.broadcast %cst_44 : f32 to vector<128x16xf32>
    %174 = arith.addf %173, %172 : vector<128x16xf32>
    %175 = arith.divf %173, %174 : vector<128x16xf32>
    %176 = arith.mulf %170, %175 : vector<128x16xf32>
    %c0_45 = arith.constant 0 : index
    %c640_46 = arith.constant 640 : index
    %177 = vector.load %arg2[%c0_45, %c640_46] : memref<32x768xbf16, #tpu.memory_space<vmem>>, vector<16x1xbf16>
    %c0_47 = arith.constant 0 : index
    %c896 = arith.constant 896 : index
    %178 = vector.load %arg3[%c0_47, %c896] : memref<1x1024xf32, #tpu.memory_space<vmem>>, vector<1x1xf32>
    %179 = arith.truncf %176 : vector<128x16xf32> to vector<128x16xbf16>
    %cst_48 = arith.constant dense<0.000000e+00> : vector<128x1xf32>
    %180 = tpu.matmul %179, %177, %cst_48 {dimension_numbers = #tpu.dot_dimension_numbers<[1], [0], [0], [1], [0, 0, 1, 1], [], []>} : vector<128x16xbf16>, vector<16x1xbf16>, vector<128x1xf32> -> vector<128x1xf32>
    %181 = vector.broadcast %178 : vector<1x1xf32> to vector<128x1xf32>
    %182 = arith.addf %180, %181 : vector<128x1xf32>
    %183 = arith.addf %169, %182 : vector<128x1xf32>
    %c0_49 = arith.constant 0 : index
    %c0_50 = arith.constant 0 : index
    %184 = vector.load %arg4[%c0_49, %c0_50] : memref<128x1xf32, #tpu.memory_space<vmem>>, vector<128x1xf32>
    tpu.vector_store %arg4[%c0_49, %c0_50], %183 {strides = array<i32>} : memref<128x1xf32, #tpu.memory_space<vmem>>, vector<128x1xf32>,
    return
  }
  func.func @transform_0(%arg0: i32) -> (i32, i32) {
    %c0_i32 = arith.constant 0 : i32
    %c0_i32_0 = arith.constant 0 : i32
    return %arg0, %c0_i32 : i32, i32
  }
  func.func @transform_1(%arg0: i32) -> (i32, i32) {
    %c0_i32 = arith.constant 0 : i32
    %c0_i32_0 = arith.constant 0 : i32
    %c0_i32_1 = arith.constant 0 : i32
    return %c0_i32, %c0_i32_0 : i32, i32
  }
  func.func @transform_2(%arg0: i32) -> (i32, i32) {
    %c0_i32 = arith.constant 0 : i32
    %c0_i32_0 = arith.constant 0 : i32
    %c0_i32_1 = arith.constant 0 : i32
    return %c0_i32, %c0_i32_0 : i32, i32
  }
  func.func @transform_3(%arg0: i32) -> (i32, i32) {
    %c0_i32 = arith.constant 0 : i32
    %c0_i32_0 = arith.constant 0 : i32
    return %arg0, %c0_i32 : i32, i32
  }
}

</mosaic_0001>

<bundles_post_ra>
// kernel: tpu_custom_call.1
= control target key start
LH: loop header
LB: loop body
LE: loop exit
PB: predicated region body
PF: predicated region fallthrough
CT: control target
= control target key end

     0   :  { %s5347_s12 = smov 0   ;;  %s8503_s0 = inlined_call_operand.vmem [shape: f32[256,8], index: 0, kind: input, shape index: {}]   ;;  %s8504_s1 = inlined_call_operand.vmem [shape: bf16[32,768], index: 1, kind: input, shape index: {}]   ;;  %s8505_s2 = inlined_call_operand.vmem [shape: f32[1,1024], index: 2, kind: input, shape index: {}]   ;;  %s8506_s3 = inlined_call_operand.vmem [shape: f32[256,1], index: 3, kind: output, shape index: {}]  }
   0x1 LB: > { %s4214_s13 = sadd.s32 4294967295, %s5316_s12   ;;  %p4218_p0 = scmp.ge.s32.totalorder %s5316_s12, 1  ;;  %s5316_s12 = sphi %s5347_s12, %s13_s12  }
   0x2   : > { %p138_p1 = scmp.lt.s32.totalorder %s5316_s12, 3 }
   0x4   : > { %p139_p2 = pnand %p4218_p0, %p138_p1 }
   0x6   : > { %142 = sbr.rel (%p139_p2) target bundleno = 1986 (0x7c2), region = 32 }
   0xd   : > { %v191_v0 = vld [vmem:[%s8504_s1] sm:$0xf]  ;;  %vm232_vm0 = vcmask 1043456   ;;  %s4219_s16 = sshll.u32 %s4214_s13, 4  ;;  %vm207_vm1 = vcmask 64512   ;;  %vm492_vm2 = vcmask 261120  }
   0xe   : > { %4544 = vmatprep.subr.msk.bf16.mxu0 %vm232_vm0, %v191_v0  ;;  %v234_v1 = vsel %vm232_vm0, %v191_v0, 0  ;;  %p163_p3 = scmp.lt.s32.totalorder %s4219_s16, 31  ;;  %v4564_v26 = vld [vmem:[%s8504_s1 + $0x4] ss:$24 sps:$4 sm:$0xff]   ;;  %v4565_v27 = vld [vmem:[%s8504_s1 + $0x34] ss:$24 sps:$4 sm:$0xff]  }
   0xf   : > { %4429 = vmatpush3.bf16.msra.mxu0 %v234_v1  ;;  %4446 = vmatprep.subr.bf16.mxu1 %v4564_v26  ;;  %v5449_v28 = vld [vmem:[%s8505_s2] ss:$0 sm:$0xff]  ;;  %s5318_s29 = smov 2   ;;  %s5319_s9 = smov 1  }
  0x10   : > { %s9173_s16 = smov (!%p163_p3, %s4219_s16), 31  ;;  %4447 = vmatpush3.bf16.msra.mxu1 %v4564_v26  ;;  %s5320_s10 = smov 127  }
  0x11   : > { %s4220_s17 = sshll.u32 %s9173_s16, 3  ;;  %4448 = vmatprep.subr.bf16.mxu1 %v4565_v27  ;;  %s5321_s14 = smov 125  }
  0x12   : > { %s5366_s20 = scalar_lea.vmem %s8503_s0, %s4220_s17  ;;  %s5322_s15 = smov 126  }
  0x13   : > { %v5369_v2 = vld [vmem:[%s5366_s20] sm:$0xff]  ;;  %v5372_v3 = vld [vmem:[%s5366_s20 + $0x8] sm:$0xff]  ;;  %v5375_v4 = vld [vmem:[%s5366_s20 + $0x10] sm:$0xff]  ;;  %s5324_s7 = smov 16   ;;  %s5326_s11 = smov 96  }
  0x14   : > { %v193_v5 = vpack.c.bf16 %v5372_v3, %v5369_v2  ;;  %v5380_v6 = vld [vmem:[%s5366_s20 + $0x18] sm:$0xff]  ;;  %v5383_v7 = vld [vmem:[%s5366_s20 + $0x20] sm:$0xff]  ;;  %v5388_v9 = vld [vmem:[%s5366_s20 + $0x28] sm:$0xff]  ;;  %4449 = vmatpush3.bf16.msra.mxu1 %v4565_v27  ;;  %1582 = vrot.lane.b32.xlu0 %v5369_v2, %s5318_s29 }
  0x15   : > { %v194_v8 = vpack.c.bf16 %v5380_v6, %v5375_v4  ;;  %v195_v10 = vpack.c.bf16 %v5388_v9, %v5383_v7  ;;  %v5395_v11 = vld [vmem:[%s5366_s20 + $0x30] sm:$0xff]  ;;  %v5399_v12 = vld [vmem:[%s5366_s20 + $0x38] sm:$0xff]  ;;  %v5402_v13 = vld [vmem:[%s5366_s20 + $0x40] sm:$0xff]  ;;  %1586 = vrot.lane.b32.xlu1 %v5375_v4, %s5318_s29 }
  0x16   : > { %4430 = vmatprep.mubr.msk.bf16.mxu0 %vm207_vm1, %v193_v5  ;;  %v5405_v14 = vld [vmem:[%s5366_s20 + $0x48] sm:$0xff]  ;;  %v196_v15 = vpack.c.bf16 %v5399_v12, %v5395_v11  ;;  %v5414_v17 = vld [vmem:[%s5366_s20 + $0x50] sm:$0xff]  ;;  %v5417_v18 = vld [vmem:[%s5366_s20 + $0x58] sm:$0xff] }
  0x17   : > { %4431 = vmatmul.mubr.msk.bf16.vlgmr.msra.gmra.mrb[0].mxu0 %vm207_vm1, %v194_v8  ;;  %v197_v16 = vpack.c.bf16 %v5405_v14, %v5402_v13  ;;  %v5420_v19 = vld [vmem:[%s5366_s20 + $0x60] sm:$0xff]  ;;  %v5423_v20 = vld [vmem:[%s5366_s20 + $0x68] sm:$0xff]  ;;  %v198_v21 = vpack.c.bf16 %v5417_v18, %v5414_v17  ;;  %v5432_v23 = vld [vmem:[%s5366_s20 + $0x70] sm:$0xff] }
  0x18   : > { %4434 = vmatprep.mubr.msk.bf16.mxu0 %vm207_vm1, %v195_v10  ;;  %v199_v22 = vpack.c.bf16 %v5423_v20, %v5420_v19  ;;  %v5435_v24 = vld [vmem:[%s5366_s20 + $0x78] sm:$0xff]  ;;  %1584 = vrot.lane.b32.xlu0 %v5372_v3, %s5318_s29 }
  0x19   : > { %v200_v25 = vpack.c.bf16 %v5435_v24, %v5432_v23  ;;  %1588 = vrot.lane.b32.xlu1 %v5380_v6, %s5318_s29 }
  0x1c   : > { %1678 = vrot.lane.b32.xlu0 %v5369_v2, %s5319_s9 }
  0x1d   : > { %1680 = vrot.lane.b32.xlu1 %v5372_v3, %s5319_s9 }
  0x1f   : > { %4435 = vmatmul.mubr.msk.bf16.gmra.mrb[4].mxu0 %vm207_vm1, %v196_v15 }
  0x20   : > { %4438 = vmatprep.mubr.msk.bf16.mxu0 %vm207_vm1, %v197_v16  ;;  %1682 = vrot.lane.b32.xlu0 %v5375_v4, %s5319_s9 }
  0x21   : > { %1684 = vrot.lane.b32.xlu1 %v5380_v6, %s5319_s9 }
  0x24   : > { %1590 = vrot.lane.b32.xlu0 %v5383_v7, %s5318_s29 }
  0x25   : > { %1592 = vrot.lane.b32.xlu1 %v5388_v9, %s5318_s29 }
  0x27   : > { %4439 = vmatmul.mubr.msk.bf16.gmra.mrb[8].mxu0 %vm207_vm1, %v198_v21 }
  0x28   : > { %4442 = vmatprep.mubr.msk.bf16.mxu0 %vm207_vm1, %v199_v22  ;;  %1594 = vrot.lane.b32.xlu0 %v5395_v11, %s5318_s29 }
  0x29   : > { %1596 = vrot.lane.b32.xlu1 %v5399_v12, %s5318_s29 }
  0x2c   : > { %1686 = vrot.lane.b32.xlu0 %v5383_v7, %s5319_s9 }
  0x2d   : > { %1688 = vrot.lane.b32.xlu1 %v5388_v9, %s5319_s9 }
  0x2f   : > { %4443 = vmatmul.mubr.msk.bf16.gmra.mrb[12].mxu0 %vm207_vm1, %v200_v25 }
  0x30   : > { %1690 = vrot.lane.b32.xlu0 %v5395_v11, %s5319_s9 }
  0x31   : > { %1692 = vrot.lane.b32.xlu1 %v5399_v12, %s5319_s9 }
  0x34   : > { %1598 = vrot.lane.b32.xlu0 %v5402_v13, %s5318_s29 }
  0x35   : > { %1600 = vrot.lane.b32.xlu1 %v5405_v14, %s5318_s29 }
  0x38   : > { %1602 = vrot.lane.b32.xlu0 %v5414_v17, %s5318_s29 }
  0x39   : > { %1604 = vrot.lane.b32.xlu1 %v5417_v18, %s5318_s29 }
  0x3c   : > { %1694 = vrot.lane.b32.xlu0 %v5402_v13, %s5319_s9 }
  0x3d   : > { %1696 = vrot.lane.b32.xlu1 %v5405_v14, %s5319_s9 }
  0x40   : > { %1698 = vrot.lane.b32.xlu0 %v5414_v17, %s5319_s9 }
  0x41   : > { %1700 = vrot.lane.b32.xlu1 %v5417_v18, %s5319_s9 }
  0x44   : > { %1606 = vrot.lane.b32.xlu0 %v5420_v19, %s5318_s29 }
  0x45   : > { %1608 = vrot.lane.b32.xlu1 %v5423_v20, %s5318_s29 }
  0x48   : > { %1610 = vrot.lane.b32.xlu0 %v5432_v23, %s5318_s29 }
  0x49   : > { %1612 = vrot.lane.b32.xlu1 %v5435_v24, %s5318_s29 }
  0x4c   : > { %1702 = vrot.lane.b32.xlu0 %v5420_v19, %s5319_s9  ;;  %v5629_v19 = vadd.f32 1e-08, %v5402_v13  ;;  %v5643_v13 = vadd.f32 1e-08, %v5417_v18 }
  0x4d   : > { %1704 = vrot.lane.b32.xlu1 %v5423_v20, %s5319_s9  ;;  %v5633_v20 = vadd.f32 1e-08, %v5405_v14 }
  0x4e   : > { %8670 = vst [vmem:[#allocation18_spill] sm:$0xff] %v5629_v19  ;;  %8673 = vst [vmem:[#allocation21_spill] sm:$0xff] %v5643_v13 }
  0x4f   : > { %8671 = vst [vmem:[#allocation19_spill] sm:$0xff] %v5633_v20 }
  0x50   : > { %1706 = vrot.lane.b32.xlu0 %v5432_v23, %s5319_s9  ;;  %v5639_v23 = vadd.f32 1e-08, %v5414_v17 }
  0x51   : > { %1708 = vrot.lane.b32.xlu1 %v5435_v24, %s5319_s9 }
  0x52   : > { %8672 = vst [vmem:[#allocation20_spill] sm:$0xff] %v5639_v23 }
  0xea   : > { %v4432_v29 = vpop.f32.mrb[0].mxu0 }
  0xeb   : > { %v5452_v30 = vadd.f32 %v4432_v29, %v5449_v28  ;;  %v270_v31 = vpop.f32.mrb[1].mxu0 }
  0xec   : > { %v5455_v32 = vadd.f32 %v5449_v28, %v270_v31  ;;  %v4433_v33 = vpop.f32.mrb[2].mxu0 }
  0xed   : > { %8654 = vst [vmem:[#allocation2_spill] sm:$0xff] %v5452_v30  ;;  %v4234_v34 = vmul.f32 -1.442695, %v5452_v30  ;;  %v5459_v35 = vadd.f32 %v4433_v33, %v5449_v28  ;;  %v273_v36 = vpop.f32.mrb[3].mxu0 }
  0xee   : > { %8655 = vst [vmem:[#allocation3_spill] sm:$0xff] %v5455_v32  ;;  %v4232_v37 = vmul.f32 -1.442695, %v5455_v32  ;;  %v5463_v38 = vadd.f32 %v5449_v28, %v273_v36 }
  0xef   : > { %8656 = vst [vmem:[#allocation4_spill] sm:$0xff] %v5459_v35  ;;  %4573 = vpow2.f32 %v4234_v34  ;;  %v4235_v39 = vmul.f32 -1.442695, %v5459_v35 }
  0xf0   : > { %8657 = vst [vmem:[#allocation5_spill] sm:$0xff] %v5463_v38  ;;  %4575 = vpow2.f32 %v4232_v37  ;;  %v4233_v40 = vmul.f32 -1.442695, %v5463_v38 }
  0xf1   : > { %4577 = vpow2.f32 %v4235_v39 }
  0xf2   : > { %4579 = vpow2.f32 %v4233_v40  ;;  %v4436_v41 = vpop.f32.mrb[4].mxu0 }
  0xf3   : > { %v5468_v42 = vadd.f32 %v4436_v41, %v5449_v28  ;;  %v286_v43 = vpop.f32.mrb[5].mxu0 }
  0xf4   : > { %v5471_v44 = vadd.f32 %v5449_v28, %v286_v43  ;;  %v4437_v45 = vpop.f32.mrb[6].mxu0 }
  0xf5   : > { %8658 = vst [vmem:[#allocation6_spill] sm:$0xff] %v5468_v42  ;;  %v4238_v46 = vmul.f32 -1.442695, %v5468_v42  ;;  %v5475_v47 = vadd.f32 %v4437_v45, %v5449_v28  ;;  %v289_v48 = vpop.f32.mrb[7].mxu0 }
  0xf6   : > { %8659 = vst [vmem:[#allocation7_spill] sm:$0xff] %v5471_v44  ;;  %v4236_v49 = vmul.f32 -1.442695, %v5471_v44  ;;  %v5479_v50 = vadd.f32 %v5449_v28, %v289_v48 }
  0xf7   : > { %8660 = vst [vmem:[#allocation8_spill] sm:$0xff] %v5475_v47  ;;  %4581 = vpow2.f32 %v4238_v46  ;;  %v4239_v51 = vmul.f32 -1.442695, %v5475_v47 }
  0xf8   : > { %8661 = vst [vmem:[#allocation9_spill] sm:$0xff] %v5479_v50  ;;  %4583 = vpow2.f32 %v4236_v49  ;;  %v4237_v52 = vmul.f32 -1.442695, %v5479_v50 }
  0xf9   : > { %v4574_v53 = vpop.eup %4573  ;;  %4585 = vpow2.f32 %v4239_v51 }
  0xfa   : > { %v4576_v54 = vpop.eup %4575  ;;  %v399_v55 = vadd.f32 1.0, %v4574_v53  ;;  %4587 = vpow2.f32 %v4237_v52  ;;  %v4440_v56 = vpop.f32.mrb[8].mxu0 }
  0xfb   : > { %v4578_v57 = vpop.eup %4577  ;;  %v397_v58 = vadd.f32 1.0, %v4576_v54  ;;  %v5484_v59 = vadd.f32 %v4440_v56, %v5449_v28  ;;  %v302_v60 = vpop.f32.mrb[9].mxu0 }
  0xfc   : > { %v4580_v61 = vpop.eup %4579  ;;  %4589 = vrcp.f32 %v399_v55  ;;  %v400_v62 = vadd.f32 1.0, %v4578_v57  ;;  %v5487_v63 = vadd.f32 %v5449_v28, %v302_v60  ;;  %v4441_v0 = vpop.f32.mrb[10].mxu0 }
  0xfd   : > { %8662 = vst [vmem:[#allocation10_spill] sm:$0xff] %v5484_v59  ;;  %4591 = vrcp.f32 %v397_v58  ;;  %v398_v1 = vadd.f32 1.0, %v4580_v61  ;;  %v4242_v5 = vmul.f32 -1.442695, %v5484_v59  ;;  %v5491_v8 = vadd.f32 %v4441_v0, %v5449_v28  ;;  %v305_v10 = vpop.f32.mrb[11].mxu0 }
  0xfe   : > { %8663 = vst [vmem:[#allocation11_spill] sm:$0xff] %v5487_v63  ;;  %4593 = vrcp.f32 %v400_v62  ;;  %v4240_v15 = vmul.f32 -1.442695, %v5487_v63  ;;  %v5495_v16 = vadd.f32 %v5449_v28, %v305_v10 }
  0xff   : > { %8664 = vst [vmem:[#allocation12_spill] sm:$0xff] %v5491_v8  ;;  %4595 = vrcp.f32 %v398_v1  ;;  %v4243_v21 = vmul.f32 -1.442695, %v5491_v8 }
 0x100   : > { %8665 = vst [vmem:[#allocation13_spill] sm:$0xff] %v5495_v16  ;;  %4597 = vpow2.f32 %v4242_v5  ;;  %v4241_v22 = vmul.f32 -1.442695, %v5495_v16 }
 0x101   : > { %v4582_v25 = vpop.eup %4581  ;;  %4599 = vpow2.f32 %v4240_v15 }
 0x102   : > { %v4584_v26 = vpop.eup %4583  ;;  %v403_v27 = vadd.f32 1.0, %v4582_v25  ;;  %4601 = vpow2.f32 %v4243_v21  ;;  %v4444_v29 = vpop.f32.mrb[12].mxu0 }
 0x103   : > { %v4586_v31 = vpop.eup %4585  ;;  %v401_v33 = vadd.f32 1.0, %v4584_v26  ;;  %4603 = vpow2.f32 %v4241_v22  ;;  %v5500_v34 = vadd.f32 %v4444_v29, %v5449_v28  ;;  %v318_v36 = vpop.f32.mrb[13].mxu0 }
 0x104   : > { %v4588_v37 = vpop.eup %4587  ;;  %4605 = vrcp.f32 %v403_v27  ;;  %v404_v39 = vadd.f32 1.0, %v4586_v31  ;;  %v5503_v40 = vadd.f32 %v5449_v28, %v318_v36  ;;  %v4445_v41 = vpop.f32.mrb[14].mxu0 }
 0x105   : > { %8666 = vst [vmem:[#allocation14_spill] sm:$0xff] %v5500_v34  ;;  %4607 = vrcp.f32 %v401_v33  ;;  %v402_v43 = vadd.f32 1.0, %v4588_v37  ;;  %v4246_v45 = vmul.f32 -1.442695, %v5500_v34  ;;  %v5507_v46 = vadd.f32 %v4445_v41, %v5449_v28  ;;  %v321_v48 = vpop.f32.mrb[15].mxu0 }
 0x106   : > { %8667 = vst [vmem:[#allocation15_spill] sm:$0xff] %v5503_v40  ;;  %v4590_v49 = vpop.eup %4589  ;;  %4609 = vrcp.f32 %v404_v39  ;;  %v4244_v51 = vmul.f32 -1.442695, %v5503_v40  ;;  %v5511_v52 = vadd.f32 %v5449_v28, %v321_v48 }
 0x107   : > { %8668 = vst [vmem:[#allocation16_spill] sm:$0xff] %v5507_v46  ;;  %v4592_v53 = vpop.eup %4591  ;;  %4611 = vrcp.f32 %v402_v43  ;;  %v4247_v54 = vmul.f32 -1.442695, %v5507_v46  ;;  %v447_v0 = vmul.f32 %v4590_v49, %v5452_v30 }
 0x108   : > { %8669 = vst [vmem:[#allocation17_spill] sm:$0xff] %v5511_v52  ;;  %v4594_v55 = vpop.eup %4593  ;;  %4613 = vpow2.f32 %v4246_v45  ;;  %v4245_v56 = vmul.f32 -1.442695, %v5511_v52  ;;  %v445_v61 = vmul.f32 %v4592_v53, %v5455_v32 }
 0x109   : > { %v4596_v57 = vpop.eup %4595  ;;  %v448_v58 = vmul.f32 %v4594_v55, %v5459_v35  ;;  %4615 = vpow2.f32 %v4244_v51 }
 0x10a   : > { %v4598_v60 = vpop.eup %4597  ;;  %4617 = vpow2.f32 %v4247_v54  ;;  %v446_v62 = vmul.f32 %v4596_v57, %v5463_v38 }
 0x10b   : > { %v4600_v28 = vpop.eup %4599  ;;  %v407_v1 = vadd.f32 1.0, %v4598_v60  ;;  %4619 = vpow2.f32 %v4245_v56  ;;  %v467_v22 = vpack.c.bf16 %v448_v58, %v447_v0 }
 0x10c   : > { %v4602_v5 = vpop.eup %4601  ;;  %v405_v10 = vadd.f32 1.0, %v4600_v28  ;;  %v466_v15 = vpack.c.bf16 %v446_v62, %v445_v61 }
 0x10d   : > { %v4604_v21 = vpop.eup %4603  ;;  %4621 = vrcp.f32 %v407_v1  ;;  %v408_v25 = vadd.f32 1.0, %v4602_v5 }
 0x10e   : > { %v4606_v26 = vpop.eup %4605  ;;  %4623 = vrcp.f32 %v405_v10  ;;  %v406_v27 = vadd.f32 1.0, %v4604_v21  ;;  %4450 = vmatprep.mubr.msk.bf16.mxu1 %vm492_vm2, %v466_v15 }
 0x10f   : > { %v4608_v29 = vpop.eup %4607  ;;  %4625 = vrcp.f32 %v408_v25  ;;  %4451 = vmatmul.mubr.msk.bf16.vlgmr.msra.gmra.mrb[0].mxu1 %vm492_vm2, %v467_v22  ;;  %v451_v45 = vmul.f32 %v4606_v26, %v5468_v42 }
 0x110   : > { %v4610_v31 = vpop.eup %4609  ;;  %4627 = vrcp.f32 %v406_v27  ;;  %v449_v39 = vmul.f32 %v4608_v29, %v5471_v44 }
 0x111   : > { %v4612_v33 = vpop.eup %4611  ;;  %v452_v36 = vmul.f32 %v4610_v31, %v5475_v47  ;;  %v8691_v47 = vsub.f32 0.0, %v5369_v2 }
 0x112   : > { %v4614_v37 = vpop.eup %4613  ;;  %v450_v41 = vmul.f32 %v4612_v33, %v5479_v50 }
 0x113   : > { %v4616_v43 = vpop.eup %4615  ;;  %v411_v48 = vadd.f32 1.0, %v4614_v37  ;;  %v469_v55 = vpack.c.bf16 %v452_v36, %v451_v45  ;;  %v4569_v45 = vld [vmem:[%s8504_s1 + $0x3c] ss:$24 sps:$4 sm:$0xff]  }
 0x114   : > { %v4618_v49 = vpop.eup %4617  ;;  %v468_v51 = vpack.c.bf16 %v450_v41, %v449_v39  ;;  %v409_v53 = vadd.f32 1.0, %v4616_v43  ;;  %v4566_v39 = vld [vmem:[%s8504_s1 + $0x8] ss:$24 sps:$4 sm:$0xff]   ;;  %v4568_v41 = vld [vmem:[%s8504_s1 + $0xc] ss:$24 sps:$4 sm:$0xff]  }
 0x115   : > { %v4620_v54 = vpop.eup %4619  ;;  %4629 = vrcp.f32 %v411_v48  ;;  %v412_v56 = vadd.f32 1.0, %v4618_v49  ;;  %4466 = vmatprep.subr.bf16.mxu0 %v4566_v39  ;;  %4486 = vmatprep.subr.bf16.mxu1 %v4568_v41  ;;  %v4567_v43 = vld [vmem:[%s8504_s1 + $0x38] ss:$24 sps:$4 sm:$0xff]   ;;  %v1774_v48 = vadd.f32 1e-08, %v5369_v2 }
 0x116   : > { %4631 = vrcp.f32 %v409_v53  ;;  %v410_v57 = vadd.f32 1.0, %v4620_v54  ;;  %4454 = vmatprep.mubr.msk.bf16.mxu1 %vm492_vm2, %v468_v51  ;;  %4467 = vmatpush3.bf16.msra.mxu0 %v4566_v39  ;;  %v1775_v49 = vadd.f32 1e-08, %v5372_v3  ;;  %v1776_v51 = vadd.f32 1e-08, %v5375_v4 }
 0x117   : > { %v4622_v58 = vpop.eup %4621  ;;  %4633 = vrcp.f32 %v412_v56  ;;  %4455 = vmatmul.mubr.msk.bf16.gmra.mrb[4].mxu1 %vm492_vm2, %v469_v55  ;;  %4468 = vmatprep.subr.bf16.mxu0 %v4567_v43  ;;  %v1777_v53 = vadd.f32 1e-08, %v5380_v6  ;;  %v1778_v54 = vadd.f32 1e-08, %v5383_v7  ;;  %v1779_v55 = vadd.f32 1e-08, %v5388_v9 }
 0x118   : > { %v4624_v60 = vpop.eup %4623  ;;  %4635 = vrcp.f32 %v410_v57  ;;  %v455_v5 = vmul.f32 %v4622_v58, %v5484_v59  ;;  %4487 = vmatpush3.bf16.msra.mxu1 %v4568_v41  ;;  %v5618_v56 = vadd.f32 1e-08, %v5395_v11  ;;  %v5621_v57 = vadd.f32 1e-08, %v5399_v12 }
 0x119   : > { %v4626_v61 = vpop.eup %4625  ;;  %v453_v0 = vmul.f32 %v4624_v60, %v5487_v63  ;;  %4488 = vmatprep.subr.bf16.mxu1 %v4569_v45  ;;  %4637 = vrsqrt.f32 %v1774_v48 }
 0x11a   : > { %v4628_v62 = vpop.eup %4627  ;;  %v456_v28 = vmul.f32 %v4626_v61, %v5491_v8  ;;  %4469 = vmatpush3.bf16.msra.mxu0 %v4567_v43  ;;  %4639 = vrsqrt.f32 %v1775_v49 }
 0x11b   : > { %v454_v1 = vmul.f32 %v4628_v62, %v5495_v16  ;;  %4641 = vrsqrt.f32 %v1776_v51 }
 0x11c   : > { %v471_v15 = vpack.c.bf16 %v456_v28, %v455_v5  ;;  %4489 = vmatpush3.bf16.msra.mxu1 %v4569_v45  ;;  %4643 = vrsqrt.f32 %v1777_v53 }
 0x11d   : > { %v470_v10 = vpack.c.bf16 %v454_v1, %v453_v0  ;;  %4645 = vrsqrt.f32 %v1778_v54 }
 0x11e   : > { %4647 = vrsqrt.f32 %v1779_v55 }
 0x11f   : > { %v4630_v21 = vpop.eup %4629  ;;  %4458 = vmatprep.mubr.msk.bf16.mxu1 %vm492_vm2, %v470_v10  ;;  %4649 = vrsqrt.f32 %v5618_v56 }
 0x120   : > { %v4632_v22 = vpop.eup %4631  ;;  %4459 = vmatmul.mubr.msk.bf16.gmra.mrb[8].mxu1 %vm492_vm2, %v471_v15  ;;  %v459_v33 = vmul.f32 %v4630_v21, %v5500_v34  ;;  %4651 = vrsqrt.f32 %v5621_v57 }
 0x121   : > { %v4634_v25 = vpop.eup %4633  ;;  %v457_v29 = vmul.f32 %v4632_v22, %v5503_v40  ;;  %4653 = vrsqrt.f32 %v5629_v19 }
 0x122   : > { %v4636_v26 = vpop.eup %4635  ;;  %v460_v27 = vmul.f32 %v4634_v25, %v5507_v46  ;;  %4655 = vrsqrt.f32 %v5633_v20  ;;  %v5686_v25 = vld [vmem:[%s8505_s2 + $0x1] ss:$0 sm:$0xff] }
 0x123   : > { %v458_v31 = vmul.f32 %v4636_v26, %v5511_v52  ;;  %v4638_v58 = vpop.eup %4637  ;;  %4657 = vrsqrt.f32 %v5639_v23 }
 0x124   : > { %v473_v37 = vpack.c.bf16 %v460_v27, %v459_v33  ;;  %v4640_v60 = vpop.eup %4639  ;;  %2142 = vrot.lane.b32.xlu0 %v4638_v58, %s5320_s10  ;;  %4659 = vrsqrt.f32 %v5643_v13  ;;  %v5675_v10 = vmul.f32 %v4638_v58, %v1774_v48 }
 0x125   : > { %v472_v36 = vpack.c.bf16 %v458_v31, %v457_v29  ;;  %v4642_v61 = vpop.eup %4641  ;;  %2144 = vrot.lane.b32.xlu1 %v4640_v60, %s5320_s10  ;;  %v5677_v15 = vmul.f32 %v4640_v60, %v1775_v49 }
 0x126   : > { %v4644_v24 = vpop.eup %4643  ;;  %v5679_v21 = vmul.f32 %v4642_v61, %v1776_v51 }
 0x127   : > { %4462 = vmatprep.mubr.msk.bf16.mxu1 %vm492_vm2, %v472_v36  ;;  %v4646_v62 = vpop.eup %4645  ;;  %v5681_v22 = vmul.f32 %v4644_v24, %v1777_v53 }
 0x128   : > { %4463 = vmatmul.mubr.msk.bf16.gmra.mrb[12].mxu1 %vm492_vm2, %v473_v37  ;;  %2146 = vrot.lane.b32.xlu0 %v4642_v61, %s5320_s10  ;;  %v4648_v14 = vpop.eup %4647  ;;  %v5688_v26 = vmul.f32 %v4646_v62, %v1778_v54 }
 0x129   : > { %2148 = vrot.lane.b32.xlu1 %v4644_v24, %s5320_s10  ;;  %v5649_v28 = vpop.eup %4649  ;;  %v5690_v27 = vmul.f32 %v4648_v14, %v1779_v55 }
 0x12a   : > { %v5653_v17 = vpop.eup %4651 }
 0x12b   : > { %v5655_v18 = vpop.eup %4653 }
 0x12c   : > { %2150 = vrot.lane.b32.xlu0 %v4646_v62, %s5320_s10  ;;  %8674 = vst [vmem:[#allocation22_spill] sm:$0xff] %v5655_v18  ;;  %v5661_v0 = vpop.eup %4655 }
 0x12d   : > { %2152 = vrot.lane.b32.xlu1 %v4648_v14, %s5320_s10  ;;  %8675 = vst [vmem:[#allocation23_spill] sm:$0xff] %v5661_v0  ;;  %v5663_v1 = vpop.eup %4657 }
 0x12e   : > { %8676 = vst [vmem:[#allocation24_spill] sm:$0xff] %v5663_v1  ;;  %v5669_v5 = vpop.eup %4659 }
 0x12f   : > { %8677 = vst [vmem:[#allocation25_spill] sm:$0xff] %v5669_v5 }
 0x130   : > { %2154 = vrot.lane.b32.xlu0 %v5649_v28, %s5320_s10 }
 0x131   : > { %2156 = vrot.lane.b32.xlu1 %v5653_v17, %s5320_s10 }
 0x134   : > { %2158 = vrot.lane.b32.xlu0 %v5655_v18, %s5320_s10  ;;  %v8697_v18 = vsub.f32 0.0, %v5369_v2 }
 0x135   : > { %2160 = vrot.lane.b32.xlu1 %v5661_v0, %s5320_s10 }
 0x138   : > { %2162 = vrot.lane.b32.xlu0 %v5663_v1, %s5320_s10 }
 0x139   : > { %2164 = vrot.lane.b32.xlu1 %v5669_v5, %s5320_s10 }
 0x1e2   : > { %v4452_v29 = vpop.f32.mrb[0].mxu1 }
 0x1e3   : > { %v5693_v31 = vadd.f32 %v4452_v29, %v5686_v25  ;;  %v551_v33 = vpop.f32.mrb[1].mxu1 }
 0x1e4   : > { %v5696_v36 = vadd.f32 %v5686_v25, %v551_v33  ;;  %v4453_v37 = vpop.f32.mrb[2].mxu1 }
 0x1e5   : > { %8678 = vst [vmem:[#allocation26_spill] sm:$0xff] %v5693_v31  ;;  %v4261_v39 = vmul.f32 -1.442695, %v5693_v31  ;;  %v5700_v41 = vadd.f32 %v4453_v37, %v5686_v25  ;;  %v554_v43 = vpop.f32.mrb[3].mxu1 }
 0x1e6   : > { %8679 = vst [vmem:[#allocation27_spill] sm:$0xff] %v5696_v36  ;;  %v4259_v45 = vmul.f32 -1.442695, %v5696_v36  ;;  %v5704_v48 = vadd.f32 %v5686_v25, %v554_v43  ;;  %v5726_v43 = vpop.permute.xlu1 %1586 }
 0x1e7   : > { %8680 = vst [vmem:[#allocation28_spill] sm:$0xff] %v5700_v41  ;;  %4661 = vpow2.f32 %v4261_v39  ;;  %v4262_v49 = vmul.f32 -1.442695, %v5700_v41  ;;  %v5724_v39 = vpop.permute.xlu0 %1582 }
 0x1e8   : > { %8681 = vst [vmem:[#allocation29_spill] sm:$0xff] %v5704_v48  ;;  %4663 = vpow2.f32 %v4259_v45  ;;  %v4260_v51 = vmul.f32 -1.442695, %v5704_v48  ;;  %v1630_v42 = vmul.f32 %v5724_v39, %v8691_v47  ;;  %v1551_v47 = vsub.f32 0.0, %v5372_v3 }
 0x1e9   : > { %4665 = vpow2.f32 %v4262_v49 }
 0x1ea   : > { %4667 = vpow2.f32 %v4260_v51  ;;  %v4456_v53 = vpop.f32.mrb[4].mxu1  ;;  %v1646_v30 = vmul.f32 1.442695, %v1630_v42 }
 0x1eb   : > { %v5709_v54 = vadd.f32 %v4456_v53, %v5686_v25  ;;  %v567_v55 = vpop.f32.mrb[5].mxu1  ;;  %v5731_v52 = vpop.permute.xlu0 %1584 }
 0x1ec   : > { %v5712_v58 = vadd.f32 %v5686_v25, %v567_v55  ;;  %v4457_v60 = vpop.f32.mrb[6].mxu1 }
 0x1ed   : > { %8682 = vst [vmem:[#allocation30_spill] sm:$0xff] %v5709_v54  ;;  %v4265_v61 = vmul.f32 -1.442695, %v5709_v54  ;;  %v5716_v24 = vadd.f32 %v4457_v60, %v5686_v25  ;;  %v570_v62 = vpop.f32.mrb[7].mxu1 }
 0x1ee   : > { %8683 = vst [vmem:[#allocation31_spill] sm:$0xff] %v5712_v58  ;;  %v4263_v14 = vmul.f32 -1.442695, %v5712_v58  ;;  %v5720_v29 = vadd.f32 %v5686_v25, %v570_v62 }
 0x1ef   : > { %8684 = vst [vmem:[#allocation32_spill] sm:$0xff] %v5716_v24  ;;  %4669 = vpow2.f32 %v4265_v61  ;;  %v4266_v33 = vmul.f32 -1.442695, %v5716_v24 }
 0x1f0   : > { %8685 = vst [vmem:[#allocation33_spill] sm:$0xff] %v5720_v29  ;;  %4671 = vpow2.f32 %v4263_v14  ;;  %v4264_v37 = vmul.f32 -1.442695, %v5720_v29 }
 0x1f1   : > { %v4662_v45 = vpop.eup %4661  ;;  %4673 = vpow2.f32 %v4266_v33 }
 0x1f2   : > { %v4664_v49 = vpop.eup %4663  ;;  %v680_v51 = vadd.f32 1.0, %v4662_v45  ;;  %4675 = vpow2.f32 %v4264_v37  ;;  %v5736_v45 = vpop.permute.xlu1 %1588 }
 0x1f3   : > { %v4666_v53 = vpop.eup %4665  ;;  %v678_v55 = vadd.f32 1.0, %v4664_v49  ;;  %v4460_v60 = vpop.f32.mrb[8].mxu1 }
 0x1f4   : > { %v4668_v62 = vpop.eup %4667  ;;  %4677 = vrcp.f32 %v680_v51  ;;  %v681_v61 = vadd.f32 1.0, %v4666_v53  ;;  %v5729_v46 = vadd.f32 %v4460_v60, %v5686_v25  ;;  %v583_v14 = vpop.f32.mrb[9].mxu1 }
 0x1f5   : > { %4679 = vrcp.f32 %v678_v55  ;;  %v679_v34 = vadd.f32 1.0, %v4668_v62  ;;  %v5734_v40 = vadd.f32 %v5686_v25, %v583_v14  ;;  %v4461_v33 = vpop.f32.mrb[10].mxu1  ;;  %v1679_v14 = vpop.permute.xlu0 %1678 }
 0x1f6   : > { %8686 = vst [vmem:[#allocation34_spill] sm:$0xff] %v5729_v46  ;;  %4681 = vrcp.f32 %v681_v61  ;;  %v4269_v37 = vmul.f32 -1.442695, %v5729_v46  ;;  %v5740_v49 = vadd.f32 %v4461_v33, %v5686_v25  ;;  %v586_v51 = vpop.f32.mrb[11].mxu1  ;;  %v5749_v8 = vpop.permute.xlu1 %1680 }
 0x1f7   : > { %8687 = vst [vmem:[#allocation35_spill] sm:$0xff] %v5734_v40  ;;  %4683 = vrcp.f32 %v679_v34  ;;  %v4267_v53 = vmul.f32 -1.442695, %v5734_v40  ;;  %v5744_v60 = vadd.f32 %v5686_v25, %v586_v51 }
 0x1f8   : > { %8688 = vst [vmem:[#allocation36_spill] sm:$0xff] %v5740_v49  ;;  %4685 = vpow2.f32 %v4269_v37  ;;  %v4270_v55 = vmul.f32 -1.442695, %v5740_v49 }
 0x1f9   : > { %8689 = vst [vmem:[#allocation37_spill] sm:$0xff] %v5744_v60  ;;  %v4670_v16 = vpop.eup %4669  ;;  %4687 = vpow2.f32 %v4267_v53  ;;  %v4268_v61 = vmul.f32 -1.442695, %v5744_v60  ;;  %v5758_v38 = vpop.permute.xlu0 %1682 }
 0x1fa   : > { %v4672_v33 = vpop.eup %4671  ;;  %v684_v63 = vadd.f32 1.0, %v4670_v16  ;;  %4689 = vpow2.f32 %v4270_v55 }
 0x1fb   : > { %v4674_v34 = vpop.eup %4673  ;;  %v682_v59 = vadd.f32 1.0, %v4672_v33  ;;  %4691 = vpow2.f32 %v4268_v61  ;;  %v4464_v51 = vpop.f32.mrb[12].mxu1 }
 0x1fc   : > { %v4676_v50 = vpop.eup %4675  ;;  %4693 = vrcp.f32 %v684_v63  ;;  %v685_v44 = vadd.f32 1.0, %v4674_v34  ;;  %v5753_v62 = vadd.f32 %v4464_v51, %v5686_v25  ;;  %v599_v53 = vpop.f32.mrb[13].mxu1 }
 0x1fd   : > { %4695 = vrcp.f32 %v682_v59  ;;  %v683_v16 = vadd.f32 1.0, %v4676_v50  ;;  %v5761_v55 = vadd.f32 %v5686_v25, %v599_v53  ;;  %v4465_v61 = vpop.f32.mrb[14].mxu1  ;;  %v5763_v33 = vpop.permute.xlu1 %1684 }
 0x1fe   : > { %8690 = vst [vmem:[#allocation38_spill] sm:$0xff] %v5753_v62  ;;  %v4678_v63 = vpop.eup %4677  ;;  %4697 = vrcp.f32 %v685_v44  ;;  %v4273_v34 = vmul.f32 -1.442695, %v5753_v62  ;;  %v5767_v51 = vadd.f32 %v4465_v61, %v5686_v25  ;;  %v602_v37 = vpop.f32.mrb[15].mxu1  ;;  %v8695_v61 = vsub.f32 0.0, %v5375_v4 }
 0x1ff   : > { %8692 = vst [vmem:[#allocation39_spill] sm:$0xff] %v5761_v55  ;;  %v4680_v32 = vpop.eup %4679  ;;  %4699 = vrcp.f32 %v683_v16  ;;  %v4271_v50 = vmul.f32 -1.442695, %v5761_v55  ;;  %v5772_v59 = vadd.f32 %v5686_v25, %v602_v37  ;;  %v5779_v13 = vpop.permute.xlu0 %1590  ;;  %v728_v16 = vmul.f32 %v4678_v63, %v5693_v31 }
 0x200   : > { %8693 = vst [vmem:[#allocation40_spill] sm:$0xff] %v5767_v51  ;;  %v4682_v35 = vpop.eup %4681  ;;  %4701 = vpow2.f32 %v4273_v34  ;;  %v4274_v44 = vmul.f32 -1.442695, %v5767_v51  ;;  %v1632_v5 = vmul.f32 %v5726_v43, %v8695_v61  ;;  %v726_v53 = vmul.f32 %v4680_v32, %v5696_v36 }
 0x201   : > { %8694 = vst [vmem:[#allocation41_spill] sm:$0xff] %v5772_v59  ;;  %v4684_v3 = vpop.eup %4683  ;;  %v729_v1 = vmul.f32 %v4682_v35, %v5700_v41  ;;  %4703 = vpow2.f32 %v4271_v50  ;;  %v4272_v25 = vmul.f32 -1.442695, %v5772_v59  ;;  %v5784_v37 = vpop.permute.xlu1 %1592  ;;  %v1631_v61 = vmul.f32 %v5731_v52, %v1551_v47 }
 0x202   : > { %v4686_v34 = vpop.eup %4685  ;;  %v727_v42 = vmul.f32 %v4684_v3, %v5704_v48  ;;  %4705 = vpow2.f32 %v4274_v44  ;;  %v8696_v63 = vsub.f32 0.0, %v5380_v6  ;;  %v1726_v32 = vmul.f32 %v1679_v14, %v8697_v18 }
 0x203   : > { %v4688_v23 = vpop.eup %4687  ;;  %v748_v0 = vpack.c.bf16 %v729_v1, %v728_v16  ;;  %v688_v20 = vadd.f32 1.0, %v4686_v34  ;;  %4707 = vpow2.f32 %v4272_v25  ;;  %v5794_v36 = vpop.permute.xlu0 %1594  ;;  %v1650_v48 = vmul.f32 1.442695, %v1632_v5 }
 0x204   : > { %v1633_v35 = vmul.f32 %v5736_v45, %v8696_v63  ;;  %v4690_v50 = vpop.eup %4689  ;;  %v747_v41 = vpack.c.bf16 %v727_v42, %v726_v53  ;;  %v686_v31 = vadd.f32 1.0, %v4688_v23  ;;  %4709 = vpow2.f32 %v1646_v30 }
 0x205   : > { %v4692_v44 = vpop.eup %4691  ;;  %4711 = vrcp.f32 %v688_v20  ;;  %v689_v3 = vadd.f32 1.0, %v4690_v50  ;;  %v5796_v1 = vpop.permute.xlu1 %1596  ;;  %v1648_v23 = vmul.f32 1.442695, %v1631_v61  ;;  %v1742_v18 = vmul.f32 1.442695, %v1726_v32 }
 0x206   : > { %v4694_v16 = vpop.eup %4693  ;;  %4713 = vrcp.f32 %v686_v31  ;;  %v687_v25 = vadd.f32 1.0, %v4692_v44  ;;  %4470 = vmatprep.mubr.msk.bf16.mxu0 %vm492_vm2, %v747_v41  ;;  %4490 = vmatprep.mubr.msk.bf16.mxu1 %vm492_vm2, %v747_v41  ;;  %v1652_v2 = vmul.f32 1.442695, %v1633_v35  ;;  %v1555_v5 = vsub.f32 0.0, %v5388_v9 }
 0x207   : > { %v4696_v30 = vpop.eup %4695  ;;  %4715 = vrcp.f32 %v689_v3  ;;  %4471 = vmatmul.mubr.msk.bf16.vlgmr.msra.gmra.mrb[16].mxu0 %vm492_vm2, %v748_v0  ;;  %4491 = vmatmul.mubr.msk.bf16.vlgmr.msra.gmra.mrb[16].mxu1 %vm492_vm2, %v748_v0  ;;  %v1554_v31 = vsub.f32 0.0, %v5383_v7  ;;  %v5804_v14 = vpop.permute.xlu0 %1686  ;;  %v732_v41 = vmul.f32 %v4694_v16, %v5709_v54  ;;  %v1727_v42 = vmul.f32 %v5749_v8, %v1551_v47 }
 0x208   : > { %v4698_v20 = vpop.eup %4697  ;;  %4717 = vrcp.f32 %v687_v25  ;;  %v730_v63 = vmul.f32 %v4696_v30, %v5712_v58  ;;  %v8698_v50 = vsub.f32 0.0, %v5375_v4 }
 0x209   : > { %v4700_v53 = vpop.eup %4699  ;;  %v733_v34 = vmul.f32 %v4698_v20, %v5716_v24  ;;  %4719 = vpow2.f32 %v1650_v48  ;;  %v5809_v61 = vpop.permute.xlu1 %1688  ;;  %v1556_v48 = vsub.f32 0.0, %v5395_v11  ;;  %v8699_v20 = vsub.f32 0.0, %v5380_v6  ;;  %v5279_v11 = vld [vmem:[%s5366_s20 + $0x50] sm:$0xff] }
 0x20a   : > { %v4702_v0 = vpop.eup %4701  ;;  %v731_v35 = vmul.f32 %v4700_v53, %v5720_v29  ;;  %4721 = vpow2.f32 %v1648_v23  ;;  %v1728_v32 = vmul.f32 %v5758_v38, %v8698_v50  ;;  %v1744_v38 = vmul.f32 1.442695, %v1727_v42 }
 0x20b   : > { %v4704_v44 = vpop.eup %4703  ;;  %v750_v3 = vpack.c.bf16 %v733_v34, %v732_v41  ;;  %v692_v16 = vadd.f32 1.0, %v4702_v0  ;;  %4723 = vpow2.f32 %v1652_v2  ;;  %v1729_v30 = vmul.f32 %v5763_v33, %v8699_v20  ;;  %v5820_v53 = vpop.permute.xlu0 %1690 }
 0x20c   : > { %v4706_v25 = vpop.eup %4705  ;;  %v749_v8 = vpack.c.bf16 %v731_v35, %v730_v63  ;;  %v690_v47 = vadd.f32 1.0, %v4704_v44  ;;  %4725 = vpow2.f32 %v1742_v18  ;;  %v1634_v2 = vmul.f32 %v5779_v13, %v1554_v31 }
 0x20d   : > { %v4708_v23 = vpop.eup %4707  ;;  %4727 = vrcp.f32 %v692_v16  ;;  %v693_v4 = vadd.f32 1.0, %v4706_v25  ;;  %v5825_v41 = vpop.permute.xlu1 %1692  ;;  %v1746_v6 = vmul.f32 1.442695, %v1728_v32  ;;  %v1635_v18 = vmul.f32 %v5784_v37, %v1555_v5 }
 0x20e   : > { %v4710_v34 = vpop.eup %4709  ;;  %4729 = vrcp.f32 %v690_v47  ;;  %v691_v0 = vadd.f32 1.0, %v4708_v23  ;;  %4474 = vmatprep.mubr.msk.bf16.mxu0 %vm492_vm2, %v749_v8  ;;  %4494 = vmatprep.mubr.msk.bf16.mxu1 %vm492_vm2, %v749_v8  ;;  %v1557_v42 = vsub.f32 0.0, %v5399_v12  ;;  %v1748_v35 = vmul.f32 1.442695, %v1729_v30 }
 0x20f   : > { %v4712_v33 = vpop.eup %4711  ;;  %4731 = vrcp.f32 %v693_v4  ;;  %4475 = vmatmul.mubr.msk.bf16.gmra.mrb[20].mxu0 %vm492_vm2, %v750_v3  ;;  %4495 = vmatmul.mubr.msk.bf16.gmra.mrb[20].mxu1 %vm492_vm2, %v750_v3  ;;  %v1636_v50 = vmul.f32 %v5794_v36, %v1556_v48  ;;  %v5839_v32 = vpop.permute.xlu0 %1598  ;;  %v1654_v3 = vmul.f32 1.442695, %v1634_v2  ;;  %v1656_v4 = vmul.f32 1.442695, %v1635_v18 }
 0x210   : > { %v4714_v63 = vpop.eup %4713  ;;  %4733 = vrcp.f32 %v691_v0  ;;  %1870 = vrot.lane.b32.xlu0 %v4710_v34, %s5321_s14  ;;  %v736_v8 = vmul.f32 %v4712_v33, %v5729_v46  ;;  %v1637_v34 = vmul.f32 %v5796_v1, %v1557_v42  ;;  %v1732_v9 = vmul.f32 %v5820_v53, %v1556_v48 }
 0x211   : > { %v4716_v44 = vpop.eup %4715  ;;  %4735 = vpow2.f32 %v1744_v38  ;;  %v5841_v16 = vpop.permute.xlu1 %1600  ;;  %v734_v30 = vmul.f32 %v4714_v63, %v5734_v40  ;;  %v1658_v0 = vmul.f32 1.442695, %v1636_v50 }
 0x212   : > { %8700 = vst [vmem:[#allocation42_spill] sm:$0xff] %v5841_v16  ;;  %v4718_v25 = vpop.eup %4717  ;;  %v737_v47 = vmul.f32 %v4716_v44, %v5740_v49  ;;  %4737 = vpow2.f32 %v1746_v6  ;;  %v1730_v6 = vmul.f32 %v5804_v14, %v1554_v31  ;;  %v1660_v7 = vmul.f32 1.442695, %v1637_v34 }
 0x213   : > { %v4720_v20 = vpop.eup %4719  ;;  %v735_v23 = vmul.f32 %v4718_v25, %v5744_v60  ;;  %4739 = vpow2.f32 %v1748_v35  ;;  %v5854_v33 = vpop.permute.xlu0 %1602  ;;  %v1731_v35 = vmul.f32 %v5809_v61, %v1555_v5  ;;  %v5277_v5 = vld [vmem:[%s5366_s20 + $0x40] sm:$0xff] }
 0x214   : > { %v4722_v38 = vpop.eup %4721  ;;  %v752_v2 = vpack.c.bf16 %v737_v47, %v736_v8  ;;  %1874 = vrot.lane.b32.xlu0 %v4720_v20, %s5321_s14  ;;  %4741 = vpow2.f32 %v1654_v3  ;;  %v1750_v14 = vmul.f32 1.442695, %v1730_v6  ;;  %v1558_v61 = vsub.f32 0.0, %v5277_v5  ;;  %v5278_v47 = vld [vmem:[%s5366_s20 + $0x48] sm:$0xff] }
 0x215   : > { %v4724_v63 = vpop.eup %4723  ;;  %v751_v44 = vpack.c.bf16 %v735_v23, %v734_v30  ;;  %1872 = vrot.lane.b32.xlu1 %v4722_v38, %s5321_s14  ;;  %v5857_v18 = vpop.permute.xlu1 %1604  ;;  %4743 = vpow2.f32 %v1656_v4  ;;  %v1559_v20 = vsub.f32 0.0, %v5278_v47  ;;  %v1752_v34 = vmul.f32 1.442695, %v1731_v35 }
 0x216   : > { %v4726_v25 = vpop.eup %4725  ;;  %4745 = vpow2.f32 %v1658_v0  ;;  %v1560_v38 = vsub.f32 0.0, %v5279_v11  ;;  %v1733_v0 = vmul.f32 %v5825_v41, %v1557_v42  ;;  %v1638_v35 = vmul.f32 %v5839_v32, %v1558_v61  ;;  %v5280_v42 = vld [vmem:[%s5366_s20 + $0x58] sm:$0xff] }
 0x217   : > { %v4728_v50 = vpop.eup %4727  ;;  %4478 = vmatprep.mubr.msk.bf16.mxu0 %vm492_vm2, %v751_v44  ;;  %4498 = vmatprep.mubr.msk.bf16.mxu1 %vm492_vm2, %v751_v44  ;;  %v1695_v3 = vpop.permute.xlu0 %1694  ;;  %4747 = vpow2.f32 %v1660_v7  ;;  %v1639_v41 = vmul.f32 %v5841_v16, %v1559_v20 }
 0x218   : > { %v4730_v31 = vpop.eup %4729  ;;  %4479 = vmatmul.mubr.msk.bf16.gmra.mrb[24].mxu0 %vm492_vm2, %v752_v2  ;;  %4499 = vmatmul.mubr.msk.bf16.gmra.mrb[24].mxu1 %vm492_vm2, %v752_v2  ;;  %v740_v23 = vmul.f32 %v4728_v50, %v5753_v62  ;;  %4749 = vpow2.f32 %v1750_v14  ;;  %v1756_v12 = vmul.f32 1.442695, %v1733_v0  ;;  %v1561_v14 = vsub.f32 0.0, %v5280_v42 }
 0x219   : > { %v4732_v8 = vpop.eup %4731  ;;  %1876 = vrot.lane.b32.xlu1 %v4724_v63, %s5321_s14  ;;  %1950 = vrot.lane.b32.xlu0 %v4726_v25, %s5322_s15  ;;  %v738_v53 = vmul.f32 %v4730_v31, %v5761_v55  ;;  %v1697_v6 = vpop.permute.xlu1 %1696  ;;  %v1754_v25 = vmul.f32 1.442695, %v1732_v9  ;;  %4751 = vpow2.f32 %v1752_v34  ;;  %v1662_v9 = vmul.f32 1.442695, %v1638_v35  ;;  %v5287_v55 = vld [vmem:[%s5366_s20] sm:$0xff] }
 0x21a   : > { %v4734_v30 = vpop.eup %4733  ;;  %v741_v4 = vmul.f32 %v4732_v8, %v5767_v51  ;;  %v1640_v8 = vmul.f32 %v5854_v33, %v1560_v38  ;;  %v1641_v34 = vmul.f32 %v5857_v18, %v1561_v14 }
 0x21b   : > { %v4736_v48 = vpop.eup %4735  ;;  %v739_v2 = vmul.f32 %v4734_v30, %v5772_v59  ;;  %v1699_v31 = vpop.permute.xlu0 %1698  ;;  %4753 = vpow2.f32 %v1754_v25 }
 0x21c   : > { %v4738_v63 = vpop.eup %4737  ;;  %v754_v44 = vpack.c.bf16 %v741_v4, %v740_v23  ;;  %4755 = vpow2.f32 %v1756_v12  ;;  %v1664_v4 = vmul.f32 1.442695, %v1639_v41  ;;  %v5909_v41 = vld [vmem:[%s5366_s20 + $0x68] sm:$0xff] }
 0x21d   : > { %v753_v50 = vpack.c.bf16 %v739_v2, %v738_v53  ;;  %1952 = vrot.lane.b32.xlu1 %v4736_v48, %s5322_s15  ;;  %1954 = vrot.lane.b32.xlu0 %v4738_v63, %s5322_s15  ;;  %v4740_v5 = vpop.eup %4739  ;;  %v1701_v30 = vpop.permute.xlu1 %1700  ;;  %4757 = vpow2.f32 %v1662_v9  ;;  %v1666_v48 = vmul.f32 1.442695, %v1640_v8  ;;  %v1734_v53 = vmul.f32 %v1695_v3, %v1558_v61  ;;  %v5283_v9 = vld [vmem:[%s5366_s20 + $0x70] sm:$0xff] }
 0x21e   : > { %v4742_v7 = vpop.eup %4741  ;;  %4759 = vpow2.f32 %v1664_v4  ;;  %v1668_v63 = vmul.f32 1.442695, %v1641_v34  ;;  %v1564_v8 = vsub.f32 0.0, %v5283_v9  ;;  %v5284_v34 = vld [vmem:[%s5366_s20 + $0x78] sm:$0xff] }
 0x21f   : > { %4482 = vmatprep.mubr.msk.bf16.mxu0 %vm492_vm2, %v753_v50  ;;  %4502 = vmatprep.mubr.msk.bf16.mxu1 %vm492_vm2, %v753_v50  ;;  %v4744_v47 = vpop.eup %4743  ;;  %v5894_v11 = vpop.permute.xlu0 %1606  ;;  %4761 = vpow2.f32 %v1666_v48  ;;  %v1758_v35 = vmul.f32 1.442695, %v1734_v53  ;;  %v1736_v50 = vmul.f32 %v1699_v31, %v1560_v38  ;;  %v1563_v38 = vsub.f32 0.0, %v5909_v41 }
 0x220   : > { %4483 = vmatmul.mubr.msk.bf16.gmra.mrb[28].mxu0 %vm492_vm2, %v754_v44  ;;  %4503 = vmatmul.mubr.msk.bf16.gmra.mrb[28].mxu1 %vm492_vm2, %v754_v44  ;;  %v4746_v23 = vpop.eup %4745  ;;  %8701 = vst [vmem:[#allocation43_spill] sm:$0xff] %v5894_v11  ;;  %v1735_v44 = vmul.f32 %v1697_v6, %v1559_v20  ;;  %4763 = vpow2.f32 %v1668_v63  ;;  %v1737_v6 = vmul.f32 %v1701_v30, %v1561_v14  ;;  %v1565_v48 = vsub.f32 0.0, %v5284_v34 }
 0x221   : > { %1956 = vrot.lane.b32.xlu1 %v4740_v5, %s5322_s15  ;;  %1878 = vrot.lane.b32.xlu0 %v4742_v7, %s5321_s14  ;;  %v4748_v2 = vpop.eup %4747  ;;  %v5898_v25 = vpop.permute.xlu1 %1608  ;;  %v5901_v5 = vld [vmem:[%s5366_s20 + $0x60] sm:$0xff]  ;;  %4765 = vpow2.f32 %v1758_v35  ;;  %v1762_v31 = vmul.f32 1.442695, %v1736_v50 }
 0x222   : > { %v4750_v0 = vpop.eup %4749  ;;  %8702 = vst [vmem:[#allocation44_spill] sm:$0xff] %v5898_v25  ;;  %v1562_v61 = vsub.f32 0.0, %v5901_v5  ;;  %v1760_v20 = vmul.f32 1.442695, %v1735_v44  ;;  %v1764_v14 = vmul.f32 1.442695, %v1737_v6  ;;  %v1643_v30 = vmul.f32 %v5898_v25, %v1563_v38 }
 0x223   : > { %v4752_v3 = vpop.eup %4751  ;;  %v5906_v7 = vpop.permute.xlu0 %1610 }
 0x224   : > { %8703 = vst [vmem:[#allocation45_spill] sm:$0xff] %v5906_v7  ;;  %v1642_v42 = vmul.f32 %v5894_v11, %v1562_v61  ;;  %4767 = vpow2.f32 %v1760_v20  ;;  %v1672_v35 = vmul.f32 1.442695, %v1643_v30 }
 0x225   : > { %1880 = vrot.lane.b32.xlu1 %v4744_v47, %s5321_s14  ;;  %1882 = vrot.lane.b32.xlu0 %v4746_v23, %s5321_s14  ;;  %v4754_v12 = vpop.eup %4753  ;;  %v5916_v23 = vpop.permute.xlu1 %1612  ;;  %4769 = vpow2.f32 %v1762_v31 }
 0x226   : > { %v4756_v47 = vpop.eup %4755  ;;  %8704 = vst [vmem:[#allocation46_spill] sm:$0xff] %v5916_v23  ;;  %4771 = vpow2.f32 %v1764_v14  ;;  %v1645_v50 = vmul.f32 %v5916_v23, %v1565_v48 }
 0x227   : > { %v4758_v4 = vpop.eup %4757  ;;  %v1703_v53 = vpop.permute.xlu0 %1702 }
 0x228   : > { %v4760_v63 = vpop.eup %4759  ;;  %v1738_v20 = vmul.f32 %v1703_v53, %v1562_v61 }
 0x229   : > { %1884 = vrot.lane.b32.xlu1 %v4748_v2, %s5321_s14  ;;  %1958 = vrot.lane.b32.xlu0 %v4750_v0, %s5322_s15  ;;  %v1670_v2 = vmul.f32 1.442695, %v1642_v42  ;;  %v1644_v0 = vmul.f32 %v5906_v7, %v1564_v8  ;;  %v4762_v44 = vpop.eup %4761 }
 0x22a   : > { %v4764_v6 = vpop.eup %4763 }
 0x22b   : > { %4773 = vpow2.f32 %v1670_v2  ;;  %v1707_v31 = vpop.permute.xlu0 %1706  ;;  %v4766_v42 = vpop.eup %4765 }
 0x22c   : > { %4775 = vpow2.f32 %v1672_v35  ;;  %v1740_v14 = vmul.f32 %v1707_v31, %v1564_v8  ;;  %v5931_v8 = vadd.f32 1e-08, %v5901_v5 }
 0x22d   : > { %1960 = vrot.lane.b32.xlu1 %v4752_v3, %s5322_s15  ;;  %1962 = vrot.lane.b32.xlu0 %v4754_v12, %s5322_s15  ;;  %v1705_v3 = vpop.permute.xlu1 %1704  ;;  %v1674_v12 = vmul.f32 1.442695, %v1644_v0 }
 0x22e   : > { %v1739_v51 = vmul.f32 %v1705_v3, %v1563_v38  ;;  %v4768_v30 = vpop.eup %4767  ;;  %8705 = vst [vmem:[#allocation47_spill] sm:$0xff] %v5931_v8  ;;  %v5939_v3 = vadd.f32 1e-08, %v5283_v9 }
 0x22f   : > { %4777 = vpow2.f32 %v1674_v12  ;;  %v4770_v61 = vpop.eup %4769 }
 0x230   : > { %v1768_v53 = vmul.f32 1.442695, %v1739_v51  ;;  %8707 = vst [vmem:[#allocation49_spill] sm:$0xff] %v5939_v3 }
 0x231   : > { %1964 = vrot.lane.b32.xlu1 %v4756_v47, %s5322_s15  ;;  %1886 = vrot.lane.b32.xlu0 %v4758_v4, %s5321_s14  ;;  %v1676_v47 = vmul.f32 1.442695, %v1645_v50  ;;  %v1766_v4 = vmul.f32 1.442695, %v1738_v20  ;;  %v1709_v2 = vpop.permute.xlu1 %1708  ;;  %v5945_v20 = vadd.f32 1e-08, %v5284_v34 }
 0x232   : > { %v1741_v0 = vmul.f32 %v1709_v2, %v1565_v48  ;;  %v5937_v48 = vadd.f32 1e-08, %v5909_v41 }
 0x233   : > { %4779 = vpow2.f32 %v1676_v47  ;;  %8708 = vst [vmem:[#allocation50_spill] sm:$0xff] %v5945_v20 }
 0x234   : > { %4781 = vpow2.f32 %v1766_v4  ;;  %v1772_v35 = vmul.f32 1.442695, %v1741_v0  ;;  %8706 = vst [vmem:[#allocation48_spill] sm:$0xff] %v5937_v48  ;;  %v1812_v4 = vmul.f32 %v5649_v28, %v5618_v56 }
 0x235   : > { %1888 = vrot.lane.b32.xlu1 %v4760_v63, %s5321_s14  ;;  %1890 = vrot.lane.b32.xlu0 %v4762_v44, %s5321_s14  ;;  %v1770_v63 = vmul.f32 1.442695, %v1740_v14  ;;  %v4772_v44 = vpop.eup %4771  ;;  %4783 = vpow2.f32 %v1768_v53  ;;  %v6010_v53 = vpop.permute.xlu1 %2144 }
 0x236   : > { %v4774_v38 = vpop.eup %4773  ;;  %8718 = vst [vmem:[#allocation60_spill] sm:$0xff] %v6010_v53 }
 0x237   : > { %4785 = vpow2.f32 %v1770_v63  ;;  %v4776_v50 = vpop.eup %4775 }
 0x238   : > { %4787 = vrsqrt.f32 %v5931_v8 }
 0x239   : > { %1892 = vrot.lane.b32.xlu1 %v4764_v6, %s5321_s14  ;;  %1966 = vrot.lane.b32.xlu0 %v4766_v42, %s5322_s15  ;;  %v4778_v51 = vpop.eup %4777  ;;  %4789 = vpow2.f32 %v1772_v35 }
 0x23a   : > { %4791 = vrsqrt.f32 %v5937_v48 }
 0x23b   : > { %4793 = vrsqrt.f32 %v5939_v3 }
 0x23c   : > { %4795 = vrsqrt.f32 %v5945_v20 }
 0x23d   : > { %1968 = vrot.lane.b32.xlu1 %v4768_v30, %s5322_s15  ;;  %1970 = vrot.lane.b32.xlu0 %v4770_v61, %s5322_s15  ;;  %v4780_v12 = vpop.eup %4779  ;;  %v5995_v30 = vpop.permute.xlu0 %2142 }
 0x23e   : > { %v4782_v5 = vpop.eup %4781  ;;  %8717 = vst [vmem:[#allocation59_spill] sm:$0xff] %v5995_v30 }
 0x23f   : > { %v4784_v6 = vpop.eup %4783 }
 0x241   : > { %1972 = vrot.lane.b32.xlu1 %v4772_v44, %s5322_s15  ;;  %1894 = vrot.lane.b32.xlu0 %v4774_v38, %s5321_s14  ;;  %v4786_v41 = vpop.eup %4785  ;;  %v6012_v0 = vpop.permute.xlu0 %2146  ;;  %v6017_v44 = vld [vmem:[%s5366_s20 + $0x10] sm:$0xff] }
 0x242   : > { %v5950_v9 = vpop.eup %4787  ;;  %8719 = vst [vmem:[#allocation61_spill] sm:$0xff] %v6012_v0  ;;  %v1826_v48 = vmul.f32 1.442695, %v6017_v44 }
 0x243   : > { %8709 = vst [vmem:[#allocation51_spill] sm:$0xff] %v5950_v9  ;;  %v4790_v31 = vpop.eup %4789 }
 0x244   : > { %v5954_v42 = vpop.eup %4791 }
 0x245   : > { %1896 = vrot.lane.b32.xlu1 %v4776_v50, %s5321_s14  ;;  %1898 = vrot.lane.b32.xlu0 %v4778_v51, %s5321_s14  ;;  %8710 = vst [vmem:[#allocation52_spill] sm:$0xff] %v5954_v42  ;;  %v5959_v34 = vpop.eup %4793  ;;  %v5286_v51 = vld [vmem:[%s5366_s20 + $0x18] sm:$0xff] }
 0x246   : > { %8711 = vst [vmem:[#allocation53_spill] sm:$0xff] %v5959_v34  ;;  %v5965_v47 = vpop.eup %4795 }
 0x247   : > { %8712 = vst [vmem:[#allocation54_spill] sm:$0xff] %v5965_v47 }
 0x249   : > { %1900 = vrot.lane.b32.xlu1 %v4780_v12, %s5321_s14  ;;  %1974 = vrot.lane.b32.xlu0 %v4782_v5, %s5322_s15 }
 0x24d   : > { %1976 = vrot.lane.b32.xlu1 %v4784_v6, %s5322_s15  ;;  %1978 = vrot.lane.b32.xlu0 %v4786_v41, %s5322_s15 }
 0x251   : > { %1980 = vrot.lane.b32.xlu1 %v4790_v31, %s5322_s15  ;;  %2166 = vrot.lane.b32.xlu0 %v5950_v9, %s5320_s10 }
 0x255   : > { %2168 = vrot.lane.b32.xlu1 %v5954_v42, %s5320_s10  ;;  %2170 = vrot.lane.b32.xlu0 %v5959_v34, %s5320_s10 }
 0x259   : > { %2172 = vrot.lane.b32.xlu1 %v5965_v47, %s5320_s10  ;;  %2526 = vrot.lane.b32.xlu0 %v5675_v10, %s5320_s10  ;;  %v1813_v10 = vmul.f32 %v5653_v17, %v5621_v57  ;;  %v6000_v57 = vld [vmem:[%s8505_s2 + $0x2] ss:$0 sm:$0xff] }
 0x25d   : > { %2528 = vrot.lane.b32.xlu1 %v5677_v15, %s5320_s10  ;;  %2530 = vrot.lane.b32.xlu0 %v5679_v21, %s5320_s10 }
 0x261   : > { %2532 = vrot.lane.b32.xlu1 %v5681_v22, %s5320_s10  ;;  %2534 = vrot.lane.b32.xlu0 %v5688_v26, %s5320_s10 }
 0x265   : > { %2536 = vrot.lane.b32.xlu1 %v5690_v27, %s5320_s10  ;;  %2538 = vrot.lane.b32.xlu0 %v1812_v4, %s5320_s10 }
 0x269   : > { %2540 = vrot.lane.b32.xlu1 %v1813_v10, %s5320_s10  ;;  %v6040_v10 = vpop.permute.xlu1 %2148 }
 0x26a   : > { %8724 = vst [vmem:[#allocation66_spill] sm:$0xff] %v6040_v10 }
 0x2da   : > { %v4472_v15 = vpop.f32.mrb[16].mxu0  ;;  %v5987_v21 = vpop.f32.mrb[16].mxu1 }
 0x2db   : > { %8713 = vst [vmem:[#allocation55_spill] sm:$0xff] %v5987_v21  ;;  %v831_v22 = vpop.f32.mrb[17].mxu0  ;;  %v5989_v14 = vpop.f32.mrb[17].mxu1  ;;  %v6003_v17 = vadd.f32 %v4472_v15, %v6000_v57 }
 0x2dc   : > { %8714 = vst [vmem:[#allocation56_spill] sm:$0xff] %v5989_v14  ;;  %v4473_v26 = vpop.f32.mrb[18].mxu0  ;;  %v5991_v56 = vpop.f32.mrb[18].mxu1  ;;  %v6038_v4 = vadd.f32 %v6000_v57, %v831_v22 }
 0x2dd   : > { %8715 = vst [vmem:[#allocation57_spill] sm:$0xff] %v5991_v56  ;;  %v834_v28 = vpop.f32.mrb[19].mxu0  ;;  %v5993_v27 = vpop.f32.mrb[19].mxu1  ;;  %v6006_v2 = vadd.f32 %v4473_v26, %v6000_v57  ;;  %v2032_v38 = vmul.f32 %v6017_v44, %v6003_v17  ;;  %v6106_v54 = vadd.f32 0.1, %v6003_v17 }
 0x2de   : > { %8716 = vst [vmem:[#allocation58_spill] sm:$0xff] %v5993_v27  ;;  %v6146_v44 = vadd.f32 0.05, %v6038_v4 }
 0x2df   : > { %v2033_v12 = vmul.f32 %v5286_v51, %v6006_v2  ;;  %2066 = vrot.lane.b32.xlu0 %v2032_v38, %s5320_s10  ;;  %v6050_v38 = vpop.permute.xlu0 %2150  ;;  %v1537_v24 = vmul.f32 0.1, %v6006_v2  ;;  %vm928_vm5 = vcmp.ne.f32.partialorder %v6106_v54, %v6106_v54 }
 0x2e0   : > { %8727 = vst [vmem:[#allocation69_spill] sm:$0xff] %v6050_v38  ;;  %8747 = vst [vmem:[#allocation89_spill] sm:$0xff] %v6146_v44 }
 0x2e1   : > { %2068 = vrot.lane.b32.xlu1 %v2033_v12, %s5320_s10  ;;  %v2030_v12 = vmul.f32 %v5287_v55, %v6038_v4 }
 0x2e2   : > { %v6008_v61 = vpop.f32.mrb[20].mxu0  ;;  %v6014_v63 = vpop.f32.mrb[20].mxu1 }
 0x2e3   : > { %8720 = vst [vmem:[#allocation62_spill] sm:$0xff] %v6014_v63  ;;  %v6021_v35 = vpop.f32.mrb[21].mxu0  ;;  %v6023_v50 = vpop.f32.mrb[21].mxu1  ;;  %2062 = vrot.lane.b32.xlu0 %v2030_v12, %s5320_s10 }
 0x2e4   : > { %8721 = vst [vmem:[#allocation63_spill] sm:$0xff] %v6023_v50  ;;  %v6027_v5 = vpop.f32.mrb[22].mxu0  ;;  %v6029_v6 = vpop.f32.mrb[22].mxu1 }
 0x2e5   : > { %8722 = vst [vmem:[#allocation64_spill] sm:$0xff] %v6029_v6  ;;  %v6032_v41 = vpop.f32.mrb[23].mxu0  ;;  %v6034_v31 = vpop.f32.mrb[23].mxu1 }
 0x2e6   : > { %8723 = vst [vmem:[#allocation65_spill] sm:$0xff] %v6034_v31  ;;  %v6071_v50 = vpop.permute.xlu0 %2154 }
 0x2e7   : > { %8732 = vst [vmem:[#allocation74_spill] sm:$0xff] %v6071_v50 }
 0x2ea   : > { %v6090_v56 = vpop.permute.xlu0 %2158 }
 0x2eb   : > { %v6042_v15 = vpop.f32.mrb[24].mxu0  ;;  %v6044_v26 = vpop.f32.mrb[24].mxu1  ;;  %8738 = vst [vmem:[#allocation80_spill] sm:$0xff] %v6090_v56 }
 0x2ec   : > { %8725 = vst [vmem:[#allocation67_spill] sm:$0xff] %v6044_v26  ;;  %v6046_v51 = vpop.f32.mrb[25].mxu0  ;;  %v6048_v59 = vpop.f32.mrb[25].mxu1 }
 0x2ed   : > { %8726 = vst [vmem:[#allocation68_spill] sm:$0xff] %v6048_v59  ;;  %v6052_v62 = vpop.f32.mrb[26].mxu0  ;;  %v6056_v60 = vpop.f32.mrb[26].mxu1 }
 0x2ee   : > { %8728 = vst [vmem:[#allocation70_spill] sm:$0xff] %v6056_v60  ;;  %v6058_v22 = vpop.f32.mrb[27].mxu0  ;;  %v6061_v49 = vpop.f32.mrb[27].mxu1 }
 0x2ef   : > { %8729 = vst [vmem:[#allocation71_spill] sm:$0xff] %v6061_v49  ;;  %v6063_v26 = vpop.permute.xlu1 %2152  ;;  %v6084_v49 = vadd.f32 %v6000_v57, %v834_v28  ;;  %v6095_v14 = vpop.permute.xlu0 %2162 }
 0x2f0   : > { %8730 = vst [vmem:[#allocation72_spill] sm:$0xff] %v6063_v26  ;;  %8740 = vst [vmem:[#allocation82_spill] sm:$0xff] %v6095_v14 }
 0x2f1   : > { %v6127_v20 = vadd.f32 0.1, %v6084_v49 }
 0x2f3   : > { %v6065_v31 = vpop.f32.mrb[28].mxu0  ;;  %v6067_v59 = vpop.f32.mrb[28].mxu1  ;;  %v959_v8 = vand.u32 2147483647, %v6127_v20  ;;  %vm927_vm10 = vcmp.ne.f32.partialorder %v6127_v20, %v6127_v20 }
 0x2f4   : > { %8731 = vst [vmem:[#allocation73_spill] sm:$0xff] %v6067_v59  ;;  %v6069_v6 = vpop.f32.mrb[29].mxu0  ;;  %v6073_v40 = vpop.f32.mrb[29].mxu1  ;;  %v5288_v59 = vld [vmem:[%s5366_s20 + $0x8] sm:$0xff] }
 0x2f5   : > { %8733 = vst [vmem:[#allocation75_spill] sm:$0xff] %v6073_v40  ;;  %v6075_v60 = vpop.f32.mrb[30].mxu0  ;;  %v6077_v63 = vpop.f32.mrb[30].mxu1  ;;  %v2031_v29 = vmul.f32 %v5288_v59, %v6084_v49  ;;  %v1824_v34 = vmul.f32 1.442695, %v5288_v59 }
 0x2f6   : > { %8734 = vst [vmem:[#allocation76_spill] sm:$0xff] %v6077_v63  ;;  %v6079_v27 = vpop.f32.mrb[31].mxu0  ;;  %v6081_v12 = vpop.f32.mrb[31].mxu1  ;;  %v1536_v63 = vmul.f32 0.1, %v6003_v17 }
 0x2f7   : > { %8735 = vst [vmem:[#allocation77_spill] sm:$0xff] %v6079_v27  ;;  %8736 = vst [vmem:[#allocation78_spill] sm:$0xff] %v6081_v12  ;;  %v6086_v46 = vpop.permute.xlu1 %2156  ;;  %2064 = vrot.lane.b32.xlu1 %v2031_v29, %s5320_s10  ;;  %v6100_v12 = vpop.permute.xlu0 %1870  ;;  %v2625_v29 = vmul.f32 %v5736_v45, %v1537_v24  ;;  %v6124_v24 = vadd.f32 0.1, %v6006_v2  ;;  %v1822_v45 = vmul.f32 1.442695, %v5287_v55  ;;  %v6137_v55 = vadd.f32 %v6008_v61, %v6000_v57 }
 0x2f8   : > { %8737 = vst [vmem:[#allocation79_spill] sm:$0xff] %v6086_v46  ;;  %v2624_v28 = vmul.f32 %v5726_v43, %v1536_v63  ;;  %v960_v43 = vand.u32 2147483647, %v6106_v54 }
 0x2f9   : > { %v961_v42 = vand.u32 2147483647, %v6124_v24  ;;  %4797 = vpow2.f32 %v1822_v45  ;;  %v6154_v45 = vadd.f32 0.1, %v6137_v55  ;;  %vm929_vm9 = vcmp.ne.f32.partialorder %v6124_v24, %v6124_v24 }
 0x2fa   : > { %2658 = vrot.lane.b32.xlu0 %v2624_v28, %s5321_s14  ;;  %4799 = vpow2.f32 %v1824_v34 }
 0x2fb   : > { %v6093_v40 = vpop.permute.xlu1 %2160  ;;  %v6114_v56 = vpop.permute.xlu0 %1874  ;;  %2660 = vrot.lane.b32.xlu1 %v2625_v29, %s5321_s14  ;;  %v1534_v29 = vmul.f32 0.1, %v6038_v4  ;;  %v977_v61 = vsub.f32 0.0, %v961_v42  ;;  %v6176_v42 = vadd.f32 0.05, %v6006_v2  ;;  %vm932_vm13 = vcmp.ne.f32.partialorder %v6154_v45, %v6154_v45 }
 0x2fc   : > { %8739 = vst [vmem:[#allocation81_spill] sm:$0xff] %v6093_v40  ;;  %v6112_v40 = vadd.f32 0.1, %v6038_v4  ;;  %v964_v26 = vand.u32 2147483647, %v6154_v45 }
 0x2fd   : > { %v2622_v59 = vmul.f32 %v5724_v39, %v1534_v29  ;;  %v975_v39 = vsub.f32 0.0, %v959_v8  ;;  %v1278_v29 = vand.u32 2147483647, %v6146_v44  ;;  %v6172_v8 = vadd.f32 %v6027_v5, %v6000_v57  ;;  %8751 = vst [vmem:[#allocation93_spill] sm:$0xff] %v6176_v42 }
 0x2fe   : > { %v958_v63 = vand.u32 2147483647, %v6112_v40  ;;  %v6187_v2 = vadd.f32 0.05, %v6084_v49  ;;  %vm926_vm6 = vcmp.ne.f32.partialorder %v6112_v40, %v6112_v40 }
 0x2ff   : > { %v6098_v58 = vpop.permute.xlu1 %2164  ;;  %v6121_v14 = vpop.permute.xlu0 %1950  ;;  %2654 = vrot.lane.b32.xlu0 %v2622_v59, %s5321_s14  ;;  %v992_v59 = vmul.f32 1.442695, %v975_v39  ;;  %v1294_v46 = vsub.f32 0.0, %v1278_v29  ;;  %v6181_v53 = vadd.f32 0.1, %v6172_v8 }
 0x300   : > { %8741 = vst [vmem:[#allocation83_spill] sm:$0xff] %v6098_v58  ;;  %v976_v58 = vsub.f32 0.0, %v960_v43  ;;  %8743 = vst [vmem:[#allocation85_spill] sm:$0xff] %v6121_v14  ;;  %v974_v47 = vsub.f32 0.0, %v958_v63  ;;  %v6143_v63 = vadd.f32 0.05, %v6003_v17 }
 0x301   : > { %v6157_v17 = vld [vmem:[%s5366_s20 + $0x30] sm:$0xff]  ;;  %8753 = vst [vmem:[#allocation95_spill] sm:$0xff] %v6187_v2  ;;  %v1310_v0 = vmul.f32 1.442695, %v1294_v46  ;;  %v6206_v46 = vadd.f32 0.05, %v6137_v55  ;;  %vm933_vm15 = vcmp.ne.f32.partialorder %v6181_v53, %v6181_v53 }
 0x302   : > { %v994_v3 = vmul.f32 1.442695, %v976_v58  ;;  %v990_v9 = vmul.f32 1.442695, %v974_v47  ;;  %8746 = vst [vmem:[#allocation88_spill] sm:$0xff] %v6143_v63  ;;  %v6150_v47 = vadd.f32 %v6000_v57, %v6021_v35  ;;  %8748 = vst [vmem:[#allocation90_spill] sm:$0xff] %v6157_v17 }
 0x303   : > { %v6109_v21 = vpop.permute.xlu1 %1872  ;;  %v6140_v58 = vpop.permute.xlu0 %1954  ;;  %v1280_v4 = vand.u32 2147483647, %v6143_v63  ;;  %8757 = vst [vmem:[#allocation99_spill] sm:$0xff] %v6206_v46 }
 0x304   : > { %8745 = vst [vmem:[#allocation87_spill] sm:$0xff] %v6140_v58  ;;  %4801 = vpow2.f32 %v994_v3  ;;  %v2036_v3 = vmul.f32 %v6157_v17, %v6137_v55  ;;  %v4798_v19 = vpop.eup %4797 }
 0x305   : > { %4803 = vpow2.f32 %v1826_v48  ;;  %v6168_v48 = vadd.f32 0.1, %v6150_v47  ;;  %v1296_v38 = vsub.f32 0.0, %v1280_v4  ;;  %v4800_v5 = vpop.eup %4799  ;;  %v980_v4 = vsub.f32 0.0, %v964_v26 }
 0x306   : > { %4805 = vpow2.f32 %v990_v9  ;;  %2074 = vrot.lane.b32.xlu0 %v2036_v3, %s5320_s10  ;;  %v996_v9 = vmul.f32 1.442695, %v977_v61  ;;  %v1281_v61 = vand.u32 2147483647, %v6176_v42 }
 0x307   : > { %v6119_v28 = vpop.permute.xlu1 %1876  ;;  %v6161_v34 = vpop.permute.xlu0 %1878  ;;  %v962_v50 = vand.u32 2147483647, %v6168_v48  ;;  %vm930_vm14 = vcmp.ne.f32.partialorder %v6168_v48, %v6168_v48 }
 0x308   : > { %8742 = vst [vmem:[#allocation84_spill] sm:$0xff] %v6119_v28  ;;  %8749 = vst [vmem:[#allocation91_spill] sm:$0xff] %v6161_v34  ;;  %4807 = vpow2.f32 %v996_v9  ;;  %v1314_v34 = vmul.f32 1.442695, %v1296_v38  ;;  %v6197_v9 = vmul.f32 %v4798_v19, %v6100_v12  ;;  %v1297_v44 = vsub.f32 0.0, %v1281_v61 }
 0x309   : > { %4809 = vpow2.f32 %v992_v59  ;;  %v6202_v59 = vmul.f32 %v4800_v5, %v6109_v21  ;;  %v1002_v38 = vmul.f32 1.442695, %v980_v4  ;;  %v6215_v61 = vadd.f32 0.05, %v6150_v47 }
 0x30a   : > { %8755 = vst [vmem:[#allocation97_spill] sm:$0xff] %v6197_v9  ;;  %4811 = vpow2.f32 %v1314_v34  ;;  %v1535_v21 = vmul.f32 0.1, %v6084_v49  ;;  %v6230_v49 = vadd.f32 %v6042_v15, %v6000_v57 }
 0x30b   : > { %v6132_v43 = vpop.permute.xlu1 %1952  ;;  %v6183_v10 = vpop.permute.xlu0 %1882  ;;  %8756 = vst [vmem:[#allocation98_spill] sm:$0xff] %v6202_v59  ;;  %8760 = vst [vmem:[#allocation102_spill] sm:$0xff] %v6215_v61  ;;  %4813 = vpow2.f32 %v1310_v0 }
 0x30c   : > { %8744 = vst [vmem:[#allocation86_spill] sm:$0xff] %v6132_v43  ;;  %8752 = vst [vmem:[#allocation94_spill] sm:$0xff] %v6183_v10  ;;  %v965_v10 = vand.u32 2147483647, %v6181_v53  ;;  %v6265_v17 = vadd.f32 0.05, %v6230_v49 }
 0x30e   : > { %v6191_v3 = vpop.eup %4801  ;;  %v981_v26 = vsub.f32 0.0, %v965_v10  ;;  %v1284_v10 = vand.u32 2147483647, %v6206_v46 }
 0x30f   : > { %v6164_v35 = vpop.permute.xlu1 %1956  ;;  %v4804_v29 = vpop.eup %4803  ;;  %v1040_v28 = vadd.f32 1.0, %v6191_v3  ;;  %v1043_v15 = vmul.f32 -0.5, %v6191_v3 }
 0x310   : > { %8750 = vst [vmem:[#allocation92_spill] sm:$0xff] %v6164_v35  ;;  %v6193_v30 = vpop.eup %4805  ;;  %v978_v35 = vsub.f32 0.0, %v962_v50  ;;  %v6209_v50 = vmul.f32 %v4804_v29, %v6114_v56  ;;  %v6211_v19 = vpop.permute.xlu0 %1958  ;;  %v1316_v29 = vmul.f32 1.442695, %v1297_v44 }
 0x311   : > { %8759 = vst [vmem:[#allocation101_spill] sm:$0xff] %v6211_v19  ;;  %v1022_v12 = vadd.f32 1.0, %v6193_v30  ;;  %4815 = vlog2.f32 %v1040_v28  ;;  %v2623_v19 = vmul.f32 %v5731_v52, %v1535_v21  ;;  %v1282_v28 = vand.u32 2147483647, %v6215_v61 }
 0x312   : > { %8758 = vst [vmem:[#allocation100_spill] sm:$0xff] %v6209_v50  ;;  %v998_v4 = vmul.f32 1.442695, %v978_v35  ;;  %4817 = vpow2.f32 %v1002_v38  ;;  %v6233_v0 = vpop.eup %4807  ;;  %v6239_v52 = vadd.f32 %v6000_v57, %v6032_v41  ;;  %v1004_v35 = vmul.f32 1.442695, %v981_v26  ;;  %v6253_v41 = vld [vmem:[%s5366_s20 + $0x38] sm:$0xff] }
 0x313   : > { %v6189_v39 = vpop.permute.xlu1 %1880  ;;  %4819 = vlog2.f32 %v1022_v12  ;;  %2656 = vrot.lane.b32.xlu1 %v2623_v19, %s5321_s14  ;;  %v6242_v44 = vpop.eup %4809  ;;  %8764 = vst [vmem:[#allocation106_spill] sm:$0xff] %v6253_v41  ;;  %v2037_v19 = vmul.f32 %v6253_v41, %v6172_v8  ;;  %v1300_v12 = vsub.f32 0.0, %v1284_v10  ;;  %v1028_v61 = vand.u32 2147483647, %v6193_v30 }
 0x314   : > { %8754 = vst [vmem:[#allocation96_spill] sm:$0xff] %v6189_v39  ;;  %v1279_v39 = vand.u32 2147483647, %v6187_v2  ;;  %v6221_v2 = vld [vmem:[%s5366_s20 + $0x20] sm:$0xff]  ;;  %4821 = vpow2.f32 %v998_v4  ;;  %v6249_v38 = vpop.permute.xlu0 %1962  ;;  %v1049_v4 = vadd.f32 1.0, %v6233_v0 }
 0x315   : > { %8762 = vst [vmem:[#allocation104_spill] sm:$0xff] %v6221_v2  ;;  %v2034_v56 = vmul.f32 %v6221_v2, %v6150_v47  ;;  %8763 = vst [vmem:[#allocation105_spill] sm:$0xff] %v6249_v38  ;;  %4823 = vpow2.f32 %v1316_v29  ;;  %v1046_v29 = vand.u32 2147483647, %v6191_v3  ;;  %v6270_v42 = vadd.f32 0.1, %v6239_v52 }
 0x316   : > { %v1295_v34 = vsub.f32 0.0, %v1279_v39  ;;  %v6247_v39 = vadd.f32 %v6000_v57, %v6046_v51  ;;  %v6262_v51 = vmul.f32 0.1, %v6137_v55  ;;  %v1298_v38 = vsub.f32 0.0, %v1282_v28  ;;  %v6276_v55 = vpop.eup %4811 }
 0x317   : > { %v6218_v5 = vpop.permute.xlu1 %1884  ;;  %2070 = vrot.lane.b32.xlu0 %v2034_v56, %s5320_s10  ;;  %2076 = vrot.lane.b32.xlu1 %v2037_v19, %s5320_s10  ;;  %4825 = vpow2.f32 %v1004_v35  ;;  %8766 = vst [vmem:[#allocation108_spill] sm:$0xff] %v6276_v55  ;;  %v6281_v46 = vpop.eup %4813  ;;  %v1052_v19 = vmul.f32 -0.5, %v6233_v0  ;;  %v6285_v28 = vmul.f32 0.1, %v6150_v47  ;;  %vm6290_vm3 = vcmp.lt.f32.partialorder %v1046_v29, 0.0004427343 }
 0x318   : > { %8761 = vst [vmem:[#allocation103_spill] sm:$0xff] %v6218_v5  ;;  %v1312_v21 = vmul.f32 1.442695, %v1295_v34  ;;  %v1031_v34 = vadd.f32 1.0, %v6242_v44  ;;  %v6274_v26 = vadd.f32 0.05, %v6247_v39  ;;  %v6288_v35 = vpop.permute.xlu0 %1886 }
 0x319   : > { %v1025_v5 = vmul.f32 -0.5, %v6193_v30  ;;  %8767 = vst [vmem:[#allocation109_spill] sm:$0xff] %v6281_v46  ;;  %8768 = vst [vmem:[#allocation110_spill] sm:$0xff] %v6288_v35  ;;  %v963_v10 = vand.u32 2147483647, %v6270_v42  ;;  %v6303_v35 = vadd.f32 %v6052_v62, %v6000_v57 }
 0x31a   : > { %4827 = vpow2.f32 %v1312_v21  ;;  %v1322_v21 = vmul.f32 1.442695, %v1300_v12  ;;  %v1318_v50 = vmul.f32 1.442695, %v1298_v38  ;;  %v1286_v58 = vand.u32 2147483647, %v6274_v26 }
 0x31b   : > { %v6257_v56 = vpop.permute.xlu1 %1960  ;;  %4829 = vlog2.f32 %v1049_v4  ;;  %v4816_v41 = vpop.eup %4815  ;;  %v1026_v59 = vadd.f32 1.0, %v1025_v5  ;;  %vm6305_vm4 = vcmp.lt.f32.partialorder %v1028_v61, 0.0004427343  ;;  %v1055_v12 = vand.u32 2147483647, %v6233_v0 }
 0x31c   : > { %8765 = vst [vmem:[#allocation107_spill] sm:$0xff] %v6257_v56  ;;  %v1044_v56 = vadd.f32 1.0, %v1043_v15  ;;  %v1288_v15 = vand.u32 2147483647, %v6265_v17  ;;  %4831 = vlog2.f32 %v1031_v34  ;;  %v6297_v4 = vpop.eup %4817  ;;  %v1053_v38 = vadd.f32 1.0, %v1052_v19  ;;  %v6328_v23 = vpop.permute.xlu0 %1890 }
 0x31d   : > { %v4820_v29 = vpop.eup %4819  ;;  %v6318_v62 = vadd.f32 0.05, %v6172_v8  ;;  %v1042_v61 = vmul.f32 0.6931472, %v4816_v41  ;;  %v1037_v9 = vand.u32 2147483647, %v6242_v44  ;;  %v1027_v7 = vmul.f32 %v6193_v30, %v1026_v59 }
 0x31e   : > { %v1045_v47 = vmul.f32 %v6191_v3, %v1044_v56  ;;  %v6314_v3 = vpop.eup %4821  ;;  %v1034_v56 = vmul.f32 -0.5, %v6242_v44  ;;  %v1304_v43 = vsub.f32 0.0, %v1288_v15  ;;  %v979_v25 = vsub.f32 0.0, %v963_v10  ;;  %8776 = vst [vmem:[#allocation114_spill] sm:$0xff] %v6328_v23 }
 0x31f   : > { %v6295_v63 = vpop.permute.xlu1 %1964  ;;  %8774 = vst [vmem:[#allocation112_spill] sm:$0xff] %v6318_v62  ;;  %v6320_v5 = vpop.eup %4823  ;;  %v1024_v46 = vmul.f32 0.6931472, %v4820_v29  ;;  %v1302_v11 = vsub.f32 0.0, %v1286_v58  ;;  %v6326_v19 = vadd.f32 0.05, %v6303_v35  ;;  %4833 = vpow2.f32 %v1322_v21 }
 0x320   : > { %8771 = vst [vmem:[#allocation111_spill] sm:$0xff] %v6295_v63  ;;  %v6312_v63 = vadd.f32 %v6000_v57, %v6058_v22  ;;  %8775 = vst [vmem:[#allocation113_spill] sm:$0xff] %v6320_v5  ;;  %v1076_v22 = vadd.f32 1.0, %v6297_v4  ;;  %v1058_v15 = vadd.f32 1.0, %v6314_v3  ;;  %v6342_v58 = vmul.f32 %v6233_v0, %v1053_v38 }
 0x321   : > { %v6337_v10 = vpop.eup %4825  ;;  %v1035_v29 = vadd.f32 1.0, %v1034_v56  ;;  %v1285_v14 = vand.u32 2147483647, %v6318_v62  ;;  %v1330_v30 = vmul.f32 1.442695, %v1304_v43  ;;  %v1048_v21 = vsel %vm6290_vm3, %v1045_v47, %v1042_v61 }
 0x322   : > { %v6333_v41 = vadd.f32 0.05, %v6312_v63  ;;  %vm6351_vm7 = vcmp.lt.f32.partialorder %v1055_v12, 0.0004427343  ;;  %4835 = vpow2.f32 %v1318_v50  ;;  %v6356_v0 = vmul.f32 0.1, %v6172_v8 }
 0x323   : > { %v6335_v5 = vpop.permute.xlu1 %1888  ;;  %v1000_v38 = vmul.f32 1.442695, %v979_v25  ;;  %v1030_v43 = vsel %vm6305_vm4, %v1027_v7, %v1024_v46  ;;  %vm6360_vm8 = vcmp.lt.f32.partialorder %v1037_v9, 0.0004427343  ;;  %4837 = vlog2.f32 %v1076_v22  ;;  %v6374_v46 = vpop.permute.xlu0 %1966 }
 0x324   : > { %8777 = vst [vmem:[#allocation115_spill] sm:$0xff] %v6335_v5  ;;  %v6345_v59 = vpop.eup %4827  ;;  %v1326_v2 = vmul.f32 1.442695, %v1302_v11  ;;  %v1289_v47 = vand.u32 2147483647, %v6326_v19  ;;  %4839 = vlog2.f32 %v1058_v15  ;;  %v1085_v50 = vadd.f32 1.0, %v6337_v10 }
 0x325   : > { %8778 = vst [vmem:[#allocation116_spill] sm:$0xff] %v6345_v59  ;;  %v4830_v56 = vpop.eup %4829  ;;  %v6367_v8 = vadd.f32 0.05, %v6239_v52  ;;  %v1287_v25 = vand.u32 2147483647, %v6333_v41  ;;  %v1079_v34 = vmul.f32 -0.5, %v6297_v4  ;;  %4841 = vpow2.f32 %v1330_v30 }
 0x326   : > { %v4832_v12 = vpop.eup %4831  ;;  %v1301_v7 = vsub.f32 0.0, %v1285_v14  ;;  %v6372_v9 = vadd.f32 0.1, %v6230_v49  ;;  %8784 = vst [vmem:[#allocation118_spill] sm:$0xff] %v6374_v46  ;;  %v8785_v11 = vmax.f32 %v6106_v54, 0.0  ;;  %v8786_v22 = vmax.f32 %v6112_v40, 0.0 }
 0x327   : > { %v1082_v62 = vand.u32 2147483647, %v6297_v4  ;;  %4843 = vpow2.f32 %v1000_v38  ;;  %v6381_v59 = vpop.permute.xlu1 %1892  ;;  %v1051_v55 = vmul.f32 0.6931472, %v4830_v56  ;;  %v1033_v27 = vmul.f32 0.6931472, %v4832_v12 }
 0x328   : > { %8783 = vst [vmem:[#allocation117_spill] sm:$0xff] %v6372_v9  ;;  %v1168_v61 = vadd.f32 %v1048_v21, %v8785_v11  ;;  %v1166_v15 = vadd.f32 %v1030_v43, %v8786_v22  ;;  %8787 = vst [vmem:[#allocation119_spill] sm:$0xff] %v6381_v59  ;;  %4845 = vpow2.f32 %v1326_v2  ;;  %v1305_v14 = vsub.f32 0.0, %v1289_v47 }
 0x329   : > { %4847 = vlog2.f32 %v1085_v50  ;;  %v1283_v30 = vand.u32 2147483647, %v6367_v8  ;;  %v1303_v16 = vsub.f32 0.0, %v1287_v25  ;;  %v6386_v46 = vadd.f32 %v6065_v31, %v6000_v57  ;;  %v6395_v2 = vpop.eup %4833 }
 0x32a   : > { %v1036_v21 = vmul.f32 %v6242_v44, %v1035_v29  ;;  %v1324_v38 = vmul.f32 1.442695, %v1301_v7  ;;  %v968_v43 = vand.u32 2147483647, %v6372_v9  ;;  %v6393_v56 = vadd.f32 0.1, %v6247_v39  ;;  %v6413_v7 = vpop.permute.xlu0 %1970 }
 0x32b   : > { %v1184_v47 = vsel %vm928_vm5, %v6106_v54, %v1168_v61  ;;  %v1080_v31 = vadd.f32 1.0, %v1079_v34  ;;  %v1061_v12 = vmul.f32 -0.5, %v6314_v3  ;;  %v1182_v29 = vsel %vm926_vm6, %v6112_v40, %v1166_v15  ;;  %8789 = vst [vmem:[#allocation121_spill] sm:$0xff] %v6413_v7  ;;  %v6422_v40 = vpop.permute.xlu1 %1968 }
 0x32c   : > { %8788 = vst [vmem:[#allocation120_spill] sm:$0xff] %v6393_v56  ;;  %v1057_v50 = vsel %vm6351_vm7, %v6342_v58, %v1051_v55  ;;  %v1064_v25 = vand.u32 2147483647, %v6314_v3  ;;  %v1332_v54 = vmul.f32 1.442695, %v1305_v14  ;;  %v6415_v11 = vpop.eup %4835  ;;  %v1039_v34 = vsel %vm6360_vm8, %v1036_v21, %v1033_v27  ;;  %8790 = vst [vmem:[#allocation122_spill] sm:$0xff] %v6422_v40 }
 0x32d   : > { %v1299_v61 = vsub.f32 0.0, %v1283_v30  ;;  %v1328_v22 = vmul.f32 1.442695, %v1303_v16  ;;  %v6420_v44 = vadd.f32 0.05, %v6386_v46  ;;  %v4838_v15 = vpop.eup %4837  ;;  %4849 = vpow2.f32 %v1324_v38 }
 0x32e   : > { %vm6424_vm11 = vcmp.lt.f32.partialorder %v1082_v62, 0.0004427343  ;;  %v984_v5 = vsub.f32 0.0, %v968_v43  ;;  %v966_v58 = vand.u32 2147483647, %v6393_v56  ;;  %v4840_v14 = vpop.eup %4839  ;;  %v8793_v16 = vmax.f32 %v6124_v24, 0.0 }
 0x32f   : > { %v6429_v59 = vadd.f32 1e-06, %v1184_v47  ;;  %v6431_v23 = vadd.f32 1e-06, %v1182_v29  ;;  %v1062_v30 = vadd.f32 1.0, %v1061_v12  ;;  %v6435_v21 = vpop.eup %4841  ;;  %v8794_v62 = vmax.f32 %v6127_v20, 0.0 }
 0x330   : > { %v1169_v27 = vadd.f32 %v1057_v50, %v8793_v16  ;;  %vm6439_vm12 = vcmp.lt.f32.partialorder %v1064_v25, 0.0004427343  ;;  %v1088_v38 = vmul.f32 -0.5, %v6337_v10  ;;  %4851 = vpow2.f32 %v1332_v54 }
 0x331   : > { %v1167_v40 = vadd.f32 %v1039_v34, %v8794_v62  ;;  %v6444_v43 = vpop.eup %4843  ;;  %v1078_v47 = vmul.f32 0.6931472, %v4838_v15  ;;  %v1320_v29 = vmul.f32 1.442695, %v1299_v61  ;;  %4853 = vpow2.f32 %v1328_v22  ;;  %v6450_v62 = vpop.permute.xlu0 %1894 }
 0x332   : > { %v1292_v50 = vand.u32 2147483647, %v6420_v44  ;;  %v6447_v12 = vpop.eup %4845  ;;  %v1081_v16 = vmul.f32 %v6297_v4, %v1080_v31  ;;  %v1060_v56 = vmul.f32 0.6931472, %v4840_v14  ;;  %v1010_v34 = vmul.f32 1.442695, %v984_v5  ;;  %v6463_v31 = vpop.permute.xlu1 %1972 }
 0x333   : > { %v982_v25 = vsub.f32 0.0, %v966_v58  ;;  %8797 = vst [vmem:[#allocation123_spill] sm:$0xff] %v6450_v62  ;;  %v4848_v9 = vpop.eup %4847  ;;  %v1185_v54 = vsel %vm929_vm9, %v6124_v24, %v1169_v27  ;;  %v1063_v61 = vmul.f32 %v6314_v3, %v1062_v30  ;;  %v1432_v22 = vadd.f32 1.0, %v6435_v21  ;;  %8799 = vst [vmem:[#allocation125_spill] sm:$0xff] %v6463_v31 }
 0x334   : > { %v6461_v4 = vadd.f32 0.1, %v6303_v35  ;;  %v1183_v15 = vsel %vm927_vm10, %v6127_v20, %v1167_v40  ;;  %v1089_v24 = vadd.f32 1.0, %v1088_v38  ;;  %v1091_v5 = vand.u32 2147483647, %v6337_v10  ;;  %v6480_v38 = vld [vmem:[%s5366_s20 + $0x28] sm:$0xff] }
 0x335   : > { %v1067_v3 = vadd.f32 1.0, %v6444_v43  ;;  %v1084_v58 = vsel %vm6424_vm11, %v1081_v16, %v1078_v47  ;;  %4855 = vpow2.f32 %v1320_v29  ;;  %v1414_v14 = vadd.f32 1.0, %v6447_v12 }
 0x336   : > { %8798 = vst [vmem:[#allocation124_spill] sm:$0xff] %v6461_v4  ;;  %v1308_v27 = vsub.f32 0.0, %v1292_v50  ;;  %v1066_v30 = vsel %vm6439_vm12, %v1063_v61, %v1060_v56  ;;  %v1087_v62 = vmul.f32 0.6931472, %v4848_v9  ;;  %4857 = vpow2.f32 %v1010_v34  ;;  %v6494_v50 = vpop.permute.xlu0 %1898 }
 0x337   : > { %v1006_v20 = vmul.f32 1.442695, %v982_v25  ;;  %4859 = vlog2.f32 %v1432_v22  ;;  %v969_v40 = vand.u32 2147483647, %v6461_v4  ;;  %v2035_v31 = vmul.f32 %v6480_v38, %v6239_v52  ;;  %v6486_v47 = vpop.eup %4849  ;;  %8801 = vst [vmem:[#allocation126_spill] sm:$0xff] %v6494_v50  ;;  %v6504_v25 = vpop.permute.xlu1 %1896 }
 0x338   : > { %v2628_v55 = vmul.f32 %v5794_v36, %v6262_v51  ;;  %v8800_v29 = vmax.f32 %v6154_v45, 0.0  ;;  %v1090_v9 = vmul.f32 %v6337_v10, %v1089_v24  ;;  %4861 = vlog2.f32 %v1067_v3  ;;  %8805 = vst [vmem:[#allocation127_spill] sm:$0xff] %v6504_v25 }
 0x339   : > { %v1539_v56 = vmul.f32 0.1, %v6239_v52  ;;  %v8802_v16 = vmax.f32 %v6168_v48, 0.0  ;;  %vm6498_vm0 = vcmp.lt.f32.partialorder %v1091_v5, 0.0004427343  ;;  %4863 = vlog2.f32 %v1414_v14  ;;  %2072 = vrot.lane.b32.xlu1 %v2035_v31, %s5320_s10 }
 0x33a   : > { %v1172_v7 = vadd.f32 %v1084_v58, %v8800_v29  ;;  %v1338_v51 = vmul.f32 1.442695, %v1308_v27  ;;  %2666 = vrot.lane.b32.xlu0 %v2628_v55, %s5321_s14  ;;  %v6506_v10 = vpop.eup %4851  ;;  %v6508_v52 = vadd.f32 1e-06, %v1185_v54  ;;  %v6510_v61 = vadd.f32 1e-06, %v1183_v15 }
 0x33b   : > { %v1170_v34 = vadd.f32 %v1066_v30, %v8802_v16  ;;  %v1093_v22 = vsel %vm6498_vm0, %v1090_v9, %v1087_v62  ;;  %4865 = vpow2.f32 %v1006_v20  ;;  %v6514_v24 = vpop.eup %4853  ;;  %v6517_v5 = vmul.f32 0.1, %v6230_v49  ;;  %v6548_v20 = vpop.permute.xlu0 %1974  ;;  %v5293_v9 = vld [vmem:[%s5366_s20 + $0x50] sm:$0xff] }
 0x33c   : > { %v985_v31 = vsub.f32 0.0, %v969_v40  ;;  %v2629_v3 = vmul.f32 %v5796_v1, %v6356_v0  ;;  %v2626_v58 = vmul.f32 %v5779_v13, %v6285_v28  ;;  %v1188_v54 = vsel %vm932_vm13, %v6154_v45, %v1172_v7  ;;  %8808 = vst [vmem:[#allocation129_spill] sm:$0xff] %v6548_v20 }
 0x33d   : > { %v1070_v62 = vmul.f32 -0.5, %v6444_v43  ;;  %v1073_v15 = vand.u32 2147483647, %v6444_v43  ;;  %v1186_v1 = vsel %vm930_vm14, %v6168_v48, %v1170_v34  ;;  %v8806_v0 = vmax.f32 %v6181_v53, 0.0  ;;  %v6557_v34 = vpop.permute.xlu1 %1900 }
 0x33e   : > { %v1441_v28 = vadd.f32 1.0, %v6506_v10  ;;  %4867 = vpow2.f32 %v1338_v51  ;;  %2668 = vrot.lane.b32.xlu1 %v2629_v3, %s5321_s14  ;;  %2662 = vrot.lane.b32.xlu0 %v2626_v58, %s5321_s14  ;;  %v1435_v45 = vmul.f32 -0.5, %v6435_v21  ;;  %v6541_v27 = vadd.f32 0.1, %v6312_v63  ;;  %8809 = vst [vmem:[#allocation130_spill] sm:$0xff] %v6557_v34 }
 0x33f   : > { %v1173_v13 = vadd.f32 %v1093_v22, %v8806_v0  ;;  %v1423_v30 = vadd.f32 1.0, %v6514_v24  ;;  %v6546_v48 = vadd.f32 %v6000_v57, %v6069_v6  ;;  %v6550_v40 = vpop.eup %4855  ;;  %v6552_v55 = vadd.f32 1e-06, %v1188_v54  ;;  %v5294_v0 = vld [vmem:[%s5366_s20 + $0x58] sm:$0xff]  ;;  %v6594_v14 = vpop.permute.xlu0 %1978 }
 0x340   : > { %8807 = vst [vmem:[#allocation128_spill] sm:$0xff] %v6541_v27  ;;  %v1012_v29 = vmul.f32 1.442695, %v985_v31  ;;  %v2627_v7 = vmul.f32 %v5784_v37, %v1539_v56  ;;  %v2040_v16 = vmul.f32 %v5293_v9, %v6230_v49  ;;  %v6559_v36 = vpop.eup %4857  ;;  %v6561_v51 = vadd.f32 1e-06, %v1186_v1  ;;  %8813 = vst [vmem:[#allocation132_spill] sm:$0xff] %v6594_v14 }
 0x341   : > { %v1071_v6 = vadd.f32 1.0, %v1070_v62  ;;  %v1417_v3 = vmul.f32 -0.5, %v6447_v12  ;;  %v4860_v58 = vpop.eup %4859  ;;  %v1189_v37 = vsel %vm933_vm15, %v6181_v53, %v1173_v13  ;;  %vm6569_vm1 = vcmp.lt.f32.partialorder %v1073_v15, 0.0004427343 }
 0x342   : > { %8810 = vst [vmem:[#allocation131_spill] sm:$0xff] %v6561_v51  ;;  %v6574_v56 = vmul.f32 0.1, %v6247_v39  ;;  %4869 = vlog2.f32 %v1441_v28  ;;  %2664 = vrot.lane.b32.xlu1 %v2627_v7, %s5321_s14  ;;  %2082 = vrot.lane.b32.xlu0 %v2040_v16, %s5320_s10  ;;  %v4862_v31 = vpop.eup %4861  ;;  %v1436_v54 = vadd.f32 1.0, %v1435_v45  ;;  %v967_v62 = vand.u32 2147483647, %v6541_v27 }
 0x343   : > { %4871 = vlog2.f32 %v1423_v30  ;;  %v6580_v53 = vadd.f32 0.05, %v6546_v48  ;;  %v4864_v15 = vpop.eup %4863  ;;  %v1438_v1 = vand.u32 2147483647, %v6435_v21  ;;  %v2041_v13 = vmul.f32 %v5294_v0, %v6303_v35  ;;  %v5295_v28 = vld [vmem:[%s5366_s20 + $0x40] sm:$0xff]  ;;  %v5296_v0 = vld [vmem:[%s5366_s20 + $0x48] sm:$0xff] }
 0x344   : > { %4873 = vpow2.f32 %v1012_v29  ;;  %v2038_v7 = vmul.f32 %v5295_v28, %v6247_v39  ;;  %v6589_v16 = vadd.f32 1e-06, %v1189_v37  ;;  %v6592_v45 = vmul.f32 %v6444_v43, %v1071_v6  ;;  %v6602_v37 = vpop.permute.xlu1 %1976 }
 0x345   : > { %v6587_v9 = vpop.eup %4865  ;;  %v1434_v30 = vmul.f32 0.6931472, %v4860_v58  ;;  %v1418_v22 = vadd.f32 1.0, %v1417_v3  ;;  %v1112_v34 = vadd.f32 1.0, %v6559_v36  ;;  %v1420_v29 = vand.u32 2147483647, %v6447_v12 }
 0x346   : > { %v1545_v39 = vmul.f32 0.1, %v6303_v35  ;;  %2084 = vrot.lane.b32.xlu1 %v2041_v13, %s5320_s10  ;;  %2078 = vrot.lane.b32.xlu0 %v2038_v7, %s5320_s10  ;;  %8814 = vst [vmem:[#allocation133_spill] sm:$0xff] %v6602_v37  ;;  %v6604_v43 = vmul.f32 0.6931472, %v4862_v31  ;;  %vm1256_vm3 = vcmp.ne.f32.partialorder %v6265_v17, %v6265_v17  ;;  %v1437_v6 = vmul.f32 %v6435_v21, %v1436_v54 }
 0x347   : > { %v1416_v3 = vmul.f32 0.6931472, %v4864_v15  ;;  %v1290_v58 = vand.u32 2147483647, %v6580_v53  ;;  %vm6612_vm4 = vcmp.lt.f32.partialorder %v1438_v1, 0.0004427343  ;;  %v2039_v31 = vmul.f32 %v5296_v0, %v6312_v63  ;;  %v6627_v1 = vpop.permute.xlu0 %2166 }
 0x348   : > { %v6610_v28 = vpop.eup %4867  ;;  %v1094_v13 = vadd.f32 1.0, %v6587_v9  ;;  %v983_v7 = vsub.f32 0.0, %v967_v62  ;;  %v1440_v14 = vsel %vm6612_vm4, %v1437_v6, %v1434_v30  ;;  %vm1254_vm5 = vcmp.ne.f32.partialorder %v6274_v26, %v6274_v26  ;;  %8817 = vst [vmem:[#allocation134_spill] sm:$0xff] %v6627_v1  ;;  %v6652_v0 = vpop.permute.xlu1 %1980 }
 0x349   : > { %v1419_v21 = vmul.f32 %v6447_v12, %v1418_v22  ;;  %v1444_v54 = vmul.f32 -0.5, %v6506_v10  ;;  %v2632_v15 = vmul.f32 %v5854_v33, %v6517_v5  ;;  %4875 = vlog2.f32 %v1112_v34  ;;  %8822 = vst [vmem:[#allocation136_spill] sm:$0xff] %v6652_v0 }
 0x34a   : > { %vm6629_vm6 = vcmp.lt.f32.partialorder %v1420_v29, 0.0004427343  ;;  %v1426_v30 = vmul.f32 -0.5, %v6514_v24  ;;  %2080 = vrot.lane.b32.xlu1 %v2039_v31, %s5320_s10  ;;  %v1468_v5 = vadd.f32 1.0, %v6610_v28  ;;  %v1306_v34 = vsub.f32 0.0, %v1290_v58 }
 0x34b   : > { %v1422_v33 = vsel %vm6629_vm6, %v1419_v21, %v1416_v3  ;;  %2674 = vrot.lane.b32.xlu0 %v2632_v15, %s5321_s14  ;;  %v8820_v29 = vmax.f32 %v6265_v17, 0.0  ;;  %v1543_v35 = vmul.f32 0.1, %v6312_v63  ;;  %v6649_v31 = vadd.f32 %v6075_v60, %v6000_v57 }
 0x34c   : > { %v4870_v22 = vpop.eup %4869  ;;  %v2633_v12 = vmul.f32 %v5857_v18, %v1545_v39  ;;  %4877 = vlog2.f32 %v1094_v13  ;;  %v1445_v21 = vadd.f32 1.0, %v1444_v54  ;;  %v1447_v58 = vand.u32 2147483647, %v6506_v10 }
 0x34d   : > { %v1496_v6 = vadd.f32 %v1440_v14, %v8820_v29  ;;  %8821 = vst [vmem:[#allocation135_spill] sm:$0xff] %v6649_v31  ;;  %v4872_v3 = vpop.eup %4871  ;;  %v2630_v15 = vmul.f32 %v5839_v32, %v6574_v56  ;;  %v8824_v63 = vmax.f32 %v6274_v26, 0.0  ;;  %v1008_v29 = vmul.f32 1.442695, %v983_v7  ;;  %v6667_v32 = vpop.permute.xlu0 %2170 }
 0x34e   : > { %v6657_v62 = vpop.eup %4873  ;;  %v1427_v60 = vadd.f32 1.0, %v1426_v30  ;;  %v6662_v1 = vadd.f32 0.1, %v6546_v48  ;;  %2676 = vrot.lane.b32.xlu1 %v2633_v12, %s5321_s14  ;;  %v1443_v18 = vmul.f32 0.6931472, %v4870_v22  ;;  %4879 = vlog2.f32 %v1468_v5  ;;  %8826 = vst [vmem:[#allocation139_spill] sm:$0xff] %v6667_v32 }
 0x34f   : > { %8823 = vst [vmem:[#allocation137_spill] sm:$0xff] %v6657_v62  ;;  %v1494_v14 = vadd.f32 %v1422_v33, %v8824_v63  ;;  %v1429_v39 = vand.u32 2147483647, %v6514_v24  ;;  %v1334_v13 = vmul.f32 1.442695, %v1306_v34  ;;  %2670 = vrot.lane.b32.xlu0 %v2630_v15, %s5321_s14  ;;  %v1512_v56 = vsel %vm1256_vm3, %v6265_v17, %v1496_v6  ;;  %v8827_v30 = vld [vmem:[#allocation42_spill] sm:$0xff]  ;;  %v6677_v33 = vpop.permute.xlu1 %2168 }
 0x350   : > { %8825 = vst [vmem:[#allocation138_spill] sm:$0xff] %v6662_v1  ;;  %v1425_v7 = vmul.f32 0.6931472, %v4872_v3  ;;  %v6674_v54 = vadd.f32 0.05, %v6649_v31  ;;  %v2631_v12 = vmul.f32 %v8827_v30, %v1543_v35  ;;  %8828 = vst [vmem:[#allocation42_spill] sm:$0xff] %v6677_v33  ;;  %vm1257_vm7 = vcmp.ne.f32.partialorder %v6326_v19, %v6326_v19 }
 0x351   : > { %v1121_v5 = vadd.f32 1.0, %v6657_v62  ;;  %v1446_v34 = vmul.f32 %v6506_v10, %v1445_v21  ;;  %vm6683_vm8 = vcmp.lt.f32.partialorder %v1447_v58, 0.0004427343  ;;  %v5297_v17 = vld [vmem:[%s5366_s20 + $0x70] sm:$0xff]  ;;  %v1510_v35 = vsel %vm1254_vm5, %v6274_v26, %v1494_v14  ;;  %v8831_v63 = vld [vmem:[#allocation77_spill] sm:$0xff]  ;;  %v5300_v30 = vld [vmem:[%s5366_s20 + $0x68] sm:$0xff] }
 0x352   : > { %v2044_v6 = vmul.f32 %v5297_v17, %v6386_v46  ;;  %v1428_v3 = vmul.f32 %v6514_v24, %v1427_v60  ;;  %v970_v15 = vand.u32 2147483647, %v6662_v1  ;;  %v6697_v10 = vadd.f32 %v6000_v57, %v8831_v63  ;;  %2672 = vrot.lane.b32.xlu1 %v2631_v12, %s5321_s14  ;;  %v5298_v14 = vld [vmem:[%s5366_s20 + $0x78] sm:$0xff] }
 0x353   : > { %v6700_v21 = vadd.f32 1e-06, %v1512_v56  ;;  %v1449_v58 = vsel %vm6683_vm8, %v1446_v34, %v1443_v18  ;;  %vm6704_vm9 = vcmp.lt.f32.partialorder %v1429_v39, 0.0004427343  ;;  %4881 = vpow2.f32 %v1334_v13  ;;  %v6709_v26 = vpop.eup %4875  ;;  %v5299_v39 = vld [vmem:[%s5366_s20 + $0x60] sm:$0xff]  ;;  %v6731_v17 = vpop.permute.xlu1 %2172 }
 0x354   : > { %8832 = vst [vmem:[#allocation77_spill] sm:$0xff] %v6697_v10  ;;  %2090 = vrot.lane.b32.xlu0 %v2044_v6, %s5320_s10  ;;  %8836 = vst [vmem:[#allocation141_spill] sm:$0xff] %v6709_v26  ;;  %4883 = vpow2.f32 %v1008_v29  ;;  %v1431_v57 = vsel %vm6704_vm9, %v1428_v3, %v1425_v7  ;;  %v1293_v24 = vand.u32 2147483647, %v6674_v54  ;;  %v2045_v60 = vmul.f32 %v5298_v14, %v6649_v31  ;;  %v6723_v29 = vpop.permute.xlu0 %2526 }
 0x355   : > { %8833 = vst [vmem:[#allocation140_spill] sm:$0xff] %v6700_v21  ;;  %v6716_v56 = vadd.f32 1e-06, %v1510_v35  ;;  %vm1255_vm10 = vcmp.ne.f32.partialorder %v6333_v41, %v6333_v41  ;;  %v1548_v18 = vmul.f32 0.1, %v6386_v46  ;;  %v2042_v13 = vmul.f32 %v5299_v39, %v6546_v48  ;;  %8838 = vst [vmem:[#allocation143_spill] sm:$0xff] %v6723_v29 }
 0x356   : > { %4885 = vlog2.f32 %v1121_v5  ;;  %v8839_v7 = vmax.f32 %v6326_v19, 0.0  ;;  %v986_v34 = vsub.f32 0.0, %v970_v15  ;;  %v6728_v22 = vadd.f32 0.05, %v6697_v10  ;;  %2092 = vrot.lane.b32.xlu1 %v2045_v60, %s5320_s10  ;;  %8840 = vst [vmem:[#allocation144_spill] sm:$0xff] %v6731_v17  ;;  %v6733_v6 = vpop.eup %4877  ;;  %v8843_v60 = vld [vmem:[#allocation108_spill] sm:$0xff] }
 0x357   : > { %8837 = vst [vmem:[#allocation142_spill] sm:$0xff] %v6716_v56  ;;  %8841 = vst [vmem:[#allocation145_spill] sm:$0xff] %v6733_v6  ;;  %4887 = vrcp.f32 %v6700_v21  ;;  %v8842_v35 = vmax.f32 %v6333_v41, 0.0  ;;  %v1471_v63 = vmul.f32 -0.5, %v6610_v28  ;;  %v1309_v15 = vsub.f32 0.0, %v1293_v24  ;;  %v6766_v0 = vpop.permute.xlu1 %2528 }
 0x358   : > { %v1497_v12 = vadd.f32 %v1449_v58, %v8839_v7  ;;  %2086 = vrot.lane.b32.xlu0 %v2042_v13, %s5320_s10  ;;  %v1549_v58 = vmul.f32 0.1, %v6649_v31  ;;  %v2043_v14 = vmul.f32 %v5300_v30, %v6697_v10  ;;  %v1360_v39 = vadd.f32 1.0, %v8843_v60  ;;  %v4880_v7 = vpop.eup %4879  ;;  %v6762_v33 = vpop.permute.xlu0 %2530 }
 0x359   : > { %v1495_v3 = vadd.f32 %v1431_v57, %v8842_v35  ;;  %4889 = vrcp.f32 %v6716_v56  ;;  %v1546_v57 = vmul.f32 0.1, %v6546_v48  ;;  %v8844_v35 = vld [vmem:[#allocation45_spill] sm:$0xff]  ;;  %v1014_v13 = vmul.f32 1.442695, %v986_v34  ;;  %8846 = vst [vmem:[#allocation108_spill] sm:$0xff] %v6762_v33 }
 0x35a   : > { %v2636_v5 = vmul.f32 %v8844_v35, %v1548_v18  ;;  %v1513_v24 = vsel %vm1257_vm7, %v6326_v19, %v1497_v12  ;;  %v1291_v32 = vand.u32 2147483647, %v6728_v22  ;;  %2088 = vrot.lane.b32.xlu1 %v2043_v14, %s5320_s10  ;;  %4891 = vlog2.f32 %v1360_v39  ;;  %v8845_v18 = vld [vmem:[#allocation113_spill] sm:$0xff]  ;;  %v8847_v14 = vld [vmem:[#allocation46_spill] sm:$0xff]  ;;  %8848 = vst [vmem:[#allocation45_spill] sm:$0xff] %v6766_v0 }
 0x35b   : > { %v1511_v30 = vsel %vm1255_vm10, %v6333_v41, %v1495_v3  ;;  %v1472_v17 = vadd.f32 1.0, %v1471_v63  ;;  %v1474_v48 = vand.u32 2147483647, %v6610_v28  ;;  %v1369_v35 = vadd.f32 1.0, %v8845_v18  ;;  %v8849_v41 = vld [vmem:[#allocation43_spill] sm:$0xff]  ;;  %v8860_v0 = vld [vmem:[#allocation86_spill] sm:$0xff] }
 0x35c   : > { %2682 = vrot.lane.b32.xlu0 %v2636_v5, %s5321_s14  ;;  %v1470_v19 = vmul.f32 0.6931472, %v4880_v7  ;;  %v1340_v12 = vmul.f32 1.442695, %v1309_v15  ;;  %v1547_v34 = vmul.f32 0.1, %v6697_v10  ;;  %v2637_v39 = vmul.f32 %v8847_v14, %v1549_v58  ;;  %v6801_v1 = vpop.permute.xlu0 %2534 }
 0x35d   : > { %v6768_v37 = vpop.eup %4881  ;;  %v2634_v3 = vmul.f32 %v8849_v41, %v1546_v57  ;;  %v1363_v63 = vmul.f32 -0.5, %v8843_v60  ;;  %4893 = vlog2.f32 %v1369_v35  ;;  %v8850_v5 = vld [vmem:[#allocation109_spill] sm:$0xff]  ;;  %v6775_v7 = vadd.f32 1e-06, %v1513_v24  ;;  %v8861_v33 = vld [vmem:[#allocation98_spill] sm:$0xff] }
 0x35e   : > { %v1342_v50 = vadd.f32 1.0, %v8850_v5  ;;  %v6773_v20 = vpop.eup %4883  ;;  %4895 = vpow2.f32 %v1014_v13  ;;  %v1307_v25 = vsub.f32 0.0, %v1291_v32  ;;  %2684 = vrot.lane.b32.xlu1 %v2637_v39, %s5321_s14  ;;  %v1473_v58 = vmul.f32 %v6610_v28, %v1472_v17  ;;  %v5301_v57 = vld [vmem:[%s5366_s20 + $0x18] sm:$0xff]  ;;  %v8855_v32 = vld [vmem:[#allocation44_spill] sm:$0xff]  ;;  %8859 = vst [vmem:[#allocation109_spill] sm:$0xff] %v6801_v1  ;;  %v8871_v10 = vld [vmem:[#allocation90_spill] sm:$0xff] }
 0x35f   : > { %8851 = vst [vmem:[#allocation113_spill] sm:$0xff] %v6773_v20  ;;  %vm6780_vm11 = vcmp.lt.f32.partialorder %v1474_v48, 0.0004427343  ;;  %v1828_v35 = vmul.f32 1.442695, %v5301_v57  ;;  %v1453_v13 = vmul.f32 -0.5, %v6768_v37  ;;  %v2635_v15 = vmul.f32 %v8855_v32, %v1547_v34 }
 0x360   : > { %2678 = vrot.lane.b32.xlu0 %v2634_v3, %s5321_s14  ;;  %4897 = vlog2.f32 %v1342_v50  ;;  %v6786_v41 = vpop.eup %4885  ;;  %v6788_v24 = vadd.f32 1e-06, %v1511_v30  ;;  %v1372_v39 = vmul.f32 -0.5, %v8845_v18  ;;  %v1476_v17 = vsel %vm6780_vm11, %v1473_v58, %v1470_v19  ;;  %v8856_v48 = vld [vmem:[#allocation85_spill] sm:$0xff]  ;;  %v6810_v19 = vpop.permute.xlu1 %2532  ;;  %v8866_v32 = vld [vmem:[#allocation100_spill] sm:$0xff] }
 0x361   : > { %8854 = vst [vmem:[#allocation46_spill] sm:$0xff] %v6786_v41  ;;  %v6793_v28 = vpop.eup %4887  ;;  %4899 = vpow2.f32 %v1340_v12  ;;  %v8857_v57 = vld [vmem:[#allocation97_spill] sm:$0xff]  ;;  %v1364_v50 = vadd.f32 1.0, %v1363_v63  ;;  %v1336_v30 = vmul.f32 1.442695, %v1307_v25  ;;  %v6805_v29 = vsub.f32 %v8861_v33, %v8860_v0  ;;  %8863 = vst [vmem:[#allocation85_spill] sm:$0xff] %v6810_v19 }
 0x362   : > { %v6799_v3 = vsub.f32 %v8857_v57, %v8856_v48  ;;  %2680 = vrot.lane.b32.xlu1 %v2635_v15, %s5321_s14  ;;  %v1366_v34 = vand.u32 2147483647, %v8843_v60  ;;  %v1345_v14 = vmul.f32 -0.5, %v8850_v5  ;;  %v1450_v58 = vadd.f32 1.0, %v6768_v37  ;;  %v8865_v63 = vld [vmem:[#allocation87_spill] sm:$0xff]  ;;  %v8868_v48 = vld [vmem:[#allocation116_spill] sm:$0xff] }
 0x363   : > { %8862 = vst [vmem:[#allocation44_spill] sm:$0xff] %v6805_v29  ;;  %v6812_v12 = vpop.eup %4889  ;;  %4901 = vpow2.f32 %v1828_v35  ;;  %v6817_v25 = vsub.f32 %v8866_v32, %v8865_v63  ;;  %v1351_v0 = vadd.f32 1.0, %v8868_v48  ;;  %v8869_v15 = vmax.f32 %v6420_v44, 0.0  ;;  %v8870_v63 = vld [vmem:[#allocation88_spill] sm:$0xff] }
 0x364   : > { %8858 = vst [vmem:[#allocation43_spill] sm:$0xff] %v6799_v3  ;;  %8864 = vst [vmem:[#allocation97_spill] sm:$0xff] %v6812_v12  ;;  %v4892_v33 = vpop.eup %4891  ;;  %v1454_v1 = vadd.f32 1.0, %v1453_v13  ;;  %v1373_v19 = vadd.f32 1.0, %v1372_v39  ;;  %v1365_v41 = vmul.f32 %v8843_v60, %v1364_v50  ;;  %v1375_v35 = vand.u32 2147483647, %v8845_v18  ;;  %v6831_v39 = vpop.permute.xlu0 %2538 }
 0x365   : > { %8867 = vst [vmem:[#allocation86_spill] sm:$0xff] %v6817_v25  ;;  %v6822_v57 = vadd.f32 %v1476_v17, %v8869_v15  ;;  %v1362_v56 = vmul.f32 0.6931472, %v4892_v33  ;;  %4903 = vlog2.f32 %v1351_v0  ;;  %v1232_v32 = vmax.f32 %v8870_v63, 0.0  ;;  %8872 = vst [vmem:[#allocation98_spill] sm:$0xff] %v6831_v39  ;;  %v8881_v12 = vld [vmem:[#allocation106_spill] sm:$0xff] }
 0x366   : > { %4905 = vpow2.f32 %v1336_v30  ;;  %vm1367_vm12 = vcmp.lt.f32.partialorder %v1366_v34, 0.0004427343  ;;  %v1346_v27 = vadd.f32 1.0, %v1345_v14  ;;  %v1834_v62 = vmul.f32 1.442695, %v8871_v10  ;;  %v6837_v34 = vpop.permute.xlu1 %2536  ;;  %v8875_v10 = vld [vmem:[#allocation93_spill] sm:$0xff] }
 0x367   : > { %v4894_v4 = vpop.eup %4893  ;;  %v1368_v17 = vsel %vm1367_vm12, %v1365_v41, %v1362_v56  ;;  %v1348_v13 = vand.u32 2147483647, %v8850_v5  ;;  %v1396_v15 = vadd.f32 1.0, %v6395_v2  ;;  %v1374_v30 = vmul.f32 %v8845_v18, %v1373_v19  ;;  %8874 = vst [vmem:[#allocation100_spill] sm:$0xff] %v6837_v34 }
 0x368   : > { %v6833_v33 = vpop.eup %4895  ;;  %v1488_v60 = vadd.f32 %v1368_v17, %v1232_v32  ;;  %v1371_v50 = vmul.f32 0.6931472, %v4894_v4  ;;  %v1354_v0 = vmul.f32 -0.5, %v8868_v48  ;;  %vm1248_vm13 = vcmp.ne.f32.partialorder %v8870_v63, %v8870_v63  ;;  %v8876_v17 = vld [vmem:[#allocation89_spill] sm:$0xff] }
 0x369   : > { %8873 = vst [vmem:[#allocation87_spill] sm:$0xff] %v6833_v33  ;;  %v1233_v56 = vmax.f32 %v8875_v10, 0.0  ;;  %vm1376_vm14 = vcmp.lt.f32.partialorder %v1375_v35, 0.0004427343  ;;  %4907 = vlog2.f32 %v1396_v15  ;;  %v1347_v4 = vmul.f32 %v8850_v5, %v1346_v27 }
 0x36a   : > { %v4898_v14 = vpop.eup %4897  ;;  %v1504_v41 = vsel %vm1248_vm13, %v8870_v63, %v1488_v60  ;;  %v1377_v21 = vsel %vm1376_vm14, %v1374_v30, %v1371_v50  ;;  %v1230_v34 = vmax.f32 %v8876_v17, 0.0  ;;  %vm1349_vm15 = vcmp.lt.f32.partialorder %v1348_v13, 0.0004427343  ;;  %v6856_v60 = vpop.permute.xlu0 %2066 }
 0x36b   : > { %v1344_v39 = vmul.f32 0.6931472, %v4898_v14  ;;  %v6844_v32 = vpop.eup %4899  ;;  %v6846_v18 = vadd.f32 1e-06, %v1504_v41  ;;  %v1489_v19 = vadd.f32 %v1377_v21, %v1233_v56  ;;  %vm1249_vm0 = vcmp.ne.f32.partialorder %v8875_v10, %v8875_v10  ;;  %v6863_v50 = vpop.permute.xlu1 %2540 }
 0x36c   : > { %v1355_v35 = vadd.f32 1.0, %v1354_v0  ;;  %v1399_v15 = vmul.f32 -0.5, %v6395_v2  ;;  %4909 = vlog2.f32 %v1450_v58  ;;  %v1357_v21 = vand.u32 2147483647, %v8868_v48  ;;  %8877 = vst [vmem:[#allocation116_spill] sm:$0xff] %v6863_v50  ;;  %v8880_v50 = vld [vmem:[#allocation104_spill] sm:$0xff] }
 0x36d   : > { %v1350_v33 = vsel %vm1349_vm15, %v1347_v4, %v1344_v39  ;;  %v4902_v63 = vpop.eup %4901  ;;  %2962 = vrot.lane.b32.xlu0 %v6846_v18, %s5322_s15  ;;  %v1505_v27 = vsel %vm1249_vm0, %v8875_v10, %v1489_v19  ;;  %4911 = vpow2.f32 %v1834_v62  ;;  %vm1246_vm3 = vcmp.ne.f32.partialorder %v8876_v17, %v8876_v17 }
 0x36e   : > { %v1486_v5 = vadd.f32 %v1350_v33, %v1230_v34  ;;  %v6858_v13 = vadd.f32 1e-06, %v1505_v27  ;;  %v1405_v39 = vadd.f32 1.0, %v6486_v47  ;;  %v6866_v30 = vmul.f32 %v6768_v37, %v1454_v1  ;;  %v8878_v34 = vld [vmem:[#allocation95_spill] sm:$0xff]  ;;  %v8879_v27 = vld [vmem:[#allocation84_spill] sm:$0xff] }
 0x36f   : > { %v4904_v58 = vpop.eup %4903  ;;  %v1477_v33 = vadd.f32 1.0, %v6844_v32  ;;  %v1231_v14 = vmax.f32 %v8878_v34, 0.0  ;;  %v1356_v41 = vmul.f32 %v8868_v48, %v1355_v35  ;;  %v1400_v4 = vadd.f32 1.0, %v1399_v15  ;;  %v6888_v15 = vpop.permute.xlu0 %2062 }
 0x370   : > { %v1502_v0 = vsel %vm1246_vm3, %v8876_v17, %v1486_v5  ;;  %v6871_v62 = vpop.eup %4905  ;;  %2964 = vrot.lane.b32.xlu1 %v6858_v13, %s5322_s15  ;;  %v1353_v56 = vmul.f32 0.6931472, %v4904_v58  ;;  %vm1358_vm4 = vcmp.lt.f32.partialorder %v1357_v21, 0.0004427343  ;;  %v1402_v1 = vand.u32 2147483647, %v6395_v2 }
 0x371   : > { %v6875_v10 = vadd.f32 1e-06, %v1502_v0  ;;  %4913 = vlog2.f32 %v1405_v39  ;;  %v1378_v19 = vadd.f32 1.0, %v6415_v11  ;;  %v1480_v17 = vmul.f32 -0.5, %v6844_v32  ;;  %v8882_v21 = vld [vmem:[#allocation99_spill] sm:$0xff] }
 0x372   : > { %v1921_v5 = vmul.f32 %v4902_v63, %v8879_v27  ;;  %v1830_v6 = vmul.f32 1.442695, %v8880_v50  ;;  %v1359_v0 = vsel %vm1358_vm4, %v1356_v41, %v1353_v56  ;;  %v1836_v48 = vmul.f32 1.442695, %v8881_v12  ;;  %v6893_v27 = vpop.permute.xlu1 %2068 }
 0x373   : > { %2958 = vrot.lane.b32.xlu0 %v6875_v10, %s5322_s15  ;;  %v4908_v58 = vpop.eup %4907  ;;  %vm1247_vm5 = vcmp.ne.f32.partialorder %v8878_v34, %v8878_v34  ;;  %v1487_v35 = vadd.f32 %v1359_v0, %v1231_v14  ;;  %4915 = vlog2.f32 %v1378_v19  ;;  %v1236_v39 = vmax.f32 %v8882_v21, 0.0 }
 0x374   : > { %v1398_v26 = vmul.f32 0.6931472, %v4908_v58  ;;  %v1401_v63 = vmul.f32 %v6395_v2, %v1400_v4  ;;  %v1408_v50 = vmul.f32 -0.5, %v6486_v47  ;;  %vm1403_vm6 = vcmp.lt.f32.partialorder %v1402_v1, 0.0004427343 }
 0x375   : > { %v1503_v56 = vsel %vm1247_vm5, %v8878_v34, %v1487_v35  ;;  %v1381_v12 = vmul.f32 -0.5, %v6415_v11  ;;  %v1387_v41 = vadd.f32 1.0, %v6550_v40  ;;  %4917 = vlog2.f32 %v1477_v33  ;;  %v8883_v34 = vld [vmem:[#allocation92_spill] sm:$0xff] }
 0x376   : > { %v1459_v14 = vadd.f32 1.0, %v6871_v62  ;;  %v6899_v19 = vadd.f32 1e-06, %v1503_v56  ;;  %v1404_v0 = vsel %vm1403_vm6, %v1401_v63, %v1398_v26  ;;  %v4910_v58 = vpop.eup %4909  ;;  %v6901_v31 = vadd.f32 1.0, %v1480_v17  ;;  %v2065_v56 = vpop.permute.xlu1 %2064 }
 0x377   : > { %v1492_v4 = vadd.f32 %v1404_v0, %v1236_v39  ;;  %4919 = vlog2.f32 %v1387_v41  ;;  %v4912_v20 = vpop.eup %4911  ;;  %v6905_v1 = vsub.f32 %v1921_v5, %v8883_v34  ;;  %vm1252_vm7 = vcmp.ne.f32.partialorder %v8882_v21, %v8882_v21  ;;  %v6913_v39 = vpop.permute.xlu0 %2658  ;;  %v8886_v0 = vld [vmem:[#allocation94_spill] sm:$0xff] }
 0x378   : > { %4921 = vpow2.f32 %v1830_v6  ;;  %2960 = vrot.lane.b32.xlu1 %v6899_v19, %s5322_s15  ;;  %v1409_v33 = vadd.f32 1.0, %v1408_v50  ;;  %v1411_v17 = vand.u32 2147483647, %v6486_v47  ;;  %v1382_v35 = vadd.f32 1.0, %v1381_v12  ;;  %8885 = vst [vmem:[#allocation90_spill] sm:$0xff] %v6913_v39 }
 0x379   : > { %8884 = vst [vmem:[#allocation88_spill] sm:$0xff] %v6905_v1  ;;  %4923 = vpow2.f32 %v1836_v48  ;;  %v1508_v26 = vsel %vm1252_vm7, %v8882_v21, %v1492_v4  ;;  %v6915_v63 = vmul.f32 0.6931472, %v4910_v58  ;;  %v1390_v6 = vmul.f32 -0.5, %v6550_v40  ;;  %v8887_v48 = vld [vmem:[#allocation112_spill] sm:$0xff]  ;;  %v8888_v58 = vld [vmem:[#allocation102_spill] sm:$0xff] }
 0x37a   : > { %4925 = vlog2.f32 %v1459_v14  ;;  %v6917_v5 = vadd.f32 1e-06, %v1508_v26  ;;  %v6921_v34 = vmul.f32 %v4912_v20, %v8886_v0  ;;  %v1237_v21 = vmax.f32 %v8887_v48, 0.0 }
 0x37b   : > { %v4914_v41 = vpop.eup %4913  ;;  %4927 = vrcp.f32 %v6846_v18  ;;  %v1384_v50 = vand.u32 2147483647, %v6415_v11  ;;  %vm1253_vm8 = vcmp.ne.f32.partialorder %v8887_v48, %v8887_v48  ;;  %v1410_v14 = vmul.f32 %v6486_v47, %v1409_v33  ;;  %v8902_v18 = vld [vmem:[#allocation105_spill] sm:$0xff] }
 0x37c   : > { %2970 = vrot.lane.b32.xlu0 %v6917_v5, %s5322_s15  ;;  %v1407_v12 = vmul.f32 0.6931472, %v4914_v41  ;;  %v1234_v4 = vmax.f32 %v8888_v58, 0.0  ;;  %v8889_v20 = vand.u32 2147483647, %v6768_v37  ;;  %vm1250_vm11 = vcmp.ne.f32.partialorder %v8888_v58, %v8888_v58 }
 0x37d   : > { %v4916_v26 = vpop.eup %4915  ;;  %vm1412_vm10 = vcmp.lt.f32.partialorder %v1411_v17, 0.0004427343  ;;  %v1383_v0 = vmul.f32 %v6415_v11, %v1382_v35  ;;  %4929 = vrcp.f32 %v6429_v59  ;;  %v1391_v47 = vadd.f32 1.0, %v1390_v6  ;;  %v6951_v6 = vpop.permute.xlu1 %2660 }
 0x37e   : > { %vm6934_vm9 = vcmp.lt.f32.partialorder %v8889_v20, 0.0004427343  ;;  %v1413_v41 = vsel %vm1412_vm10, %v1410_v14, %v1407_v12  ;;  %v1380_v2 = vmul.f32 0.6931472, %v4916_v26  ;;  %4931 = vrcp.f32 %v6431_v23  ;;  %v6945_v20 = vpop.permute.xlu0 %2654  ;;  %8893 = vst [vmem:[#allocation89_spill] sm:$0xff] %v6951_v6 }
 0x37f   : > { %4933 = vrcp.f32 %v6858_v13  ;;  %v1493_v37 = vadd.f32 %v1413_v41, %v1237_v21  ;;  %vm1385_vm12 = vcmp.lt.f32.partialorder %v1384_v50, 0.0004427343  ;;  %v1393_v33 = vand.u32 2147483647, %v6550_v40  ;;  %8892 = vst [vmem:[#allocation93_spill] sm:$0xff] %v6945_v20  ;;  %v4918_v17 = vpop.eup %4917  ;;  %v8897_v41 = vld [vmem:[#allocation61_spill] sm:$0xff] }
 0x380   : > { %4935 = vrcp.f32 %v6875_v10  ;;  %v1386_v39 = vsel %vm1385_vm12, %v1383_v0, %v1380_v2  ;;  %v1235_v11 = vmax.f32 %v6367_v8, 0.0  ;;  %v2112_v35 = vadd.f32 %v6856_v60, %v6817_v25  ;;  %v8967_v20 = vld [vmem:[#allocation52_spill] sm:$0xff]  ;;  %v8970_v25 = vld [vmem:[#allocation53_spill] sm:$0xff] }
 0x381   : > { %v4920_v12 = vpop.eup %4919  ;;  %v1509_v13 = vsel %vm1253_vm8, %v8887_v48, %v1493_v37  ;;  %v1490_v21 = vadd.f32 %v1386_v39, %v1234_v4  ;;  %4937 = vrcp.f32 %v6508_v52  ;;  %v2110_v10 = vadd.f32 %v6888_v15, %v6799_v3 }
 0x382   : > { %v4922_v2 = vpop.eup %4921  ;;  %v1525_v50 = vadd.f32 1e-06, %v1509_v13  ;;  %v1389_v14 = vmul.f32 0.6931472, %v4920_v12  ;;  %v1392_v26 = vmul.f32 %v6550_v40, %v1391_v47  ;;  %4939 = vrcp.f32 %v6510_v61  ;;  %v8898_v12 = vld [vmem:[#allocation59_spill] sm:$0xff] }
 0x383   : > { %v4924_v60 = vpop.eup %4923  ;;  %4941 = vrcp.f32 %v6899_v19  ;;  %v1506_v39 = vsel %vm1250_vm11, %v8888_v58, %v1490_v21  ;;  %vm1394_vm13 = vcmp.lt.f32.partialorder %v1393_v33, 0.0004427343  ;;  %v8894_v4 = vand.u32 2147483647, %v6844_v32 }
 0x384   : > { %v4926_v48 = vpop.eup %4925  ;;  %2972 = vrot.lane.b32.xlu1 %v1525_v50, %s5322_s15  ;;  %v1522_v40 = vadd.f32 1e-06, %v1506_v39  ;;  %v1395_v0 = vsel %vm1394_vm13, %v1392_v26, %v1389_v14  ;;  %v2192_v47 = vmul.f32 %v8897_v41, %v2112_v35  ;;  %v2113_v19 = vadd.f32 %v6893_v27, %v6905_v1  ;;  %v8899_v35 = vld [vmem:[#allocation103_spill] sm:$0xff] }
 0x385   : > { %vm6969_vm14 = vcmp.lt.f32.partialorder %v8894_v4, 0.0004427343  ;;  %v5323_v37 = vmov 0   ;;  %v4928_v58 = vpop.eup %4927  ;;  %v1491_v33 = vadd.f32 %v1395_v0, %v1235_v11  ;;  %v2190_v13 = vmul.f32 %v8898_v12, %v2110_v10  ;;  %v2075_v4 = vpop.permute.xlu0 %2074 }
 0x386   : > { %4563 = vset.pattern.permute.xlu0 %v5323_v37  ;;  %v2111_v21 = vadd.f32 %v2065_v56, %v6805_v29  ;;  %4943 = vrcp.f32 %v6589_v16  ;;  %4562 = vset.pattern.permute.xlu1 %v5323_v37  ;;  %vm1260_vm15 = vcmp.ne.f32.partialorder %v6420_v44, %v6420_v44  ;;  %v1458_v27 = vsel %vm6934_vm9, %v6866_v30, %v6915_v63  ;;  %v6991_v56 = vpop.permute.xlu1 %2656  ;;  %v8901_v63 = vld [vmem:[#allocation91_spill] sm:$0xff]  ;;  %v8904_v37 = vld [vmem:[#allocation66_spill] sm:$0xff] }
 0x387   : > { %v1925_v14 = vmul.f32 %v4924_v60, %v8899_v35  ;;  %4945 = vrcp.f32 %v6917_v5  ;;  %2966 = vrot.lane.b32.xlu0 %v1522_v40, %s5322_s15  ;;  %vm1251_vm0 = vcmp.ne.f32.partialorder %v6367_v8, %v6367_v8  ;;  %8900 = vst [vmem:[#allocation95_spill] sm:$0xff] %v6991_v56  ;;  %v4930_v11 = vpop.eup %4929  ;;  %v1479_v10 = vmul.f32 0.6931472, %v4918_v17 }
 0x388   : > { %v1462_v26 = vmul.f32 -0.5, %v6871_v62  ;;  %v1507_v39 = vsel %vm1251_vm0, %v6367_v8, %v1491_v33  ;;  %4947 = vrcp.f32 %v6552_v55  ;;  %v4932_v30 = vpop.eup %4931  ;;  %vm1258_vm3 = vcmp.ne.f32.partialorder %v6580_v53, %v6580_v53  ;;  %v8905_v8 = vld [vmem:[#allocation60_spill] sm:$0xff] }
 0x389   : > { %v1922_v5 = vmul.f32 %v4922_v2, %v8901_v63  ;;  %v7001_v60 = vsub.f32 %v6921_v34, %v8902_v18  ;;  %v1523_v0 = vadd.f32 1e-06, %v1507_v39  ;;  %v2193_v35 = vmul.f32 %v8904_v37, %v2113_v19  ;;  %v4934_v17 = vpop.eup %4933  ;;  %v8906_v63 = vld [vmem:[#allocation111_spill] sm:$0xff] }
 0x38a   : > { %v7004_v12 = vmul.f32 %v4930_v11, %v2192_v47  ;;  %v7006_v41 = vmul.f32 %v4932_v30, %v2190_v13  ;;  %v2191_v33 = vmul.f32 %v8905_v8, %v2111_v21  ;;  %4949 = vrcp.f32 %v6561_v51  ;;  %v4936_v56 = vpop.eup %4935  ;;  %v2077_v47 = vpop.permute.xlu1 %2076 }
 0x38b   : > { %8903 = vst [vmem:[#allocation84_spill] sm:$0xff] %v7001_v60  ;;  %v1482_v2 = vmul.f32 %v6844_v32, %v6901_v31  ;;  %v7013_v29 = vsub.f32 %v1925_v14, %v8906_v63  ;;  %4951 = vrcp.f32 %v1525_v50  ;;  %2968 = vrot.lane.b32.xlu1 %v1523_v0, %s5322_s15  ;;  %2754 = vrot.lane.b32.xlu0 %v4928_v58, %s5322_s15  ;;  %v4938_v19 = vpop.eup %4937  ;;  %v8908_v13 = vmax.f32 %v6580_v53, 0.0  ;;  %v2071_v31 = vpop.permute.xlu0 %2070  ;;  %v8909_v50 = vld [vmem:[#allocation101_spill] sm:$0xff] }
 0x38c   : > { %v2116_v34 = vadd.f32 %v2075_v4, %v7001_v60  ;;  %v1463_v11 = vadd.f32 1.0, %v1462_v26  ;;  %4953 = vrcp.f32 %v1522_v40  ;;  %v2270_v39 = vand.u32 2147483647, %v7006_v41  ;;  %v4940_v32 = vpop.eup %4939 }
 0x38d   : > { %8907 = vst [vmem:[#allocation104_spill] sm:$0xff] %v7013_v29  ;;  %v1498_v21 = vadd.f32 %v1458_v27, %v8908_v13  ;;  %v1465_v14 = vand.u32 2147483647, %v6871_v62  ;;  %v7023_v30 = vsub.f32 %v1922_v5, %v8909_v50  ;;  %v7025_v18 = vmul.f32 %v4938_v19, %v2193_v35  ;;  %v4942_v4 = vpop.eup %4941  ;;  %v8911_v5 = vld [vmem:[#allocation74_spill] sm:$0xff]  ;;  %v8912_v35 = vld [vmem:[#allocation79_spill] sm:$0xff] }
 0x38e   : > { %v2117_v58 = vadd.f32 %v2077_v47, %v7013_v29  ;;  %v1485_v63 = vsel %vm6969_vm14, %v1482_v2, %v1479_v10  ;;  %v1461_v27 = vmul.f32 0.6931472, %v4926_v48  ;;  %v2272_v40 = vand.u32 2147483647, %v7004_v12  ;;  %v8947_v29 = vld [vmem:[#allocation24_spill] sm:$0xff] }
 0x38f   : > { %8910 = vst [vmem:[#allocation106_spill] sm:$0xff] %v7023_v30  ;;  %v7031_v26 = vmul.f32 %v4940_v32, %v2191_v33  ;;  %2756 = vrot.lane.b32.xlu1 %v4934_v17, %s5322_s15  ;;  %2750 = vrot.lane.b32.xlu0 %v4936_v56, %s5322_s15  ;;  %v2286_v13 = vsub.f32 0.0, %v2270_v39  ;;  %v2196_v50 = vmul.f32 %v8911_v5, %v2116_v34  ;;  %v1243_v15 = vmax.f32 %v6728_v22, 0.0 }
 0x390   : > { %v2197_v19 = vmul.f32 %v8912_v35, %v2117_v58  ;;  %v2114_v47 = vadd.f32 %v2071_v31, %v7023_v30  ;;  %v4944_v8 = vpop.eup %4943  ;;  %v1516_v48 = vsel %vm1260_vm15, %v6420_v44, %v6822_v57  ;;  %v1464_v10 = vmul.f32 %v6871_v62, %v1463_v11  ;;  %v8939_v35 = vld [vmem:[#allocation22_spill] sm:$0xff]  ;;  %v8946_v30 = vld [vmem:[#allocation20_spill] sm:$0xff] }
 0x391   : > { %4955 = vrcp.f32 %v1523_v0  ;;  %v4946_v56 = vpop.eup %4945  ;;  %v8913_v17 = vmax.f32 %v6674_v54, 0.0  ;;  %vm7047_vm4 = vcmp.lt.f32.partialorder %v1465_v14, 0.0004427343  ;;  %v2273_v34 = vand.u32 2147483647, %v7025_v18  ;;  %v8916_v14 = vld [vmem:[#allocation69_spill] sm:$0xff] }
 0x392   : > { %v7052_v39 = vmul.f32 %v4944_v8, %v2197_v19  ;;  %v4948_v31 = vpop.eup %4947  ;;  %v1514_v44 = vsel %vm1258_vm3, %v6580_v53, %v1498_v21  ;;  %v1467_v57 = vsel %vm7047_vm4, %v1464_v10, %v1461_v27  ;;  %v2288_v62 = vsub.f32 0.0, %v2272_v40 }
 0x393   : > { %v1501_v33 = vadd.f32 %v1485_v63, %v8913_v17  ;;  %v2271_v0 = vand.u32 2147483647, %v7031_v26  ;;  %2752 = vrot.lane.b32.xlu1 %v4942_v4, %s5322_s15  ;;  %2762 = vrot.lane.b32.xlu0 %v4946_v56, %s5322_s15  ;;  %v2302_v11 = vmul.f32 1.442695, %v2286_v13  ;;  %v7063_v32 = vmul.f32 %v4948_v31, %v2196_v50 }
 0x394   : > { %v2277_v8 = vand.u32 2147483647, %v7052_v39  ;;  %v2194_v58 = vmul.f32 %v8916_v14, %v2114_v47  ;;  %v4950_v63 = vpop.eup %4949  ;;  %4957 = vrcp.f32 %v6775_v7  ;;  %v7069_v53 = vadd.f32 0.1, %v6386_v46 }
 0x395   : > { %v7071_v21 = vadd.f32 1e-06, %v1516_v48  ;;  %vm1261_vm5 = vcmp.ne.f32.partialorder %v6674_v54, %v6674_v54  ;;  %v4952_v4 = vpop.eup %4951  ;;  %vm931_vm6 = vcmp.ne.f32.partialorder %v6270_v42, %v6270_v42  ;;  %v1499_v40 = vadd.f32 %v1467_v57, %v1243_v15 }
 0x396   : > { %8917 = vst [vmem:[#allocation99_spill] sm:$0xff] %v7069_v53  ;;  %v1517_v27 = vsel %vm1261_vm5, %v6674_v54, %v1501_v33  ;;  %v1832_v13 = vmul.f32 1.442695, %v6480_v38  ;;  %v2289_v50 = vsub.f32 0.0, %v2273_v34  ;;  %v4954_v19 = vpop.eup %4953  ;;  %4959 = vrcp.f32 %v6788_v24 }
 0x397   : > { %v7080_v46 = vadd.f32 1e-06, %v1514_v44  ;;  %v2306_v47 = vmul.f32 1.442695, %v2288_v62  ;;  %v2287_v48 = vsub.f32 0.0, %v2271_v0  ;;  %2764 = vrot.lane.b32.xlu1 %v4952_v4, %s5322_s15  ;;  %2758 = vrot.lane.b32.xlu0 %v4954_v19, %s5322_s15  ;;  %4961 = vpow2.f32 %v2302_v11 }
 0x398   : > { %v2276_v10 = vand.u32 2147483647, %v7063_v32  ;;  %v2293_v56 = vsub.f32 0.0, %v2277_v8  ;;  %v7085_v54 = vmul.f32 %v4950_v63, %v2194_v58  ;;  %v1115_v38 = vmul.f32 -0.5, %v6559_v36 }
 0x399   : > { %4963 = vrcp.f32 %v7071_v21  ;;  %v7089_v15 = vadd.f32 1e-06, %v1517_v27  ;;  %vm1259_vm7 = vcmp.ne.f32.partialorder %v6728_v22, %v6728_v22  ;;  %v972_v17 = vand.u32 2147483647, %v7069_v53  ;;  %v8921_v27 = vld [vmem:[#allocation135_spill] sm:$0xff]  ;;  %v8971_v53 = vld [vmem:[#allocation50_spill] sm:$0xff] }
 0x39a   : > { %v1515_v33 = vsel %vm1259_vm7, %v6728_v22, %v1499_v40  ;;  %4965 = vpow2.f32 %v1832_v13  ;;  %v2308_v2 = vmul.f32 1.442695, %v2289_v50  ;;  %v8918_v31 = vmax.f32 %v6270_v42, 0.0 }
 0x39b   : > { %v4956_v34 = vpop.eup %4955  ;;  %v8919_v44 = vsel %vm6569_vm1, %v6592_v45, %v6604_v43  ;;  %v1097_v62 = vmul.f32 -0.5, %v6587_v9  ;;  %4967 = vrcp.f32 %v7080_v46  ;;  %v2304_v0 = vmul.f32 1.442695, %v2287_v48  ;;  %2770 = vrot.lane.b32.xlu0 %v6793_v28, %s5322_s15  ;;  %v8920_v43 = vld [vmem:[#allocation113_spill] sm:$0xff] }
 0x39c   : > { %v1171_v57 = vadd.f32 %v8919_v44, %v8918_v31  ;;  %2760 = vrot.lane.b32.xlu1 %v4956_v34, %s5322_s15  ;;  %4969 = vpow2.f32 %v2306_v47  ;;  %v2292_v22 = vsub.f32 0.0, %v2276_v10  ;;  %v2316_v11 = vmul.f32 1.442695, %v2293_v56  ;;  %v8923_v47 = vld [vmem:[#allocation141_spill] sm:$0xff]  ;;  %v8938_v34 = vld [vmem:[#allocation18_spill] sm:$0xff] }
 0x39d   : > { %v2274_v8 = vand.u32 2147483647, %v7085_v54  ;;  %v1116_v49 = vadd.f32 1.0, %v1115_v38  ;;  %v1118_v58 = vand.u32 2147483647, %v6559_v36  ;;  %4971 = vrcp.f32 %v7089_v15  ;;  %v8924_v10 = vld [vmem:[#allocation97_spill] sm:$0xff] }
 0x39e   : > { %v7110_v45 = vadd.f32 1e-06, %v1515_v33  ;;  %v1103_v63 = vadd.f32 1.0, %v8920_v43  ;;  %v988_v4 = vsub.f32 0.0, %v972_v17  ;;  %v7114_v40 = vadd.f32 0.1, %v8921_v27  ;;  %v4958_v28 = vpop.eup %4957 }
 0x39f   : > { %4973 = vpow2.f32 %v2308_v2  ;;  %v1187_v13 = vsel %vm931_vm6, %v6270_v42, %v1171_v57  ;;  %v1098_v50 = vadd.f32 1.0, %v1097_v62  ;;  %v1100_v19 = vand.u32 2147483647, %v6587_v9  ;;  %2766 = vrot.lane.b32.xlu0 %v8924_v10, %s5322_s15  ;;  %v8925_v33 = vld [vmem:[#allocation117_spill] sm:$0xff] }
 0x3a0   : > { %8922 = vst [vmem:[#allocation92_spill] sm:$0xff] %v7114_v40  ;;  %4975 = vpow2.f32 %v2304_v0  ;;  %v1114_v48 = vmul.f32 0.6931472, %v8923_v47  ;;  %2772 = vrot.lane.b32.xlu1 %v4958_v28, %s5322_s15  ;;  %v2314_v56 = vmul.f32 1.442695, %v2292_v22  ;;  %v2290_v38 = vsub.f32 0.0, %v2274_v8  ;;  %v4960_v17 = vpop.eup %4959 }
 0x3a1   : > { %4977 = vpow2.f32 %v2316_v11  ;;  %v920_v2 = vmax.f32 %v8925_v33, 0.0  ;;  %vm7126_vm1 = vcmp.lt.f32.partialorder %v1118_v58, 0.0004427343  ;;  %v8928_v42 = vld [vmem:[#allocation145_spill] sm:$0xff]  ;;  %v7132_v44 = vpop.eup %4961  ;;  %v1117_v57 = vmul.f32 %v6559_v36, %v1116_v49 }
 0x3a2   : > { %v1096_v31 = vmul.f32 0.6931472, %v8928_v42  ;;  %4979 = vrcp.f32 %v7110_v45  ;;  %v1018_v62 = vmul.f32 1.442695, %v988_v4  ;;  %v973_v0 = vand.u32 2147483647, %v7114_v40 }
 0x3a3   : > { %4981 = vlog2.f32 %v1103_v63  ;;  %v4964_v22 = vpop.eup %4963  ;;  %v7136_v11 = vadd.f32 1e-06, %v1187_v13  ;;  %v1099_v8 = vmul.f32 %v6587_v9, %v1098_v50  ;;  %v8930_v58 = vld [vmem:[#allocation137_spill] sm:$0xff]  ;;  %v1120_v42 = vsel %vm7126_vm1, %v1117_v57, %v1114_v48  ;;  %v8935_v63 = vld [vmem:[#allocation120_spill] sm:$0xff] }
 0x3a4   : > { %v1124_v27 = vmul.f32 -0.5, %v8930_v58  ;;  %v8931_v28 = vld [vmem:[#allocation77_spill] sm:$0xff]  ;;  %v4966_v10 = vpop.eup %4965  ;;  %vm7145_vm8 = vcmp.lt.f32.partialorder %v1100_v19, 0.0004427343  ;;  %2768 = vrot.lane.b32.xlu1 %v4960_v17, %s5322_s15  ;;  %2778 = vrot.lane.b32.xlu0 %v4964_v22, %s5322_s15  ;;  %4983 = vpow2.f32 %v2314_v56  ;;  %v2310_v49 = vmul.f32 1.442695, %v2290_v38 }
 0x3a5   : > { %8929 = vst [vmem:[#allocation94_spill] sm:$0xff] %v7136_v11  ;;  %v7141_v47 = vadd.f32 0.1, %v8931_v28  ;;  %v4968_v9 = vpop.eup %4967  ;;  %vm936_vm9 = vcmp.ne.f32.partialorder %v8925_v33, %v8925_v33  ;;  %v918_v4 = vmax.f32 %v8935_v63, 0.0  ;;  %v1102_v13 = vsel %vm7145_vm8, %v1099_v8, %v1096_v31  ;;  %v8936_v48 = vld [vmem:[#allocation124_spill] sm:$0xff] }
 0x3a6   : > { %v2334_v50 = vadd.f32 1.0, %v7132_v44  ;;  %v7157_v19 = vpop.eup %4969  ;;  %v1127_v17 = vand.u32 2147483647, %v8930_v58  ;;  %4985 = vpow2.f32 %v1018_v62  ;;  %v989_v56 = vsub.f32 0.0, %v973_v0  ;;  %v8937_v8 = vld [vmem:[#allocation128_spill] sm:$0xff] }
 0x3a7   : > { %8932 = vst [vmem:[#allocation112_spill] sm:$0xff] %v7141_v47  ;;  %v4972_v38 = vpop.eup %4971  ;;  %v1176_v57 = vadd.f32 %v1120_v42, %v920_v2  ;;  %v1125_v22 = vadd.f32 1.0, %v1124_v27  ;;  %v971_v28 = vand.u32 2147483647, %v7141_v47  ;;  %4987 = vrcp.f32 %v7136_v11  ;;  %v8940_v27 = vld [vmem:[#allocation96_spill] sm:$0xff]  ;;  %v8972_v47 = vld [vmem:[#allocation54_spill] sm:$0xff] }
 0x3a8   : > { %v1174_v31 = vadd.f32 %v1102_v13, %v918_v4  ;;  %2780 = vrot.lane.b32.xlu1 %v4972_v38, %s5322_s15  ;;  %2774 = vrot.lane.b32.xlu0 %v4968_v9, %s5322_s15  ;;  %v1814_v62 = vmul.f32 %v8939_v35, %v8938_v34  ;;  %4989 = vpow2.f32 %v2310_v49  ;;  %v1106_v2 = vmul.f32 -0.5, %v8920_v43  ;;  %v8941_v13 = vld [vmem:[#allocation46_spill] sm:$0xff]  ;;  %v8954_v38 = vld [vmem:[#allocation25_spill] sm:$0xff] }
 0x3a9   : > { %v7163_v14 = vpop.eup %4973  ;;  %v1923_v42 = vmul.f32 %v4966_v10, %v8940_v27  ;;  %v2352_v5 = vadd.f32 1.0, %v7157_v19  ;;  %4991 = vlog2.f32 %v2334_v50  ;;  %vm934_vm10 = vcmp.ne.f32.partialorder %v8935_v63, %v8935_v63 }
 0x3aa   : > { %v7170_v0 = vpop.eup %4975  ;;  %v1123_v9 = vmul.f32 0.6931472, %v8941_v13  ;;  %vm7180_vm11 = vcmp.lt.f32.partialorder %v1127_v17, 0.0004427343  ;;  %v1020_v35 = vmul.f32 1.442695, %v989_v56  ;;  %v1192_v10 = vsel %vm936_vm9, %v8925_v33, %v1176_v57 }
 0x3ab   : > { %v7175_v4 = vpop.eup %4977  ;;  %v1126_v50 = vmul.f32 %v8930_v58, %v1125_v22  ;;  %v987_v34 = vsub.f32 0.0, %v971_v28  ;;  %v2361_v27 = vadd.f32 1.0, %v7163_v14  ;;  %v1190_v37 = vsel %vm934_vm10, %v8935_v63, %v1174_v31  ;;  %v8944_v17 = vld [vmem:[#allocation19_spill] sm:$0xff] }
 0x3ac   : > { %v4980_v49 = vpop.eup %4979  ;;  %2542 = vrot.lane.b32.xlu0 %v1814_v62, %s5320_s10  ;;  %v8945_v56 = vld [vmem:[#allocation23_spill] sm:$0xff]  ;;  %v1816_v60 = vmul.f32 %v8947_v29, %v8946_v30  ;;  %v2343_v33 = vadd.f32 1.0, %v7170_v0  ;;  %v1107_v57 = vadd.f32 1.0, %v1106_v2  ;;  %4993 = vlog2.f32 %v2352_v5  ;;  %v2073_v29 = vpop.permute.xlu1 %2072 }
 0x3ad   : > { %v4982_v36 = vpop.eup %4981  ;;  %2776 = vrot.lane.b32.xlu1 %v4980_v49, %s5322_s15  ;;  %v1815_v13 = vmul.f32 %v8945_v56, %v8944_v17  ;;  %v8948_v58 = vld [vmem:[#allocation107_spill] sm:$0xff]  ;;  %v2397_v28 = vadd.f32 1.0, %v7175_v4  ;;  %v1129_v31 = vsel %vm7180_vm11, %v1126_v50, %v1123_v9  ;;  %v1109_v62 = vand.u32 2147483647, %v8920_v43  ;;  %v7208_v30 = vpop.permute.xlu0 %2666  ;;  %v8953_v9 = vld [vmem:[#allocation21_spill] sm:$0xff] }
 0x3ae   : > { %v7199_v22 = vsub.f32 %v1923_v42, %v8948_v58  ;;  %v7202_v63 = vpop.eup %4983  ;;  %v8950_v49 = vld [vmem:[#allocation87_spill] sm:$0xff]  ;;  %4995 = vpow2.f32 %v1020_v35  ;;  %8951 = vst [vmem:[#allocation103_spill] sm:$0xff] %v7208_v30  ;;  %v7210_v2 = vmul.f32 0.6931472, %v4982_v36  ;;  %v1016_v42 = vmul.f32 1.442695, %v987_v34 }
 0x3af   : > { %v1130_v17 = vadd.f32 1.0, %v8950_v49  ;;  %4997 = vlog2.f32 %v2361_v27  ;;  %v7215_v58 = vadd.f32 1e-06, %v1192_v10  ;;  %v1817_v35 = vmul.f32 %v8954_v38, %v8953_v9 }
 0x3b0   : > { %8949 = vst [vmem:[#allocation102_spill] sm:$0xff] %v7199_v22  ;;  %v2115_v5 = vadd.f32 %v2073_v29, %v7199_v22  ;;  %v7213_v56 = vpop.eup %4985  ;;  %2546 = vrot.lane.b32.xlu0 %v1816_v60, %s5320_s10  ;;  %v2337_v50 = vmul.f32 -0.5, %v7132_v44  ;;  %4999 = vlog2.f32 %v2343_v33  ;;  %v7223_v34 = vmul.f32 %v8920_v43, %v1107_v57  ;;  %v8955_v29 = vld [vmem:[#allocation72_spill] sm:$0xff]  ;;  %v7239_v43 = vpop.permute.xlu1 %2668  ;;  %v8963_v22 = vld [vmem:[#allocation142_spill] sm:$0xff] }
 0x3b1   : > { %8952 = vst [vmem:[#allocation91_spill] sm:$0xff] %v7215_v58  ;;  %2544 = vrot.lane.b32.xlu1 %v1815_v13, %s5320_s10  ;;  %v4988_v36 = vpop.eup %4987  ;;  %v2388_v10 = vadd.f32 1.0, %v7202_v63  ;;  %5001 = vlog2.f32 %v2397_v28  ;;  %v7229_v60 = vadd.f32 1e-06, %v1190_v37  ;;  %v8957_v9 = vmax.f32 %v8936_v48, 0.0  ;;  %8960 = vst [vmem:[#allocation111_spill] sm:$0xff] %v7239_v43  ;;  %v7241_v57 = vpop.permute.xlu0 %2662 }
 0x3b2   : > { %v2195_v27 = vmul.f32 %v8955_v29, %v2115_v5  ;;  %v7227_v13 = vpop.eup %4989  ;;  %vm7235_vm12 = vcmp.lt.f32.partialorder %v1109_v62, 0.0004427343  ;;  %5003 = vlog2.f32 %v1130_v17  ;;  %8961 = vst [vmem:[#allocation101_spill] sm:$0xff] %v7241_v57  ;;  %v7248_v28 = vadd.f32 1.0, %v7213_v56  ;;  %v5302_v62 = vld [vmem:[%s5366_s20 + $0x40] sm:$0xff]  ;;  %v5303_v17 = vld [vmem:[%s5366_s20 + $0x50] sm:$0xff] }
 0x3b3   : > { %8956 = vst [vmem:[#allocation105_spill] sm:$0xff] %v7229_v60  ;;  %v7233_v38 = vadd.f32 %v1129_v31, %v8957_v9  ;;  %v4992_v5 = vpop.eup %4991  ;;  %5005 = vpow2.f32 %v1016_v42  ;;  %v7253_v9 = vmul.f32 1.442695, %v5302_v62  ;;  %v7256_v29 = vmul.f32 1.442695, %v5303_v17  ;;  %v8965_v62 = vld [vmem:[#allocation51_spill] sm:$0xff] }
 0x3b4   : > { %v7250_v31 = vmul.f32 %v4988_v36, %v2195_v27  ;;  %2974 = vrot.lane.b32.xlu0 %v8963_v22, %s5322_s15  ;;  %v2355_v57 = vmul.f32 -0.5, %v7157_v19  ;;  %v2338_v37 = vadd.f32 1.0, %v2337_v50  ;;  %v2340_v42 = vand.u32 2147483647, %v7132_v44  ;;  %v8964_v27 = vld [vmem:[#allocation47_spill] sm:$0xff]  ;;  %v8966_v17 = vld [vmem:[#allocation48_spill] sm:$0xff] }
 0x3b5   : > { %2548 = vrot.lane.b32.xlu1 %v1817_v35, %s5320_s10  ;;  %5007 = vlog2.f32 %v2388_v10  ;;  %v2370_v36 = vadd.f32 1.0, %v7227_v13  ;;  %v1818_v30 = vmul.f32 %v8965_v62, %v8964_v27  ;;  %v1819_v3 = vmul.f32 %v8967_v20, %v8966_v17  ;;  %v7269_v35 = vpop.permute.xlu1 %2664  ;;  %v8969_v50 = vld [vmem:[#allocation49_spill] sm:$0xff]  ;;  %v7286_v62 = vpop.permute.xlu0 %2082 }
 0x3b6   : > { %8962 = vst [vmem:[#allocation113_spill] sm:$0xff] %v7250_v31  ;;  %v2275_v43 = vand.u32 2147483647, %v7250_v31  ;;  %8968 = vst [vmem:[#allocation135_spill] sm:$0xff] %v7269_v35  ;;  %v2336_v6 = vmul.f32 0.6931472, %v4992_v5  ;;  %v4994_v1 = vpop.eup %4993  ;;  %v1820_v40 = vmul.f32 %v8970_v25, %v8969_v50  ;;  %v7276_v10 = vmul.f32 %v8972_v47, %v8971_v53 }
 0x3b7   : > { %v2364_v22 = vmul.f32 -0.5, %v7163_v14  ;;  %v2346_v60 = vmul.f32 -0.5, %v7170_v0  ;;  %v2224_v20 = vmax.f32 %v7004_v12, 0.0  ;;  %v8973_v5 = vld [vmem:[#allocation140_spill] sm:$0xff]  ;;  %8974 = vst [vmem:[#allocation141_spill] sm:$0xff] %v7286_v62  ;;  %v2356_v25 = vadd.f32 1.0, %v2355_v57 }
 0x3b8   : > { %v2291_v11 = vsub.f32 0.0, %v2275_v43  ;;  %v7279_v27 = vpop.eup %4995  ;;  %2978 = vrot.lane.b32.xlu0 %v8973_v5, %s5322_s15  ;;  %v2339_v17 = vmul.f32 %v7132_v44, %v2338_v37  ;;  %v2400_v53 = vmul.f32 -0.5, %v7175_v4  ;;  %v2358_v50 = vand.u32 2147483647, %v7157_v19  ;;  %v8987_v31 = vld [vmem:[#allocation143_spill] sm:$0xff] }
 0x3b9   : > { %2976 = vrot.lane.b32.xlu1 %v6788_v24, %s5322_s15  ;;  %v4998_v47 = vpop.eup %4997  ;;  %vm7291_vm13 = vcmp.lt.f32.partialorder %v2340_v42, 0.0004427343  ;;  %5009 = vlog2.f32 %v2370_v36  ;;  %v2222_v51 = vmax.f32 %v7006_v41, 0.0  ;;  %v2354_v5 = vmul.f32 0.6931472, %v4994_v1  ;;  %v7305_v36 = vpop.permute.xlu1 %2084 }
 0x3ba   : > { %v2312_v43 = vmul.f32 1.442695, %v2291_v11  ;;  %v5000_v24 = vpop.eup %4999  ;;  %v2342_v57 = vsel %vm7291_vm13, %v2339_v17, %v2336_v6  ;;  %v2365_v62 = vadd.f32 1.0, %v2364_v22  ;;  %v2347_v37 = vadd.f32 1.0, %v2346_v60  ;;  %8978 = vst [vmem:[#allocation117_spill] sm:$0xff] %v7305_v36 }
 0x3bb   : > { %v5002_v44 = vpop.eup %5001  ;;  %v2349_v11 = vand.u32 2147483647, %v7170_v0  ;;  %v2367_v58 = vand.u32 2147483647, %v7163_v14  ;;  %v2357_v1 = vmul.f32 %v7157_v19, %v2356_v25  ;;  %v2363_v6 = vmul.f32 0.6931472, %v4998_v47 }
 0x3bc   : > { %5011 = vpow2.f32 %v2312_v43  ;;  %v7300_v42 = vpop.eup %5003  ;;  %2550 = vrot.lane.b32.xlu0 %v1818_v30, %s5320_s10  ;;  %v2391_v35 = vmul.f32 -0.5, %v7202_v63  ;;  %v2401_v22 = vadd.f32 1.0, %v2400_v53  ;;  %v2225_v17 = vmax.f32 %v7025_v18, 0.0  ;;  %v7317_v30 = vpop.permute.xlu0 %2078 }
 0x3bd   : > { %8977 = vst [vmem:[#allocation97_spill] sm:$0xff] %v7300_v42  ;;  %2980 = vrot.lane.b32.xlu1 %v6775_v7, %s5322_s15  ;;  %v7309_v60 = vpop.eup %5005  ;;  %vm7312_vm14 = vcmp.lt.f32.partialorder %v2358_v50, 0.0004427343  ;;  %v2478_v42 = vadd.f32 %v2342_v57, %v2222_v51  ;;  %v2403_v7 = vand.u32 2147483647, %v7175_v4  ;;  %v2366_v47 = vmul.f32 %v7163_v14, %v2365_v62 }
 0x3be   : > { %v2360_v19 = vsel %vm7312_vm14, %v2357_v1, %v2354_v5  ;;  %v2345_v25 = vmul.f32 0.6931472, %v5000_v24  ;;  %v2399_v53 = vmul.f32 0.6931472, %v5002_v44  ;;  %vm2238_vm15 = vcmp.ne.f32.partialorder %v7006_v41, %v7006_v41  ;;  %v8996_v44 = vld [vmem:[#allocation45_spill] sm:$0xff] }
 0x3bf   : > { %v5008_v36 = vpop.eup %5007  ;;  %v2348_v50 = vmul.f32 %v7170_v0, %v2347_v37  ;;  %vm7325_vm0 = vcmp.lt.f32.partialorder %v2349_v11, 0.0004427343  ;;  %vm7329_vm3 = vcmp.lt.f32.partialorder %v2367_v58, 0.0004427343  ;;  %v2392_v62 = vadd.f32 1.0, %v2391_v35 }
 0x3c0   : > { %2554 = vrot.lane.b32.xlu0 %v1820_v40, %s5320_s10  ;;  %v2369_v14 = vsel %vm7329_vm3, %v2366_v47, %v2363_v6  ;;  %v2402_v24 = vmul.f32 %v7175_v4, %v2401_v22  ;;  %v2373_v0 = vmul.f32 -0.5, %v7227_v13  ;;  %v2480_v5 = vadd.f32 %v2360_v19, %v2224_v20 }
 0x3c1   : > { %2552 = vrot.lane.b32.xlu1 %v1819_v3, %s5320_s10  ;;  %v2494_v57 = vsel %vm2238_vm15, %v7006_v41, %v2478_v42  ;;  %v2394_v58 = vand.u32 2147483647, %v7202_v63  ;;  %vm7341_vm4 = vcmp.lt.f32.partialorder %v2403_v7, 0.0004427343  ;;  %5013 = vpow2.f32 %v7256_v29  ;;  %v7346_v3 = vpop.permute.xlu1 %2080  ;;  %v7360_v29 = vpop.permute.xlu0 %2674 }
 0x3c2   : > { %v2351_v40 = vsel %vm7325_vm0, %v2348_v50, %v2345_v25  ;;  %v2390_v37 = vmul.f32 0.6931472, %v5008_v36  ;;  %v2405_v4 = vsel %vm7341_vm4, %v2402_v24, %v2399_v53  ;;  %v2223_v41 = vmax.f32 %v7031_v26, 0.0  ;;  %v8990_v53 = vld [vmem:[#allocation108_spill] sm:$0xff] }
 0x3c3   : > { %v5010_v20 = vpop.eup %5009  ;;  %v2229_v11 = vmax.f32 %v7052_v39, 0.0  ;;  %vm2240_vm5 = vcmp.ne.f32.partialorder %v7004_v12, %v7004_v12  ;;  %v2481_v42 = vadd.f32 %v2369_v14, %v2225_v17  ;;  %v2574_v36 = vmul.f32 %v8987_v31, %v2494_v57  ;;  %v8995_v57 = vld [vmem:[#allocation85_spill] sm:$0xff]  ;;  %v9072_v31 = vld [vmem:[#allocation111_spill] sm:$0xff] }
 0x3c4   : > { %2982 = vrot.lane.b32.xlu0 %v7080_v46, %s5322_s15  ;;  %v2393_v1 = vmul.f32 %v7202_v63, %v2392_v62  ;;  %v2374_v6 = vadd.f32 1.0, %v2373_v0  ;;  %v2376_v35 = vand.u32 2147483647, %v7227_v13  ;;  %vm937_vm6 = vcmp.ne.f32.partialorder %v8936_v48, %v8936_v48  ;;  %v9001_v62 = vld [vmem:[#allocation109_spill] sm:$0xff] }
 0x3c5   : > { %2556 = vrot.lane.b32.xlu1 %v7276_v10, %s5320_s10  ;;  %vm935_vm7 = vcmp.ne.f32.partialorder %v8937_v8, %v8937_v8  ;;  %v2496_v10 = vsel %vm2240_vm5, %v7004_v12, %v2480_v5  ;;  %v2479_v46 = vadd.f32 %v2351_v40, %v2223_v41  ;;  %vm7372_vm1 = vcmp.lt.f32.partialorder %v2394_v58, 0.0004427343  ;;  %v7391_v47 = vpop.permute.xlu1 %2676  ;;  %v7410_v5 = vpop.permute.xlu0 %2670  ;;  %s5325_s10 = smov 32  }
 0x3c6   : > { %v7365_v22 = vpop.eup %5011  ;;  %v2485_v43 = vadd.f32 %v2405_v4, %v2229_v11  ;;  %vm2241_vm8 = vcmp.ne.f32.partialorder %v7025_v18, %v7025_v18  ;;  %v2396_v63 = vsel %vm7372_vm1, %v2393_v1, %v2390_v37  ;;  %v2372_v7 = vmul.f32 0.6931472, %v5010_v20  ;;  %v8997_v37 = vld [vmem:[#allocation116_spill] sm:$0xff] }
 0x3c7   : > { %v2379_v19 = vadd.f32 1.0, %v7365_v22  ;;  %v2228_v25 = vmax.f32 %v7063_v32, 0.0  ;;  %vm2239_vm9 = vcmp.ne.f32.partialorder %v7031_v26, %v7031_v26  ;;  %v2497_v12 = vsel %vm2241_vm8, %v7025_v18, %v2481_v42 }
 0x3c8   : > { %vm2245_vm10 = vcmp.ne.f32.partialorder %v7052_v39, %v7052_v39  ;;  %2986 = vrot.lane.b32.xlu0 %v7071_v21, %s5322_s15  ;;  %v2576_v50 = vmul.f32 %v8990_v53, %v2496_v10  ;;  %v2590_v51 = vmul.f32 %v2574_v36, %v6431_v23  ;;  %v2375_v14 = vmul.f32 %v7227_v13, %v2374_v6 }
 0x3c9   : > { %2984 = vrot.lane.b32.xlu1 %v7110_v45, %s5322_s15  ;;  %vm7396_vm11 = vcmp.lt.f32.partialorder %v2376_v35, 0.0004427343  ;;  %v2495_v18 = vsel %vm2239_vm9, %v7031_v26, %v2479_v46  ;;  %v2484_v24 = vadd.f32 %v2396_v63, %v2228_v25  ;;  %v2501_v45 = vsel %vm2245_vm10, %v7052_v39, %v2485_v43  ;;  %v7438_v36 = vpop.permute.xlu1 %2672 }
 0x3ca   : > { %5015 = vlog2.f32 %v2379_v19  ;;  %v8993_v21 = vmax.f32 %v8937_v8, 0.0  ;;  %v8994_v0 = vsel %vm7235_vm12, %v7223_v34, %v7210_v2  ;;  %v1139_v13 = vadd.f32 1.0, %v7309_v60  ;;  %v9000_v19 = vld [vmem:[#allocation138_spill] sm:$0xff] }
 0x3cb   : > { %v2577_v58 = vmul.f32 %v8995_v57, %v2497_v12  ;;  %v2378_v26 = vsel %vm7396_vm11, %v2375_v14, %v2372_v7  ;;  %v1157_v39 = vadd.f32 1.0, %v7279_v27  ;;  %5017 = vpow2.f32 %v7253_v9  ;;  %v5014_v2 = vpop.eup %5013  ;;  %v5304_v9 = vld [vmem:[%s5366_s20 + $0x58] sm:$0xff]  ;;  %v9076_v57 = vld [vmem:[#allocation135_spill] sm:$0xff] }
 0x3cc   : > { %v1175_v23 = vadd.f32 %v8994_v0, %v8993_v21  ;;  %v2226_v33 = vmax.f32 %v7085_v54, 0.0  ;;  %vm2244_vm12 = vcmp.ne.f32.partialorder %v7063_v32, %v7063_v32  ;;  %v2592_v34 = vmul.f32 %v2576_v50, %v6429_v59  ;;  %3145 = vperm.xlu0 %4563, %v2590_v51   ;;  %v9002_v0 = vld [vmem:[#allocation114_spill] sm:$0xff] }
 0x3cd   : > { %2988 = vrot.lane.b32.xlu1 %v7089_v15, %s5322_s15  ;;  %v2575_v40 = vmul.f32 %v8996_v44, %v2495_v18  ;;  %v2581_v4 = vmul.f32 %v8997_v37, %v2501_v45  ;;  %v2382_v20 = vmul.f32 -0.5, %v7365_v22  ;;  %5019 = vlog2.f32 %v7248_v28  ;;  %v7461_v14 = vpop.permute.xlu1 %2092  ;;  %s8466_s15 = scalar_lea.vmem %s8506_s3, %s4220_s17 }
 0x3ce   : > { %v1844_v41 = vmul.f32 1.442695, %v5304_v9  ;;  %v2500_v11 = vsel %vm2244_vm12, %v7063_v32, %v2484_v24  ;;  %v2482_v42 = vadd.f32 %v2378_v26, %v2226_v33  ;;  %v1193_v59 = vsel %vm937_vm6, %v8936_v48, %v7233_v38  ;;  %v5305_v32 = vld [vmem:[%s5366_s20 + $0x48] sm:$0xff]  ;;  %v7445_v48 = vpop.permute.xlu0 %2090  ;;  %v9003_v26 = vld [vmem:[#allocation113_spill] sm:$0xff] }
 0x3cf   : > { %v1191_v15 = vsel %vm935_vm7, %v8937_v8, %v1175_v23  ;;  %5021 = vlog2.f32 %v1139_v13  ;;  %v2593_v28 = vmul.f32 %v2577_v58, %v6508_v52  ;;  %v1133_v1 = vmul.f32 -0.5, %v8950_v49  ;;  %v8998_v8 = vld [vmem:[#allocation98_spill] sm:$0xff] }
 0x3d0   : > { %5023 = vlog2.f32 %v1157_v39  ;;  %v1840_v6 = vmul.f32 1.442695, %v5305_v32  ;;  %vm2242_vm13 = vcmp.ne.f32.partialorder %v7085_v54, %v7085_v54  ;;  %v2591_v38 = vmul.f32 %v2575_v40, %v6510_v61  ;;  %v5306_v13 = vld [vmem:[%s5366_s20 + $0x60] sm:$0xff]  ;;  %v9011_v32 = vld [vmem:[#allocation131_spill] sm:$0xff] }
 0x3d1   : > { %3155 = vperm.xlu1 %4562, %v2592_v34   ;;  %3160 = vperm.xlu0 %4563, %v2593_v28   ;;  %v2580_v35 = vmul.f32 %v8998_v8, %v2500_v11  ;;  %v2597_v10 = vmul.f32 %v2581_v4, %v6589_v16  ;;  %v2383_v46 = vadd.f32 1.0, %v2382_v20  ;;  %v7450_v52 = vadd.f32 1e-06, %v1193_v59  ;;  %v9004_v34 = vld [vmem:[#allocation97_spill] sm:$0xff]  ;;  %v9027_v59 = vld [vmem:[#allocation80_spill] sm:$0xff] }
 0x3d2   : > { %5025 = vpow2.f32 %v1844_v41  ;;  %v2498_v17 = vsel %vm2242_vm13, %v7085_v54, %v2482_v42  ;;  %v2385_v43 = vand.u32 2147483647, %v7365_v22  ;;  %v7454_v63 = vadd.f32 1e-06, %v1191_v15  ;;  %v9009_v15 = vld [vmem:[#allocation110_spill] sm:$0xff] }
 0x3d3   : > { %v1151_v7 = vmul.f32 -0.5, %v7213_v56  ;;  %v922_v25 = vmax.f32 %v9000_v19, 0.0  ;;  %v1136_v61 = vand.u32 2147483647, %v8950_v49  ;;  %v1154_v16 = vand.u32 2147483647, %v7213_v56 }
 0x3d4   : > { %8999 = vst [vmem:[#allocation145_spill] sm:$0xff] %v7454_v63  ;;  %v5016_v12 = vpop.eup %5015  ;;  %v1134_v50 = vadd.f32 1.0, %v1133_v1  ;;  %v1142_v51 = vmul.f32 -0.5, %v7309_v60  ;;  %5027 = vpow2.f32 %v1840_v6  ;;  %v2596_v54 = vmul.f32 %v2580_v35, %v6552_v55  ;;  %v7474_v55 = vpop.permute.xlu0 %2086  ;;  %v9010_v1 = vld [vmem:[#allocation91_spill] sm:$0xff] }
 0x3d5   : > { %3150 = vperm.xlu1 %4562, %v2591_v38   ;;  %3180 = vperm.xlu0 %4563, %v2597_v10   ;;  %v2578_v18 = vmul.f32 %v9001_v62, %v2498_v17  ;;  %v2381_v24 = vmul.f32 0.6931472, %v5016_v12  ;;  %v2384_v45 = vmul.f32 %v7365_v22, %v2383_v46  ;;  %v5018_v21 = vpop.eup %5017  ;;  %v1928_v23 = vmul.f32 %v5014_v2, %v9002_v0  ;;  %v9012_v38 = vld [vmem:[#allocation121_spill] sm:$0xff]  ;;  %v5307_v10 = vld [vmem:[%s5366_s20 + $0x68] sm:$0xff]  ;;  %v7497_v12 = vpop.permute.xlu1 %2088 }
 0x3d6   : > { %v1846_v58 = vmul.f32 1.442695, %v5306_v13  ;;  %v2227_v39 = vmax.f32 %v9003_v26, 0.0  ;;  %vm2386_vm14 = vcmp.lt.f32.partialorder %v2385_v43, 0.0004427343  ;;  %v1152_v33 = vadd.f32 1.0, %v1151_v7 }
 0x3d7   : > { %v1132_v40 = vmul.f32 0.6931472, %v9004_v34  ;;  %vm7470_vm15 = vcmp.lt.f32.partialorder %v1136_v61, 0.0004427343  ;;  %v2387_v20 = vsel %vm2386_vm14, %v2384_v45, %v2381_v24  ;;  %v5020_v22 = vpop.eup %5019  ;;  %v1135_v9 = vmul.f32 %v8950_v49, %v1134_v50  ;;  %v9014_v45 = vld [vmem:[#allocation141_spill] sm:$0xff]  ;;  %v9016_v13 = vld [vmem:[#allocation118_spill] sm:$0xff] }
 0x3d8   : > { %v1160_v2 = vmul.f32 -0.5, %v7279_v27  ;;  %v1143_v41 = vadd.f32 1.0, %v1142_v51  ;;  %v2483_v11 = vadd.f32 %v2387_v20, %v2227_v39  ;;  %vm7478_vm0 = vcmp.lt.f32.partialorder %v1154_v16, 0.0004427343  ;;  %v9013_v16 = vld [vmem:[#allocation100_spill] sm:$0xff]  ;;  %v9015_v0 = vld [vmem:[#allocation105_spill] sm:$0xff]  ;;  %v7508_v34 = vpop.permute.xlu0 %2682 }
 0x3d9   : > { %v5022_v42 = vpop.eup %5021  ;;  %vm938_vm3 = vcmp.ne.f32.partialorder %v9000_v19, %v9000_v19  ;;  %v1926_v28 = vmul.f32 %v5018_v21, %v9009_v15  ;;  %5029 = vrcp.f32 %v9010_v1  ;;  %3175 = vperm.xlu1 %4562, %v2596_v54   ;;  %v2594_v49 = vmul.f32 %v2578_v18, %v9011_v32  ;;  %v5308_v18 = vld [vmem:[%s5366_s20 + $0x78] sm:$0xff]  ;;  %v9020_v15 = vld [vmem:[#allocation119_spill] sm:$0xff] }
 0x3da   : > { %vm2243_vm4 = vcmp.ne.f32.partialorder %v9003_v26, %v9003_v26  ;;  %v5024_v6 = vpop.eup %5023  ;;  %v7490_v35 = vsub.f32 %v1928_v23, %v9012_v38  ;;  %v1848_v46 = vmul.f32 1.442695, %v5307_v10  ;;  %5031 = vpow2.f32 %v1846_v58  ;;  %v9021_v38 = vld [vmem:[#allocation82_spill] sm:$0xff] }
 0x3db   : > { %v2499_v17 = vsel %vm2243_vm4, %v9003_v26, %v2483_v11  ;;  %v1150_v43 = vmul.f32 0.6931472, %v5020_v22  ;;  %v1138_v7 = vsel %vm7470_vm15, %v1135_v9, %v1132_v40  ;;  %v1145_v61 = vand.u32 2147483647, %v7309_v60  ;;  %v5309_v26 = vld [vmem:[%s5366_s20 + $0x70] sm:$0xff]  ;;  %v9017_v40 = vld [vmem:[#allocation94_spill] sm:$0xff] }
 0x3dc   : > { %v2579_v50 = vmul.f32 %v9013_v16, %v2499_v17  ;;  %v5026_v51 = vpop.eup %5025  ;;  %v1141_v54 = vmul.f32 0.6931472, %v5022_v42  ;;  %v1852_v24 = vmul.f32 1.442695, %v5308_v18  ;;  %v2120_v21 = vadd.f32 %v9014_v45, %v7490_v35  ;;  %v7548_v18 = vpop.permute.xlu0 %2678  ;;  %v9033_v42 = vld [vmem:[#allocation123_spill] sm:$0xff] }
 0x3dd   : > { %5033 = vrcp.f32 %v9015_v0  ;;  %v1161_v23 = vadd.f32 1.0, %v1160_v2  ;;  %v7505_v58 = vsub.f32 %v1926_v28, %v9016_v13  ;;  %v1850_v39 = vmul.f32 1.442695, %v5309_v26  ;;  %3165 = vperm.xlu1 %4562, %v2594_v49   ;;  %v9030_v26 = vld [vmem:[#allocation122_spill] sm:$0xff] }
 0x3de   : > { %v2595_v4 = vmul.f32 %v2579_v50, %v9017_v40  ;;  %v5028_v20 = vpop.eup %5027  ;;  %v1178_v22 = vadd.f32 %v1138_v7, %v922_v25  ;;  %v1163_v9 = vand.u32 2147483647, %v7279_v27  ;;  %v1144_v11 = vmul.f32 %v7309_v60, %v1143_v41  ;;  %v7529_v7 = vpop.permute.xlu1 %2684  ;;  %v9031_v40 = vld [vmem:[#allocation117_spill] sm:$0xff] }
 0x3df   : > { %5035 = vpow2.f32 %v1848_v46  ;;  %v1159_v2 = vmul.f32 0.6931472, %v5024_v6  ;;  %vm7515_vm5 = vcmp.lt.f32.partialorder %v1145_v61, 0.0004427343  ;;  %v1929_v28 = vmul.f32 %v5026_v51, %v9020_v15  ;;  %v9022_v6 = vld [vmem:[#allocation112_spill] sm:$0xff]  ;;  %v9023_v46 = vld [vmem:[#allocation115_spill] sm:$0xff] }
 0x3e0   : > { %v2118_v32 = vadd.f32 %v7317_v30, %v7505_v58  ;;  %3170 = vperm.xlu0 %4563, %v2595_v4   ;;  %v1153_v49 = vmul.f32 %v7213_v56, %v1152_v33  ;;  %v1147_v25 = vsel %vm7515_vm5, %v1144_v11, %v1141_v54  ;;  %5037 = vpow2.f32 %v1852_v24  ;;  %v9026_v51 = vld [vmem:[#allocation125_spill] sm:$0xff]  ;;  %v9037_v33 = vld [vmem:[#allocation127_spill] sm:$0xff] }
 0x3e1   : > { %v2200_v60 = vmul.f32 %v9021_v38, %v2120_v21  ;;  %v1162_v41 = vmul.f32 %v7279_v27, %v1161_v23  ;;  %v923_v10 = vmax.f32 %v9022_v6, 0.0  ;;  %v1927_v17 = vmul.f32 %v5028_v20, %v9023_v46  ;;  %v9029_v21 = vld [vmem:[#allocation92_spill] sm:$0xff] }
 0x3e2   : > { %5039 = vpow2.f32 %v1850_v39  ;;  %v1156_v30 = vsel %vm7478_vm0, %v1153_v49, %v1150_v43  ;;  %v1194_v56 = vsel %vm938_vm3, %v9000_v19, %v1178_v22  ;;  %vm7537_vm6 = vcmp.lt.f32.partialorder %v1163_v9, 0.0004427343  ;;  %v9028_v19 = vld [vmem:[#allocation99_spill] sm:$0xff]  ;;  %v7570_v49 = vpop.permute.xlu1 %2680 }
 0x3e3   : > { %5041 = vrcp.f32 %v7450_v52  ;;  %v5030_v27 = vpop.eup %5029  ;;  %v1165_v61 = vsel %vm7537_vm6, %v1162_v41, %v1159_v2  ;;  %v1179_v50 = vadd.f32 %v1147_v25, %v923_v10  ;;  %v7545_v54 = vsub.f32 %v1929_v28, %v9026_v51  ;;  %v9034_v41 = vld [vmem:[#allocation83_spill] sm:$0xff]  ;;  %v7578_v10 = vpop.permute.xlu0 %2962 }
 0x3e4   : > { %v2198_v43 = vmul.f32 %v9027_v59, %v2118_v32  ;;  %v5032_v24 = vpop.eup %5031  ;;  %v924_v45 = vmax.f32 %v9028_v19, 0.0  ;;  %v925_v23 = vmax.f32 %v9029_v21, 0.0  ;;  %v7552_v13 = vmul.f32 %v5030_v27, %v2200_v60  ;;  %9035 = vst [vmem:[#allocation77_spill] sm:$0xff] %v7578_v10  ;;  %v9071_v10 = vld [vmem:[#allocation104_spill] sm:$0xff] }
 0x3e5   : > { %5043 = vrcp.f32 %v7454_v63  ;;  %v7556_v39 = vsub.f32 %v1927_v17, %v9030_v26  ;;  %v2121_v4 = vadd.f32 %v9031_v40, %v7545_v54  ;;  %v7560_v9 = vadd.f32 1e-06, %v1194_v56 }
 0x3e6   : > { %v1180_v22 = vadd.f32 %v1156_v30, %v924_v45  ;;  %v1181_v11 = vadd.f32 %v1165_v61, %v925_v23  ;;  %vm939_vm7 = vcmp.ne.f32.partialorder %v9022_v6, %v9022_v6  ;;  %v1930_v15 = vmul.f32 %v5032_v24, %v9033_v42  ;;  %v9038_v61 = vld [vmem:[#allocation129_spill] sm:$0xff]  ;;  %v7597_v40 = vpop.permute.xlu1 %2964 }
 0x3e7   : > { %v5034_v20 = vpop.eup %5033  ;;  %9032 = vst [vmem:[#allocation137_spill] sm:$0xff] %v7560_v9  ;;  %v1195_v2 = vsel %vm939_vm7, %v9022_v6, %v1179_v50  ;;  %v2119_v32 = vadd.f32 %v7346_v3, %v7556_v39  ;;  %v2280_v60 = vand.u32 2147483647, %v7552_v13  ;;  %vm940_vm1 = vcmp.ne.f32.partialorder %v9028_v19, %v9028_v19  ;;  %9041 = vst [vmem:[#allocation128_spill] sm:$0xff] %v7597_v40  ;;  %v9067_v40 = vld [vmem:[#allocation44_spill] sm:$0xff] }
 0x3e8   : > { %v7566_v28 = vmul.f32 %v5034_v20, %v2198_v43  ;;  %vm941_vm8 = vcmp.ne.f32.partialorder %v9029_v21, %v9029_v21  ;;  %v2201_v6 = vmul.f32 %v9034_v41, %v2121_v4  ;;  %v1196_v17 = vsel %vm940_vm1, %v9028_v19, %v1180_v22  ;;  %v9039_v43 = vld [vmem:[#allocation81_spill] sm:$0xff]  ;;  %v9043_v22 = vld [vmem:[#allocation126_spill] sm:$0xff] }
 0x3e9   : > { %v5036_v25 = vpop.eup %5035  ;;  %v1197_v3 = vsel %vm941_vm8, %v9029_v21, %v1181_v11  ;;  %v7582_v30 = vadd.f32 1e-06, %v1195_v2  ;;  %5045 = vrcp.f32 %v7560_v9  ;;  %v7587_v50 = vsub.f32 %v1930_v15, %v9038_v61  ;;  %v9044_v2 = vld [vmem:[#allocation130_spill] sm:$0xff]  ;;  %v9045_v15 = vld [vmem:[#allocation133_spill] sm:$0xff]  ;;  %v9048_v61 = vld [vmem:[#allocation132_spill] sm:$0xff] }
 0x3ea   : > { %v5038_v46 = vpop.eup %5037  ;;  %v1931_v27 = vmul.f32 %v5036_v25, %v9037_v33  ;;  %v2278_v51 = vand.u32 2147483647, %v7566_v28  ;;  %v2199_v24 = vmul.f32 %v9039_v43, %v2119_v32  ;;  %v2296_v23 = vsub.f32 0.0, %v2280_v60 }
 0x3eb   : > { %9036 = vst [vmem:[#allocation120_spill] sm:$0xff] %v7582_v30  ;;  %v7591_v26 = vadd.f32 1e-06, %v1196_v17  ;;  %v2122_v21 = vadd.f32 %v7474_v55, %v7587_v50  ;;  %v7599_v20 = vadd.f32 1e-06, %v1197_v3  ;;  %5047 = vrcp.f32 %v7582_v30  ;;  %v9047_v3 = vld [vmem:[#allocation134_spill] sm:$0xff] }
 0x3ec   : > { %v5040_v56 = vpop.eup %5039  ;;  %v1933_v42 = vmul.f32 %v5038_v46, %v9044_v2  ;;  %v7605_v32 = vsub.f32 %v1931_v27, %v9045_v15  ;;  %v2294_v25 = vsub.f32 0.0, %v2278_v51  ;;  %v2322_v55 = vmul.f32 1.442695, %v2296_v23  ;;  %v9049_v27 = vld [vmem:[#allocation136_spill] sm:$0xff]  ;;  %v7624_v23 = vpop.permute.xlu1 %2960  ;;  %v9051_v2 = vld [vmem:[#allocation42_spill] sm:$0xff] }
 0x3ed   : > { %v5042_v45 = vpop.eup %5041  ;;  %9040 = vst [vmem:[#allocation124_spill] sm:$0xff] %v7591_v26  ;;  %9042 = vst [vmem:[#allocation18_spill] sm:$0xff] %v7599_v20  ;;  %v1932_v11 = vmul.f32 %v5040_v56, %v9043_v22  ;;  %5049 = vrcp.f32 %v7591_v26  ;;  %v2202_v33 = vmul.f32 %v9047_v3, %v2122_v21  ;;  %v9075_v30 = vld [vmem:[#allocation102_spill] sm:$0xff]  ;;  %vm2248_vm11 = vcmp.ne.f32.partialorder %v7552_v13, %v7552_v13 }
 0x3ee   : > { %v7593_v19 = vmul.f32 %v5042_v45, %v2201_v6  ;;  %v7609_v6 = vpop.permute.xlu0 %2958  ;;  %v2123_v56 = vadd.f32 %v7497_v12, %v7605_v32  ;;  %5051 = vrcp.f32 %v7599_v20  ;;  %v7621_v51 = vsub.f32 %v1933_v42, %v9049_v27  ;;  %9050 = vst [vmem:[#allocation96_spill] sm:$0xff] %v7624_v23  ;;  %v9053_v27 = vld [vmem:[#allocation139_spill] sm:$0xff]  ;;  %v9063_v23 = vld [vmem:[#allocation88_spill] sm:$0xff] }
 0x3ef   : > { %v5044_v4 = vpop.eup %5043  ;;  %9046 = vst [vmem:[#allocation22_spill] sm:$0xff] %v7609_v6  ;;  %v7617_v46 = vsub.f32 %v1932_v11, %v9048_v61  ;;  %5053 = vpow2.f32 %v2322_v55  ;;  %v9054_v55 = vld [vmem:[#allocation144_spill] sm:$0xff]  ;;  %v2707_v53 = vadd.f32 %v9076_v57, %v9075_v30  ;;  %v9081_v57 = vld [vmem:[#allocation74_spill] sm:$0xff]  ;;  %vm2246_vm13 = vcmp.ne.f32.partialorder %v7566_v28, %v7566_v28 }
 0x3f0   : > { %v7607_v60 = vmul.f32 %v5044_v4, %v2199_v24  ;;  %v2281_v17 = vand.u32 2147483647, %v7593_v19  ;;  %v2318_v24 = vmul.f32 1.442695, %v2294_v25  ;;  %v2125_v12 = vadd.f32 %v7461_v14, %v7621_v51 }
 0x3f1   : > { %v2124_v21 = vadd.f32 %v7445_v48, %v7617_v46  ;;  %v2203_v15 = vmul.f32 %v9051_v2, %v2123_v56  ;;  %vm2249_vm15 = vcmp.ne.f32.partialorder %v7593_v19, %v7593_v19 }
 0x3f2   : > { %v2279_v45 = vand.u32 2147483647, %v7607_v60  ;;  %v2297_v22 = vsub.f32 0.0, %v2281_v17  ;;  %v7633_v42 = vpop.permute.xlu0 %2970  ;;  %5055 = vpow2.f32 %v2318_v24  ;;  %v2205_v16 = vmul.f32 %v9054_v55, %v2125_v12  ;;  %v9060_v12 = vld [vmem:[#allocation86_spill] sm:$0xff] }
 0x3f3   : > { %v5046_v4 = vpop.eup %5045  ;;  %9052 = vst [vmem:[#allocation46_spill] sm:$0xff] %v7633_v42  ;;  %v2204_v20 = vmul.f32 %v9053_v27, %v2124_v21  ;;  %vm2247_vm0 = vcmp.ne.f32.partialorder %v7607_v60, %v7607_v60 }
 0x3f4   : > { %v7630_v11 = vmul.f32 %v5046_v4, %v2202_v33  ;;  %v2295_v25 = vsub.f32 0.0, %v2279_v45  ;;  %v2324_v26 = vmul.f32 1.442695, %v2297_v22 }
 0x3f5   : > { %v5048_v61 = vpop.eup %5047 }
 0x3f6   : > { %v2282_v48 = vand.u32 2147483647, %v7630_v11  ;;  %v7638_v17 = vmul.f32 %v5048_v61, %v2203_v15  ;;  %v7640_v62 = vpop.permute.xlu1 %2972  ;;  %v2320_v33 = vmul.f32 1.442695, %v2295_v25  ;;  %5057 = vpow2.f32 %v2324_v26  ;;  %v9061_v15 = vld [vmem:[#allocation90_spill] sm:$0xff] }
 0x3f7   : > { %9056 = vst [vmem:[#allocation23_spill] sm:$0xff] %v7640_v62  ;;  %v5050_v14 = vpop.eup %5049  ;;  %v2704_v61 = vadd.f32 %v9061_v15, %v9060_v12  ;;  %v9068_v12 = vld [vmem:[#allocation95_spill] sm:$0xff]  ;;  %v9069_v15 = vld [vmem:[#allocation84_spill] sm:$0xff]  ;;  %vm2250_vm5 = vcmp.ne.f32.partialorder %v7630_v11, %v7630_v11 }
 0x3f8   : > { %9055 = vst [vmem:[#allocation19_spill] sm:$0xff] %v7638_v17  ;;  %v5052_v56 = vpop.eup %5051  ;;  %v7644_v42 = vmul.f32 %v5050_v14, %v2204_v20  ;;  %v2298_v45 = vsub.f32 0.0, %v2282_v48  ;;  %v2283_v21 = vand.u32 2147483647, %v7638_v17  ;;  %5059 = vpow2.f32 %v2320_v33  ;;  %v9065_v20 = vld [vmem:[#allocation43_spill] sm:$0xff]  ;;  %v9066_v14 = vld [vmem:[#allocation93_spill] sm:$0xff] }
 0x3f9   : > { %v7642_v4 = vpop.permute.xlu0 %2966  ;;  %v7646_v24 = vmul.f32 %v5052_v56, %v2205_v16  ;;  %v7649_v22 = vpop.eup %5053  ;;  %v2702_v26 = vadd.f32 %v9066_v14, %v9065_v20  ;;  %v2703_v33 = vadd.f32 %v9068_v12, %v9067_v40  ;;  %v9073_v20 = vld [vmem:[#allocation106_spill] sm:$0xff]  ;;  %v9074_v14 = vld [vmem:[#allocation101_spill] sm:$0xff]  ;;  %v9079_v17 = vld [vmem:[#allocation59_spill] sm:$0xff] }
 0x3fa   : > { %9057 = vst [vmem:[#allocation20_spill] sm:$0xff] %v7642_v4  ;;  %9058 = vst [vmem:[#allocation24_spill] sm:$0xff] %v7644_v42  ;;  %v9064_v4 = vld [vmem:[#allocation89_spill] sm:$0xff]  ;;  %v2284_v16 = vand.u32 2147483647, %v7644_v42  ;;  %v2299_v8 = vsub.f32 0.0, %v2283_v21  ;;  %v2706_v42 = vadd.f32 %v9074_v14, %v9073_v20 }
 0x3fb   : > { %9059 = vst [vmem:[#allocation107_spill] sm:$0xff] %v7646_v24  ;;  %v2705_v37 = vadd.f32 %v9064_v4, %v9063_v23  ;;  %v2285_v56 = vand.u32 2147483647, %v7646_v24  ;;  %v2326_v6 = vmul.f32 1.442695, %v2298_v45  ;;  %v2709_v23 = vadd.f32 %v9072_v31, %v9071_v10  ;;  %v9077_v24 = vld [vmem:[#allocation61_spill] sm:$0xff] }
 0x3fc   : > { %v7660_v48 = vpop.eup %5055  ;;  %v2424_v4 = vadd.f32 1.0, %v7649_v22  ;;  %v2720_v45 = vmul.f32 %v2704_v61, %v9077_v24  ;;  %v2300_v63 = vsub.f32 0.0, %v2284_v16  ;;  %v9078_v40 = vld [vmem:[#allocation66_spill] sm:$0xff]  ;;  %v2712_v31 = vadd.f32 %v7360_v29, %v7490_v35  ;;  %v9080_v14 = vld [vmem:[#allocation60_spill] sm:$0xff]  ;;  %v9082_v24 = vld [vmem:[#allocation79_spill] sm:$0xff] }
 0x3fd   : > { %v7653_v62 = vpop.permute.xlu1 %2968  ;;  %v2755_v25 = vpop.permute.xlu0 %2754  ;;  %v2721_v12 = vmul.f32 %v2705_v37, %v9078_v40  ;;  %v2301_v10 = vsub.f32 0.0, %v2285_v56  ;;  %5061 = vpow2.f32 %v2326_v6  ;;  %v2328_v20 = vmul.f32 1.442695, %v2299_v8  ;;  %v9083_v35 = vld [vmem:[#allocation69_spill] sm:$0xff]  ;;  %v9084_v8 = vld [vmem:[#allocation72_spill] sm:$0xff] }
 0x3fe   : > { %9062 = vst [vmem:[#allocation87_spill] sm:$0xff] %v7653_v62  ;;  %v9070_v62 = vld [vmem:[#allocation103_spill] sm:$0xff]  ;;  %v2719_v0 = vmul.f32 %v2703_v33, %v9080_v14  ;;  %v2725_v61 = vmul.f32 %v2709_v23, %v9082_v24  ;;  %5063 = vlog2.f32 %v2424_v4  ;;  %v2713_v37 = vadd.f32 %v7391_v47, %v7545_v54 }
 0x3ff   : > { %v2708_v44 = vadd.f32 %v9070_v62, %v9069_v15  ;;  %v2718_v62 = vmul.f32 %v2702_v26, %v9079_v17  ;;  %v2406_v15 = vadd.f32 1.0, %v7660_v48  ;;  %v2710_v17 = vadd.f32 %v7410_v5, %v7505_v58 }
 0x400   : > { %v7683_v16 = vpop.eup %5057  ;;  %v7690_v6 = vmul.f32 %v2706_v42, %v9083_v35  ;;  %v7693_v56 = vmul.f32 %v2707_v53, %v9084_v8  ;;  %v2330_v33 = vmul.f32 1.442695, %v2300_v63  ;;  %v2232_v23 = vmax.f32 %v7552_v13, 0.0 }
 0x401   : > { %v2757_v21 = vpop.permute.xlu1 %2756  ;;  %v2751_v9 = vpop.permute.xlu0 %2750  ;;  %v2724_v30 = vmul.f32 %v2708_v44, %v9081_v57  ;;  %v2711_v44 = vadd.f32 %v7438_v36, %v7556_v39  ;;  %5065 = vlog2.f32 %v2406_v15  ;;  %v2332_v47 = vmul.f32 1.442695, %v2301_v10 }
 0x402   : > { %v7698_v4 = vpop.eup %5059  ;;  %5067 = vpow2.f32 %v2328_v20  ;;  %v7700_v5 = vmul.f32 %v2755_v25, %v2720_v45  ;;  %v7703_v58 = vmul.f32 %v2712_v31, %v9021_v38  ;;  %v7705_v54 = vmul.f32 %v2757_v21, %v2721_v12 }
 0x403   : > { %v2230_v53 = vmax.f32 %v7566_v28, 0.0  ;;  %v2233_v42 = vmax.f32 %v7593_v19, 0.0  ;;  %v2433_v36 = vadd.f32 1.0, %v7683_v16  ;;  %v7711_v40 = vmul.f32 %v2713_v37, %v9034_v41 }
 0x404   : > { %v7714_v15 = vmul.f32 %v2710_v17, %v9027_v59  ;;  %v2427_v25 = vmul.f32 -0.5, %v7649_v22  ;;  %v2430_v38 = vand.u32 2147483647, %v7649_v22  ;;  %5069 = vpow2.f32 %v2330_v33 }
 0x405   : > { %v2753_v26 = vpop.permute.xlu1 %2752  ;;  %v2763_v29 = vpop.permute.xlu0 %2762  ;;  %v2716_v45 = vadd.f32 %v7508_v34, %v7617_v46  ;;  %v7721_v21 = vmul.f32 %v2711_v44, %v9039_v43  ;;  %v2415_v12 = vadd.f32 1.0, %v7698_v4  ;;  %5071 = vpow2.f32 %v2332_v47 }
 0x406   : > { %v2717_v41 = vadd.f32 %v7529_v7, %v7621_v51  ;;  %v4288_v59 = vmul.f32 -1.442695, %v7700_v5  ;;  %v7727_v31 = vmul.f32 %v2751_v9, %v2718_v62  ;;  %v2714_v10 = vadd.f32 %v7548_v18, %v7587_v50 }
 0x407   : > { %v4289_v20 = vmul.f32 -1.442695, %v7705_v54  ;;  %v2409_v34 = vmul.f32 -0.5, %v7660_v48  ;;  %5073 = vlog2.f32 %v2433_v36  ;;  %v7733_v43 = vpop.eup %5061  ;;  %v2231_v57 = vmax.f32 %v7607_v60, 0.0 }
 0x408   : > { %v2418_v7 = vmul.f32 -0.5, %v7698_v4  ;;  %v2428_v51 = vadd.f32 1.0, %v2427_v25  ;;  %vm7737_vm9 = vcmp.lt.f32.partialorder %v2430_v38, 0.0004427343  ;;  %v5064_v62 = vpop.eup %5063  ;;  %v2715_v18 = vadd.f32 %v7570_v49, %v7605_v32 }
 0x409   : > { %v2765_v63 = vpop.permute.xlu1 %2764  ;;  %v2759_v39 = vpop.permute.xlu0 %2758  ;;  %v7743_v50 = vmul.f32 %v2753_v26, %v2719_v0  ;;  %v7746_v24 = vmul.f32 %v2716_v45, %v9053_v27  ;;  %5075 = vlog2.f32 %v2415_v12  ;;  %v4286_v37 = vmul.f32 -1.442695, %v7727_v31 }
 0x40a   : > { %5077 = vpow2.f32 %v4288_v59  ;;  %v7749_v17 = vmul.f32 %v2763_v29, %v2724_v30  ;;  %v7752_v35 = vmul.f32 %v2717_v41, %v9054_v55  ;;  %v7755_v44 = vmul.f32 %v2714_v10, %v9047_v3 }
 0x40b   : > { %v5066_v8 = vpop.eup %5065  ;;  %5079 = vpow2.f32 %v4289_v20  ;;  %v2410_v49 = vadd.f32 1.0, %v2409_v34  ;;  %v2442_v0 = vadd.f32 1.0, %v7733_v43  ;;  %v7760_v27 = vmul.f32 %v2765_v63, %v2725_v61 }
 0x40c   : > { %v7758_v32 = vpop.eup %5067  ;;  %v2412_v30 = vand.u32 2147483647, %v7660_v48  ;;  %v2419_v29 = vadd.f32 1.0, %v2418_v7  ;;  %v2426_v47 = vmul.f32 0.6931472, %v5064_v62  ;;  %v7765_v36 = vmul.f32 %v2715_v18, %v9051_v2 }
 0x40d   : > { %v2771_v14 = vpop.permute.xlu0 %2770  ;;  %v4287_v55 = vmul.f32 -1.442695, %v7743_v50  ;;  %v2421_v3 = vand.u32 2147483647, %v7698_v4  ;;  %v2436_v25 = vmul.f32 -0.5, %v7683_v16  ;;  %5081 = vpow2.f32 %v4286_v37 }
 0x40e   : > { %v2761_v46 = vpop.permute.xlu1 %2760  ;;  %v4292_v38 = vmul.f32 -1.442695, %v7749_v17  ;;  %v7771_v61 = vmul.f32 %v2759_v39, %v7690_v6  ;;  %v2429_v63 = vmul.f32 %v7649_v22, %v2428_v51  ;;  %v7774_v45 = vpop.eup %5069  ;;  %v2408_v12 = vmul.f32 0.6931472, %v5066_v8 }
 0x40f   : > { %v2411_v41 = vmul.f32 %v7660_v48, %v2410_v49  ;;  %5083 = vlog2.f32 %v2442_v0  ;;  %v2451_v2 = vadd.f32 1.0, %v7758_v32  ;;  %v7778_v59 = vpop.eup %5071  ;;  %v4293_v10 = vmul.f32 -1.442695, %v7760_v27 }
 0x410   : > { %vm7783_vm10 = vcmp.lt.f32.partialorder %v2412_v30, 0.0004427343  ;;  %v7788_v22 = vmul.f32 %v7698_v4, %v2419_v29  ;;  %v2432_v48 = vsel %vm7737_vm9, %v2429_v63, %v2426_v47  ;;  %5085 = vpow2.f32 %v4287_v55 }
 0x411   : > { %v2767_v33 = vpop.permute.xlu0 %2766  ;;  %v5074_v39 = vpop.eup %5073  ;;  %v7795_v7 = vmul.f32 %v2761_v46, %v7693_v56  ;;  %vm7797_vm12 = vcmp.lt.f32.partialorder %v2421_v3, 0.0004427343  ;;  %v2437_v62 = vadd.f32 1.0, %v2436_v25  ;;  %v2439_v18 = vand.u32 2147483647, %v7683_v16 }
 0x412   : > { %v2773_v26 = vpop.permute.xlu1 %2772  ;;  %5087 = vpow2.f32 %v4292_v38  ;;  %v4290_v4 = vmul.f32 -1.442695, %v7771_v61  ;;  %v7804_v37 = vmul.f32 %v2771_v14, %v7703_v58  ;;  %v2234_v9 = vmax.f32 %v7630_v11, 0.0 }
 0x413   : > { %v5076_v56 = vpop.eup %5075  ;;  %v2414_v46 = vsel %vm7783_vm10, %v2411_v41, %v2408_v12  ;;  %v2488_v8 = vadd.f32 %v2432_v48, %v2232_v23  ;;  %5089 = vlog2.f32 %v2451_v2  ;;  %v2460_v49 = vadd.f32 1.0, %v7774_v45 }
 0x414   : > { %v5078_v0 = vpop.eup %5077  ;;  %5091 = vpow2.f32 %v4293_v10  ;;  %v2435_v14 = vmul.f32 0.6931472, %v5074_v39  ;;  %v2445_v29 = vmul.f32 -0.5, %v7733_v43  ;;  %v2469_v47 = vadd.f32 1.0, %v7778_v59 }
 0x415   : > { %v5080_v55 = vpop.eup %5079  ;;  %v4291_v3 = vmul.f32 -1.442695, %v7795_v7  ;;  %v7820_v25 = vmul.f32 %v2773_v26, %v7711_v40  ;;  %v2438_v23 = vmul.f32 %v7683_v16, %v2437_v62  ;;  %vm7823_vm14 = vcmp.lt.f32.partialorder %v2439_v18, 0.0004427343 }
 0x416   : > { %v2769_v20 = vpop.permute.xlu1 %2768  ;;  %v7781_v34 = vpop.permute.xlu0 %2778  ;;  %5093 = vpow2.f32 %v4290_v4  ;;  %v4296_v63 = vmul.f32 -1.442695, %v7804_v37  ;;  %v7829_v12 = vmul.f32 %v2767_v33, %v7714_v15  ;;  %v2417_v41 = vmul.f32 0.6931472, %v5076_v56 }
 0x417   : > { %v2864_v2 = vadd.f32 1.0, %v5078_v0  ;;  %v2486_v40 = vadd.f32 %v2414_v46, %v2230_v53  ;;  %v2448_v16 = vand.u32 2147483647, %v7733_v43  ;;  %5095 = vlog2.f32 %v2460_v49  ;;  %v5082_v26 = vpop.eup %5081 }
 0x418   : > { %v2865_v10 = vadd.f32 1.0, %v5080_v55  ;;  %v2441_v15 = vsel %vm7823_vm14, %v2438_v23, %v2435_v14  ;;  %v2446_v33 = vadd.f32 1.0, %v2445_v29  ;;  %5097 = vlog2.f32 %v2469_v47 }
 0x419   : > { %v5084_v39 = vpop.eup %5083  ;;  %5099 = vpow2.f32 %v4291_v3  ;;  %v4297_v62 = vmul.f32 -1.442695, %v7820_v25  ;;  %v7842_v18 = vmul.f32 %v2769_v20, %v7721_v21  ;;  %v2504_v53 = vsel %vm2248_vm11, %v7552_v13, %v2488_v8 }
 0x41a   : > { %v7814_v30 = vpop.permute.xlu1 %2780  ;;  %v2775_v58 = vpop.permute.xlu0 %2774  ;;  %5101 = vpow2.f32 %v4296_v63  ;;  %v4294_v4 = vmul.f32 -1.442695, %v7829_v12  ;;  %v2423_v56 = vsel %vm7797_vm12, %v7788_v22, %v2417_v41  ;;  %v2454_v46 = vmul.f32 -0.5, %v7758_v32 }
 0x41b   : > { %v5086_v49 = vpop.eup %5085  ;;  %5103 = vrcp.f32 %v2864_v2  ;;  %v2862_v21 = vadd.f32 1.0, %v5082_v26  ;;  %v2502_v20 = vsel %vm2246_vm13, %v7566_v28, %v2486_v40  ;;  %v2489_v13 = vadd.f32 %v2441_v15, %v2233_v42 }
 0x41c   : > { %v5088_v8 = vpop.eup %5087  ;;  %5105 = vrcp.f32 %v2865_v10  ;;  %v2444_v22 = vmul.f32 0.6931472, %v5084_v39  ;;  %v2447_v51 = vmul.f32 %v7733_v43, %v2446_v33  ;;  %vm7866_vm3 = vcmp.lt.f32.partialorder %v2448_v16, 0.0004427343 }
 0x41d   : > { %v5090_v47 = vpop.eup %5089  ;;  %5107 = vpow2.f32 %v4297_v62  ;;  %v4295_v28 = vmul.f32 -1.442695, %v7842_v18  ;;  %v2487_v42 = vadd.f32 %v2423_v56, %v2231_v57  ;;  %v2863_v23 = vadd.f32 1.0, %v5086_v49 }
 0x41e   : > { %v7836_v48 = vpop.permute.xlu0 %2542  ;;  %v5092_v3 = vpop.eup %5091  ;;  %5109 = vpow2.f32 %v4294_v4  ;;  %v7875_v38 = vmul.f32 %v2775_v58, %v7755_v44  ;;  %v2455_v43 = vadd.f32 1.0, %v2454_v46  ;;  %v2868_v63 = vadd.f32 1.0, %v5088_v8 }
 0x41f   : > { %v2777_v6 = vpop.permute.xlu1 %2776  ;;  %5111 = vrcp.f32 %v2862_v21  ;;  %v2505_v41 = vsel %vm2249_vm15, %v7593_v19, %v2489_v13  ;;  %v2457_v2 = vand.u32 2147483647, %v7758_v32  ;;  %v2582_v57 = vmul.f32 %v7836_v48, %v2502_v20  ;;  %v9095_v20 = vld [vmem:[#allocation105_spill] sm:$0xff] }
 0x420   : > { %v5094_v40 = vpop.eup %5093  ;;  %v2450_v44 = vsel %vm7866_vm3, %v2447_v51, %v2444_v22  ;;  %v2453_v58 = vmul.f32 0.6931472, %v5090_v47  ;;  %v2869_v33 = vadd.f32 1.0, %v5092_v3  ;;  %5113 = vpow2.f32 %v4295_v28  ;;  %v9099_v3 = vld [vmem:[#allocation145_spill] sm:$0xff] }
 0x421   : > { %v7890_v15 = vpop.eup %5095  ;;  %v7893_v19 = vmul.f32 %v2777_v6, %v7765_v36  ;;  %5115 = vrcp.f32 %v2863_v23  ;;  %v2456_v4 = vmul.f32 %v7758_v32, %v2455_v43  ;;  %v2866_v46 = vadd.f32 1.0, %v5094_v40 }
 0x422   : > { %v7863_v14 = vpop.permute.xlu0 %2546  ;;  %v7896_v62 = vpop.eup %5097  ;;  %5117 = vrcp.f32 %v2868_v63  ;;  %v7908_v21 = vmul.f32 %v7781_v34, %v7746_v24  ;;  %v2598_v13 = vmul.f32 %v2582_v57, %v9095_v20  ;;  %v2490_v32 = vadd.f32 %v2450_v44, %v2234_v9  ;;  %v9098_v9 = vld [vmem:[#allocation19_spill] sm:$0xff] }
 0x423   : > { %v7861_v0 = vpop.permute.xlu1 %2544  ;;  %v2584_v55 = vmul.f32 %v7863_v14, %v2504_v53  ;;  %v2503_v53 = vsel %vm2247_vm0, %v7607_v60, %v2487_v42  ;;  %v5100_v56 = vpop.eup %5099  ;;  %vm7917_vm4 = vcmp.lt.f32.partialorder %v2457_v2, 0.0004427343  ;;  %5119 = vrcp.f32 %v2869_v33 }
 0x424   : > { %v2583_v36 = vmul.f32 %v7861_v0, %v2503_v53  ;;  %v5102_v49 = vpop.eup %5101  ;;  %v4299_v24 = vmul.f32 -1.442695, %v7893_v19  ;;  %v2459_v34 = vsel %vm7917_vm4, %v2456_v4, %v2453_v58  ;;  %v2867_v47 = vadd.f32 1.0, %v5100_v56  ;;  %v9101_v4 = vld [vmem:[#allocation108_spill] sm:$0xff] }
 0x425   : > { %v2600_v16 = vmul.f32 %v2584_v55, %v9010_v1  ;;  %v4298_v1 = vmul.f32 -1.442695, %v7875_v38  ;;  %v5104_v51 = vpop.eup %5103  ;;  %v2235_v28 = vmax.f32 %v9098_v9, 0.0  ;;  %v2872_v55 = vadd.f32 1.0, %v5102_v49 }
 0x426   : > { %v7886_v10 = vpop.permute.xlu0 %2974  ;;  %v5106_v29 = vpop.eup %5105  ;;  %v2599_v23 = vmul.f32 %v2583_v36, %v9099_v3  ;;  %v4300_v43 = vmul.f32 -1.442695, %v7908_v21  ;;  %vm2251_vm6 = vcmp.ne.f32.partialorder %v9098_v9, %v9098_v9  ;;  %vm4141_vm10 = vcmask 7168  }
 0x427   : > { %v7884_v26 = vpop.permute.xlu1 %2548  ;;  %3195 = vperm.xlu1 %4562, %v2600_v16   ;;  %5121 = vpow2.f32 %v4298_v1  ;;  %v5108_v42 = vpop.eup %5107  ;;  %v2491_v40 = vadd.f32 %v2459_v34, %v2235_v28  ;;  %v2913_v33 = vmul.f32 %v5106_v29, %v7705_v54  ;;  %v9104_v29 = vld [vmem:[#allocation143_spill] sm:$0xff]  ;;  %v2463_v28 = vmul.f32 -0.5, %v7774_v45 }
 0x428   : > { %v2585_v39 = vmul.f32 %v7884_v26, %v2505_v41  ;;  %5123 = vrcp.f32 %v2866_v46  ;;  %v2506_v41 = vsel %vm2250_vm5, %v7630_v11, %v2490_v32  ;;  %v2873_v58 = vadd.f32 1.0, %v5108_v42  ;;  %v9102_v32 = vld [vmem:[#allocation85_spill] sm:$0xff] }
 0x429   : > { %5125 = vpow2.f32 %v4299_v24  ;;  %v2507_v36 = vsel %vm2251_vm6, %v9098_v9, %v2491_v40  ;;  %v2929_v22 = vmul.f32 %v2913_v33, %v9102_v32  ;;  %v9103_v24 = vld [vmem:[#allocation120_spill] sm:$0xff]  ;;  %v9105_v42 = vld [vmem:[#allocation77_spill] sm:$0xff] }
 0x42a   : > { %v2601_v6 = vmul.f32 %v2585_v39, %v7450_v52  ;;  %v7913_v60 = vpop.permute.xlu0 %2978  ;;  %v7923_v52 = vmul.f32 %v7814_v30, %v7752_v35  ;;  %v5110_v35 = vpop.eup %5109  ;;  %v2912_v30 = vmul.f32 %v5104_v51, %v7700_v5  ;;  %5127 = vrcp.f32 %v2867_v47  ;;  %v9100_v39 = vld [vmem:[#allocation137_spill] sm:$0xff] }
 0x42b   : > { %v7911_v8 = vpop.permute.xlu1 %2976  ;;  %3185 = vperm.xlu1 %4562, %v2598_v13   ;;  %v5112_v57 = vpop.eup %5111  ;;  %5129 = vrcp.f32 %v2872_v55  ;;  %v2870_v11 = vadd.f32 1.0, %v5110_v35  ;;  %v9106_v35 = vld [vmem:[#allocation45_spill] sm:$0xff] }
 0x42c   : > { %3200 = vperm.xlu0 %4563, %v2601_v6   ;;  %v4301_v16 = vmul.f32 -1.442695, %v7923_v52  ;;  %v5114_v5 = vpop.eup %5113  ;;  %v2928_v56 = vmul.f32 %v2912_v30, %v9101_v4  ;;  %v2910_v46 = vmul.f32 %v5112_v57, %v7727_v31  ;;  %5131 = vpow2.f32 %v4300_v43 }
 0x42d   : > { %v5116_v53 = vpop.eup %5115  ;;  %v2871_v54 = vadd.f32 1.0, %v5114_v5  ;;  %v9109_v5 = vld [vmem:[#allocation22_spill] sm:$0xff] }
 0x42e   : > { %v7937_v2 = vpop.permute.xlu0 %2550  ;;  %v5118_v49 = vpop.eup %5117  ;;  %5133 = vpow2.f32 %v4301_v16  ;;  %v2911_v51 = vmul.f32 %v5116_v53, %v7743_v50  ;;  %v2926_v47 = vmul.f32 %v2910_v46, %v9104_v29  ;;  %v3008_v55 = vmul.f32 %v9105_v42, %v2928_v56  ;;  %v9108_v16 = vld [vmem:[#allocation98_spill] sm:$0xff]  ;;  %v9110_v46 = vld [vmem:[#allocation116_spill] sm:$0xff] }
 0x42f   : > { %v7934_v63 = vpop.permute.xlu1 %2980  ;;  %v2586_v44 = vmul.f32 %v7937_v2, %v2506_v41  ;;  %5135 = vrcp.f32 %v2873_v58  ;;  %v5120_v13 = vpop.eup %5119  ;;  %v2916_v9 = vmul.f32 %v5118_v49, %v7749_v17  ;;  %v9107_v41 = vld [vmem:[#allocation128_spill] sm:$0xff]  ;;  %v2464_v58 = vadd.f32 1.0, %v2463_v28 }
 0x430   : > { %3190 = vperm.xlu0 %4563, %v2599_v23   ;;  %5137 = vrcp.f32 %v2870_v11  ;;  %v2927_v30 = vmul.f32 %v2911_v51, %v9106_v35  ;;  %v2917_v50 = vmul.f32 %v5120_v13, %v7760_v27  ;;  %v3009_v40 = vmul.f32 %v9107_v41, %v2929_v22  ;;  %v9112_v13 = vld [vmem:[#allocation109_spill] sm:$0xff] }
 0x431   : > { %v2602_v1 = vmul.f32 %v2586_v44, %v9100_v39  ;;  %v5122_v34 = vpop.eup %5121  ;;  %5139 = vrcp.f32 %v2871_v54  ;;  %v2932_v44 = vmul.f32 %v2916_v9, %v9108_v16  ;;  %v3006_v33 = vmul.f32 %v9109_v5, %v2926_v47 }
 0x432   : > { %v5124_v3 = vpop.eup %5123  ;;  %v2874_v43 = vadd.f32 1.0, %v5122_v34  ;;  %v2466_v39 = vand.u32 2147483647, %v7774_v45  ;;  %v2462_v27 = vmul.f32 0.6931472, %v7890_v15  ;;  %v2465_v51 = vmul.f32 %v7774_v45, %v2464_v58  ;;  %v9117_v45 = vld [vmem:[#allocation100_spill] sm:$0xff] }
 0x433   : > { %v7948_v6 = vpop.permute.xlu1 %2552  ;;  %3205 = vperm.xlu1 %4562, %v2602_v1   ;;  %v5126_v23 = vpop.eup %5125  ;;  %v2914_v17 = vmul.f32 %v5124_v3, %v7771_v61  ;;  %v2472_v1 = vmul.f32 -0.5, %v7778_v59  ;;  %v9111_v61 = vld [vmem:[#allocation96_spill] sm:$0xff]  ;;  %v2471_v3 = vmul.f32 0.6931472, %v7896_v62  ;;  %v9120_v58 = vld [vmem:[#allocation87_spill] sm:$0xff] }
 0x434   : > { %v2587_v20 = vmul.f32 %v7948_v6, %v2507_v36  ;;  %v5128_v57 = vpop.eup %5127  ;;  %v2875_v4 = vadd.f32 1.0, %v5126_v23  ;;  %v2933_v36 = vmul.f32 %v2917_v50, %v9110_v46  ;;  %5141 = vrcp.f32 %v2874_v43  ;;  %v9118_v23 = vld [vmem:[#allocation23_spill] sm:$0xff] }
 0x435   : > { %v5130_v11 = vpop.eup %5129  ;;  %v2915_v49 = vmul.f32 %v5128_v57, %v7795_v7  ;;  %v2930_v32 = vmul.f32 %v2914_v17, %v9112_v13  ;;  %vm7974_vm7 = vcmp.lt.f32.partialorder %v2466_v39, 0.0004427343  ;;  %v2473_v47 = vadd.f32 1.0, %v2472_v1  ;;  %v9116_v7 = vld [vmem:[#allocation24_spill] sm:$0xff] }
 0x436   : > { %v2603_v31 = vmul.f32 %v2587_v20, %v9103_v24  ;;  %v5132_v53 = vpop.eup %5131  ;;  %v3007_v20 = vmul.f32 %v9111_v61, %v2927_v30  ;;  %v2920_v22 = vmul.f32 %v5130_v11, %v7804_v37  ;;  %v9113_v24 = vld [vmem:[#allocation46_spill] sm:$0xff]  ;;  %5143 = vrcp.f32 %v2875_v4 }
 0x437   : > { %3274 = vperm.xlu1 %4562, %v3008_v55   ;;  %v2876_v15 = vadd.f32 1.0, %v5132_v53  ;;  %v2236_v9 = vmax.f32 %v9116_v7, 0.0  ;;  %v2468_v28 = vsel %vm7974_vm7, %v2465_v51, %v2462_v27  ;;  %v2475_v37 = vand.u32 2147483647, %v7778_v59  ;;  %v9123_v51 = vld [vmem:[#allocation18_spill] sm:$0xff] }
 0x438   : > { %3210 = vperm.xlu0 %4563, %v2603_v31   ;;  %v5134_v56 = vpop.eup %5133  ;;  %v3012_v31 = vmul.f32 %v9113_v24, %v2932_v44  ;;  %v2931_v42 = vmul.f32 %v2915_v49, %v9117_v45  ;;  %v3013_v35 = vmul.f32 %v9118_v23, %v2933_v36  ;;  %v2936_v41 = vmul.f32 %v2920_v22, %v7863_v14 }
 0x439   : > { %v5136_v54 = vpop.eup %5135  ;;  %v2877_v50 = vadd.f32 1.0, %v5134_v56  ;;  %5145 = vrcp.f32 %v2876_v15  ;;  %v2474_v16 = vmul.f32 %v7778_v59, %v2473_v47  ;;  %v2492_v44 = vadd.f32 %v2468_v28, %v2236_v9  ;;  %v2555_v59 = vpop.permute.xlu0 %2554 }
 0x43a   : > { %v5138_v34 = vpop.eup %5137  ;;  %v2921_v55 = vmul.f32 %v5136_v54, %v7820_v25  ;;  %vm2476_vm1 = vcmp.lt.f32.partialorder %v2475_v37, 0.0004427343  ;;  %v3011_v5 = vmul.f32 %v9120_v58, %v2931_v42  ;;  %v3016_v14 = vmul.f32 %v7913_v60, %v2936_v41  ;;  %v2557_v56 = vpop.permute.xlu1 %2556  ;;  %v9126_v58 = vld [vmem:[#allocation26_spill] sm:$0xff] }
 0x43b   : > { %3264 = vperm.xlu1 %4562, %v3006_v33   ;;  %v5140_v30 = vpop.eup %5139  ;;  %v2918_v43 = vmul.f32 %v5138_v34, %v7829_v12  ;;  %v2477_v17 = vsel %vm2476_vm1, %v2474_v16, %v2471_v3  ;;  %5147 = vrcp.f32 %v2877_v50  ;;  %v9121_v33 = vld [vmem:[#allocation107_spill] sm:$0xff]  ;;  %vm2252_vm8 = vcmp.ne.f32.partialorder %v9116_v7, %v9116_v7  ;;  %v8031_v50 = vld [vmem:[%s8505_s2 + $0x4] ss:$0 sm:$0xff]  ;;  %v8046_v16 = vld [vmem:[%s8505_s2 + $0x5] ss:$0 sm:$0xff] }
 0x43c   : > { %3279 = vperm.xlu0 %4563, %v3009_v40   ;;  %v9119_v40 = vld [vmem:[#allocation20_spill] sm:$0xff]  ;;  %v2919_v25 = vmul.f32 %v5140_v30, %v7842_v18  ;;  %v2937_v62 = vmul.f32 %v2921_v55, %v7884_v26  ;;  %v2237_v11 = vmax.f32 %v9121_v33, 0.0  ;;  %v2508_v53 = vsel %vm2252_vm8, %v9116_v7, %v2492_v44  ;;  %v9124_v44 = vld [vmem:[#allocation55_spill] sm:$0xff] }
 0x43d   : > { %v3010_v57 = vmul.f32 %v9119_v40, %v2930_v32  ;;  %v2934_v12 = vmul.f32 %v2918_v43, %v7836_v48  ;;  %v2588_v27 = vmul.f32 %v2555_v59, %v2508_v53  ;;  %vm2253_vm9 = vcmp.ne.f32.partialorder %v9121_v33, %v9121_v33  ;;  %v2983_v61 = vpop.permute.xlu0 %2982  ;;  %v8040_v40 = vld [vmem:[%s8505_s2 + $0x3] ss:$0 sm:$0xff]  ;;  %v9131_v53 = vld [vmem:[#allocation5_spill] sm:$0xff] }
 0x43e   : > { %v5142_v39 = vpop.eup %5141  ;;  %v2493_v1 = vadd.f32 %v2477_v17, %v2237_v11  ;;  %v2935_v18 = vmul.f32 %v2919_v25, %v7861_v0  ;;  %v3017_v26 = vmul.f32 %v7934_v63, %v2937_v62  ;;  %v2985_v32 = vpop.permute.xlu1 %2984  ;;  %v3088_v25 = vadd.f32 %v9124_v44, %v8040_v40  ;;  %v9125_v17 = vld [vmem:[#allocation2_spill] sm:$0xff]  ;;  %v9129_v11 = vld [vmem:[#allocation3_spill] sm:$0xff] }
 0x43f   : > { %3294 = vperm.xlu1 %4562, %v3012_v31   ;;  %v2922_v48 = vmul.f32 %v5142_v39, %v7875_v38  ;;  %v3014_v60 = vmul.f32 %v7886_v10, %v2934_v12  ;;  %v9127_v12 = vld [vmem:[#allocation4_spill] sm:$0xff]  ;;  %v9130_v39 = vld [vmem:[#allocation27_spill] sm:$0xff] }
 0x440   : > { %3269 = vperm.xlu0 %4563, %v3007_v20   ;;  %v5144_v4 = vpop.eup %5143  ;;  %v2509_v46 = vsel %vm2253_vm9, %v9121_v33, %v2493_v1  ;;  %v3015_v63 = vmul.f32 %v7911_v8, %v2935_v18  ;;  %v9122_v20 = vld [vmem:[#allocation124_spill] sm:$0xff] }
 0x441   : > { %v2923_v0 = vmul.f32 %v5144_v4, %v7893_v19  ;;  %v2589_v49 = vmul.f32 %v2557_v56, %v2509_v46  ;;  %v2938_v38 = vmul.f32 %v2922_v48, %v7937_v2  ;;  %v2604_v10 = vmul.f32 %v2588_v27, %v9122_v20  ;;  %v2987_v8 = vpop.permute.xlu0 %2986  ;;  %v9132_v4 = vld [vmem:[#allocation29_spill] sm:$0xff]  ;;  %v9134_v27 = vld [vmem:[#allocation30_spill] sm:$0xff] }
 0x442   : > { %v2989_v29 = vpop.permute.xlu1 %2988  ;;  %v615_v48 = vadd.f32 %v9132_v4, %v9131_v53 }
 0x443   : > { %3284 = vperm.xlu1 %4562, %v3010_v57   ;;  %v5146_v36 = vpop.eup %5145  ;;  %v2939_v22 = vmul.f32 %v2923_v0, %v7948_v6  ;;  %v2605_v24 = vmul.f32 %v2589_v49, %v9123_v51  ;;  %v3018_v31 = vmul.f32 %v2983_v61, %v2938_v38  ;;  %v4570_v6 = vld [vmem:[%s8504_s1 + $0x10] ss:$24 sps:$4 sm:$0xff]   ;;  %v9142_v51 = vld [vmem:[#allocation33_spill] sm:$0xff] }
 0x444   : > { %3299 = vperm.xlu0 %4563, %v3013_v35   ;;  %v2924_v13 = vmul.f32 %v5146_v36, %v7908_v21  ;;  %4506 = vmatprep.subr.bf16.mxu0 %v4570_v6  ;;  %v9135_v0 = vld [vmem:[#allocation8_spill] sm:$0xff]  ;;  %v9137_v61 = vld [vmem:[#allocation7_spill] sm:$0xff] }
 0x445   : > { %v5148_v54 = vpop.eup %5147  ;;  %v3019_v2 = vmul.f32 %v2985_v32, %v2939_v22  ;;  %4507 = vmatpush3.bf16.msra.mxu0 %v4570_v6  ;;  %v9138_v38 = vld [vmem:[#allocation31_spill] sm:$0xff]  ;;  %v9141_v22 = vld [vmem:[#allocation9_spill] sm:$0xff] }
 0x446   : > { %v2925_v19 = vmul.f32 %v5148_v54, %v7923_v52  ;;  %v2940_v34 = vmul.f32 %v2924_v13, %v2555_v59  ;;  %v4571_v52 = vld [vmem:[%s8504_s1 + $0x40] ss:$24 sps:$4 sm:$0xff]   ;;  %v614_v59 = vadd.f32 %v9130_v39, %v9129_v11  ;;  %v8071_v20 = vadd.f32 %v9138_v38, %v9137_v61  ;;  %v9147_v6 = vld [vmem:[#allocation11_spill] sm:$0xff] }
 0x447   : > { %3314 = vperm.xlu1 %4562, %v3016_v14   ;;  %4508 = vmatprep.subr.bf16.mxu0 %v4571_v52  ;;  %v9128_v14 = vld [vmem:[#allocation28_spill] sm:$0xff]  ;;  %v9140_v13 = vld [vmem:[#allocation57_spill] sm:$0xff]  ;;  %v9149_v11 = vld [vmem:[#allocation63_spill] sm:$0xff] }
 0x448   : > { %3289 = vperm.xlu0 %4563, %v3011_v5   ;;  %v3020_v15 = vmul.f32 %v2987_v8, %v2940_v34  ;;  %v2941_v47 = vmul.f32 %v2925_v19, %v2557_v56  ;;  %v616_v5 = vadd.f32 %v9126_v58, %v9125_v17  ;;  %v617_v33 = vadd.f32 %v9128_v14, %v9127_v12  ;;  %v9144_v19 = vld [vmem:[#allocation34_spill] sm:$0xff] }
 0x449   : > { %4509 = vmatpush3.bf16.msra.mxu0 %v4571_v52  ;;  %v3091_v32 = vadd.f32 %v9140_v13, %v8040_v40  ;;  %v9145_v34 = vld [vmem:[#allocation58_spill] sm:$0xff]  ;;  %v9148_v52 = vld [vmem:[#allocation35_spill] sm:$0xff]  ;;  %v3096_v39 = vadd.f32 %v8040_v40, %v9149_v11  ;;  %v9153_v13 = vld [vmem:[#allocation68_spill] sm:$0xff] }
 0x44a   : > { %v3021_v21 = vmul.f32 %v2989_v29, %v2941_v47 }
 0x44b   : > { %3304 = vperm.xlu1 %4562, %v3014_v60   ;;  %v3146_v9 = vpop.permute.xlu0 %3145  ;;  %v9133_v60 = vld [vmem:[#allocation6_spill] sm:$0xff] }
 0x44c   : > { %3319 = vperm.xlu0 %4563, %v3017_v26   ;;  %v3229_v1 = vmul.f32 %v8031_v50, %v3146_v9  ;;  %v620_v56 = vadd.f32 %v9134_v27, %v9133_v60 }
 0x44f   : > { %3215 = vperm.xlu1 %4562, %v2604_v10   ;;  %v9139_v10 = vld [vmem:[#allocation56_spill] sm:$0xff] }
 0x450   : > { %3309 = vperm.xlu0 %4563, %v3015_v63   ;;  %v3156_v7 = vpop.permute.xlu1 %3155  ;;  %v3161_v37 = vpop.permute.xlu0 %3160  ;;  %v9136_v63 = vld [vmem:[#allocation32_spill] sm:$0xff]  ;;  %v3080_v54 = vadd.f32 %v8040_v40, %v9139_v10  ;;  %v9152_v10 = vld [vmem:[#allocation67_spill] sm:$0xff] }
 0x451   : > { %v3231_v57 = vmul.f32 %v8031_v50, %v3156_v7  ;;  %v3232_v18 = vmul.f32 %v8031_v50, %v3161_v37  ;;  %v8067_v49 = vadd.f32 %v9136_v63, %v9135_v0  ;;  %v8093_v7 = vadd.f32 %v9148_v52, %v9147_v6 }
 0x452   : > { %v3245_v9 = vadd.f32 %v3229_v1, %v3080_v54  ;;  %v9150_v1 = vld [vmem:[#allocation64_spill] sm:$0xff]  ;;  %v3120_v54 = vadd.f32 %v9152_v10, %v8040_v40 }
 0x453   : > { %3324 = vperm.xlu1 %4562, %v3018_v31   ;;  %v3247_v46 = vadd.f32 %v3231_v57, %v3088_v25  ;;  %v9143_v31 = vld [vmem:[#allocation10_spill] sm:$0xff]  ;;  %v3248_v57 = vadd.f32 %v3232_v18, %v3091_v32  ;;  %v3112_v32 = vadd.f32 %v8040_v40, %v9153_v13 }
 0x454   : > { %3220 = vperm.xlu0 %4563, %v2605_v24   ;;  %v3151_v28 = vpop.permute.xlu1 %3150  ;;  %v3181_v42 = vpop.permute.xlu0 %3180  ;;  %v8079_v24 = vadd.f32 %v9142_v51, %v9141_v22  ;;  %v8083_v8 = vadd.f32 %v9144_v19, %v9143_v31 }
 0x455   : > { %v3230_v37 = vmul.f32 %v8031_v50, %v3151_v28  ;;  %v9151_v28 = vld [vmem:[#allocation65_spill] sm:$0xff] }
 0x456   : > { %v3099_v18 = vadd.f32 %v8040_v40, %v9151_v28 }
 0x457   : > { %3334 = vperm.xlu1 %4562, %v3020_v15   ;;  %v9146_v15 = vld [vmem:[#allocation62_spill] sm:$0xff] }
 0x458   : > { %3329 = vperm.xlu0 %4563, %v3019_v2   ;;  %v3176_v45 = vpop.permute.xlu1 %3175  ;;  %v3083_v2 = vadd.f32 %v8040_v40, %v9145_v34  ;;  %v3104_v29 = vadd.f32 %v9146_v15, %v8040_v40 }
 0x459   : > { %v3235_v17 = vmul.f32 %v8031_v50, %v3176_v45  ;;  %v3236_v45 = vmul.f32 %v8031_v50, %v3181_v42 }
 0x45a   : > { %v3246_v27 = vadd.f32 %v3230_v37, %v3083_v2 }
 0x45b   : > { %v3251_v61 = vadd.f32 %v3235_v17, %v3104_v29 }
 0x45c   : > { %3339 = vperm.xlu0 %4563, %v3021_v21   ;;  %v3166_v55 = vpop.permute.xlu1 %3165 }
 0x45d   : > { %v3233_v4 = vmul.f32 %v8031_v50, %v3166_v55 }
 0x45f   : > { %v8020_v3 = vpop.permute.xlu0 %3170 }
 0x460   : > { %v3234_v34 = vmul.f32 %v8031_v50, %v8020_v3  ;;  %v9154_v3 = vld [vmem:[#allocation70_spill] sm:$0xff] }
 0x461   : > { %v3123_v37 = vadd.f32 %v9154_v3, %v8040_v40 }
 0x4a6   : > { %v8022_v23 = vpop.permute.xlu1 %3195 }
 0x4aa   : > { %v8026_v30 = vpop.permute.xlu1 %3185 }
 0x4ab   : > { %v8024_v35 = vpop.permute.xlu0 %3200 }
 0x4af   : > { %v8033_v43 = vpop.permute.xlu0 %3190 }
 0x4b2   : > { %v8035_v41 = vpop.permute.xlu1 %3205 }
 0x4b6   : > { %v3275_v26 = vpop.permute.xlu1 %3274 }
 0x4b7   : > { %v8050_v62 = vpop.permute.xlu0 %3210  ;;  %v3350_v36 = vmul.f32 %v8046_v16, %v3275_v26  ;;  %v3107_v26 = vadd.f32 %v9150_v1, %v8040_v40 }
 0x4b9   : > { %v8089_v47 = vadd.f32 %v3350_v36, %v3247_v46  ;;  %v3252_v51 = vadd.f32 %v3236_v45, %v3107_v26 }
 0x4ba   : > { %v3265_v25 = vpop.permute.xlu1 %3264 }
 0x4bb   : > { %v3280_v21 = vpop.permute.xlu0 %3279  ;;  %v4317_v58 = vmul.f32 -1.442695, %v8089_v47  ;;  %v3348_v12 = vmul.f32 %v8046_v16, %v3265_v25  ;;  %v8101_v14 = vadd.f32 %v8089_v47, %v616_v5 }
 0x4bc   : > { %v3351_v44 = vmul.f32 %v8046_v16, %v3280_v21  ;;  %v3239_v21 = vmul.f32 %v8031_v50, %v8022_v23  ;;  %v3237_v23 = vmul.f32 %v8031_v50, %v8026_v30 }
 0x4bd   : > { %5149 = vpow2.f32 %v4317_v58  ;;  %v8113_v60 = vadd.f32 %v3348_v12, %v3245_v9  ;;  %v3250_v58 = vadd.f32 %v3234_v34, %v3099_v18  ;;  %v9157_v34 = vld [vmem:[#allocation36_spill] sm:$0xff] }
 0x4be   : > { %v8109_v53 = vadd.f32 %v3351_v44, %v3248_v57  ;;  %v3295_v0 = vpop.permute.xlu1 %3294  ;;  %v3240_v57 = vmul.f32 %v8031_v50, %v8024_v35  ;;  %v3255_v26 = vadd.f32 %v3239_v21, %v3120_v54  ;;  %v9158_v21 = vld [vmem:[#allocation13_spill] sm:$0xff] }
 0x4bf   : > { %v3270_v5 = vpop.permute.xlu0 %3269  ;;  %v4315_v38 = vmul.f32 -1.442695, %v8113_v60  ;;  %v3354_v42 = vmul.f32 %v8046_v16, %v3295_v0  ;;  %v8123_v55 = vadd.f32 %v8113_v60, %v614_v59 }
 0x4c0   : > { %v4318_v46 = vmul.f32 -1.442695, %v8109_v53  ;;  %v3349_v36 = vmul.f32 %v8046_v16, %v3270_v5  ;;  %v8118_v63 = vadd.f32 %v8109_v53, %v617_v33  ;;  %v3249_v33 = vadd.f32 %v3233_v4, %v3096_v39 }
 0x4c1   : > { %v8131_v31 = vadd.f32 %v3354_v42, %v3251_v61  ;;  %v3256_v18 = vadd.f32 %v3240_v57, %v3123_v37 }
 0x4c2   : > { %5151 = vpow2.f32 %v4318_v46  ;;  %v8129_v22 = vadd.f32 %v3349_v36, %v3246_v27  ;;  %v3285_v15 = vpop.permute.xlu1 %3284  ;;  %v3253_v27 = vadd.f32 %v3237_v23, %v3112_v32 }
 0x4c3   : > { %5153 = vpow2.f32 %v4315_v38  ;;  %v3300_v19 = vpop.permute.xlu0 %3299  ;;  %v4321_v6 = vmul.f32 -1.442695, %v8131_v31  ;;  %v3352_v52 = vmul.f32 %v8046_v16, %v3285_v15  ;;  %v8145_v9 = vadd.f32 %v8131_v31, %v620_v56 }
 0x4c4   : > { %v4316_v59 = vmul.f32 -1.442695, %v8129_v22  ;;  %v3355_v2 = vmul.f32 %v8046_v16, %v3300_v19  ;;  %v8138_v29 = vadd.f32 %v8129_v22, %v615_v48  ;;  %v9155_v48 = vld [vmem:[#allocation71_spill] sm:$0xff]  ;;  %v9156_v19 = vld [vmem:[#allocation12_spill] sm:$0xff] }
 0x4c5   : > { %v3115_v25 = vadd.f32 %v8040_v40, %v9155_v48  ;;  %v8157_v17 = vadd.f32 %v3352_v52, %v3249_v33 }
 0x4c6   : > { %5155 = vpow2.f32 %v4316_v59  ;;  %v8151_v44 = vadd.f32 %v3355_v2, %v3252_v51  ;;  %v3315_v39 = vpop.permute.xlu1 %3314  ;;  %v625_v59 = vadd.f32 %v9157_v34, %v9156_v19  ;;  %v9165_v34 = vld [vmem:[#allocation76_spill] sm:$0xff] }
 0x4c7   : > { %5157 = vpow2.f32 %v4321_v6  ;;  %v3290_v56 = vpop.permute.xlu0 %3289  ;;  %v5150_v1 = vpop.eup %5149  ;;  %v4319_v28 = vmul.f32 -1.442695, %v8157_v17  ;;  %v3358_v30 = vmul.f32 %v8046_v16, %v3315_v39  ;;  %v8169_v45 = vadd.f32 %v8157_v17, %v8071_v20  ;;  %v9159_v6 = vld [vmem:[#allocation37_spill] sm:$0xff] }
 0x4c8   : > { %v4322_v12 = vmul.f32 -1.442695, %v8151_v44  ;;  %v3353_v11 = vmul.f32 %v8046_v16, %v3290_v56  ;;  %v8163_v35 = vadd.f32 %v8151_v44, %v8067_v49  ;;  %v3446_v4 = vadd.f32 1.0, %v5150_v1  ;;  %v9160_v1 = vld [vmem:[#allocation75_spill] sm:$0xff] }
 0x4c9   : > { %v3238_v49 = vmul.f32 %v8031_v50, %v8033_v43  ;;  %v8175_v46 = vadd.f32 %v3358_v30, %v3255_v26  ;;  %v623_v52 = vadd.f32 %v9159_v6, %v9158_v21  ;;  %v3128_v26 = vadd.f32 %v8040_v40, %v9160_v1  ;;  %v9161_v30 = vld [vmem:[#allocation15_spill] sm:$0xff] }
 0x4ca   : > { %5159 = vpow2.f32 %v4322_v12  ;;  %v8171_v5 = vadd.f32 %v3353_v11, %v3250_v58  ;;  %v3305_v38 = vpop.permute.xlu1 %3304 }
 0x4cb   : > { %5161 = vpow2.f32 %v4319_v28  ;;  %v3320_v36 = vpop.permute.xlu0 %3319  ;;  %v4325_v13 = vmul.f32 -1.442695, %v8175_v46  ;;  %v3356_v43 = vmul.f32 %v8046_v16, %v3305_v38  ;;  %v8187_v32 = vadd.f32 %v8175_v46, %v8083_v8 }
 0x4cc   : > { %v5152_v0 = vpop.eup %5151  ;;  %5163 = vrcp.f32 %v3446_v4  ;;  %v4320_v61 = vmul.f32 -1.442695, %v8171_v5  ;;  %v3359_v20 = vmul.f32 %v8046_v16, %v3320_v36  ;;  %v8181_v42 = vadd.f32 %v8171_v5, %v8079_v24 }
 0x4cd   : > { %v5154_v10 = vpop.eup %5153  ;;  %v3447_v54 = vadd.f32 1.0, %v5152_v0  ;;  %v3254_v2 = vadd.f32 %v3238_v49, %v3115_v25  ;;  %v8193_v24 = vadd.f32 %v3356_v43, %v3253_v27  ;;  %v3241_v25 = vmul.f32 %v8031_v50, %v8035_v41  ;;  %v9164_v43 = vld [vmem:[#allocation78_spill] sm:$0xff] }
 0x4ce   : > { %v3444_v51 = vadd.f32 1.0, %v5154_v10  ;;  %5165 = vpow2.f32 %v4320_v61  ;;  %v8189_v33 = vadd.f32 %v3359_v20, %v3256_v18  ;;  %v3216_v57 = vpop.permute.xlu1 %3215  ;;  %v3242_v28 = vmul.f32 %v8031_v50, %v8050_v62  ;;  %v9162_v18 = vld [vmem:[#allocation39_spill] sm:$0xff] }
 0x4cf   : > { %5167 = vrcp.f32 %v3447_v54  ;;  %v3310_v15 = vpop.permute.xlu0 %3309  ;;  %v4323_v58 = vmul.f32 -1.442695, %v8193_v24  ;;  %v8209_v39 = vadd.f32 %v8193_v24, %v8093_v7  ;;  %v626_v4 = vadd.f32 %v9162_v18, %v9161_v30  ;;  %v9163_v54 = vld [vmem:[#allocation73_spill] sm:$0xff] }
 0x4d0   : > { %v5156_v3 = vpop.eup %5155  ;;  %5169 = vrcp.f32 %v3444_v51  ;;  %v4326_v8 = vmul.f32 -1.442695, %v8189_v33  ;;  %v3357_v37 = vmul.f32 %v8046_v16, %v3310_v15  ;;  %v8200_v48 = vadd.f32 %v8189_v33, %v625_v59 }
 0x4d1   : > { %v5158_v23 = vpop.eup %5157  ;;  %v3445_v56 = vadd.f32 1.0, %v5156_v3  ;;  %5171 = vpow2.f32 %v4325_v13  ;;  %v3243_v36 = vmul.f32 %v8031_v50, %v3216_v57  ;;  %v3257_v20 = vadd.f32 %v3241_v25, %v3128_v26  ;;  %v9166_v26 = vld [vmem:[#allocation14_spill] sm:$0xff] }
 0x4d2   : > { %v3450_v12 = vadd.f32 1.0, %v5158_v23  ;;  %5173 = vpow2.f32 %v4326_v8  ;;  %v8205_v11 = vadd.f32 %v3357_v37, %v3254_v2  ;;  %v3325_v0 = vpop.permute.xlu1 %3324  ;;  %v3136_v13 = vadd.f32 %v9163_v54, %v8040_v40 }
 0x4d3   : > { %5175 = vrcp.f32 %v3445_v56  ;;  %v3221_v41 = vpop.permute.xlu0 %3220  ;;  %v3360_v62 = vmul.f32 %v8046_v16, %v3325_v0  ;;  %v3131_v51 = vadd.f32 %v8040_v40, %v9164_v43  ;;  %v3139_v59 = vadd.f32 %v9165_v34, %v8040_v40  ;;  %v9169_v0 = vld [vmem:[#allocation41_spill] sm:$0xff] }
 0x4d4   : > { %v5160_v27 = vpop.eup %5159  ;;  %5177 = vrcp.f32 %v3450_v12  ;;  %v4324_v49 = vmul.f32 -1.442695, %v8205_v11  ;;  %v8220_v7 = vadd.f32 %v8205_v11, %v623_v52  ;;  %v3244_v2 = vmul.f32 %v8031_v50, %v3221_v41 }
 0x4d5   : > { %v5162_v61 = vpop.eup %5161  ;;  %v3451_v38 = vadd.f32 1.0, %v5160_v27  ;;  %5179 = vpow2.f32 %v4323_v58  ;;  %v8230_v15 = vadd.f32 %v3360_v62, %v3257_v20  ;;  %v3258_v52 = vadd.f32 %v3242_v28, %v3131_v51  ;;  %v9167_v28 = vld [vmem:[#allocation38_spill] sm:$0xff] }
 0x4d6   : > { %v5164_v10 = vpop.eup %5163  ;;  %v3448_v19 = vadd.f32 1.0, %v5162_v61  ;;  %5181 = vpow2.f32 %v4324_v49  ;;  %v3259_v3 = vadd.f32 %v3243_v36, %v3136_v13  ;;  %v3335_v37 = vpop.permute.xlu1 %3334  ;;  %v628_v41 = vadd.f32 %v9167_v28, %v9166_v26  ;;  %v9168_v36 = vld [vmem:[#allocation17_spill] sm:$0xff] }
 0x4d7   : > { %5183 = vrcp.f32 %v3451_v38  ;;  %v3330_v21 = vpop.permute.xlu0 %3329  ;;  %v4327_v25 = vmul.f32 -1.442695, %v8230_v15  ;;  %v3362_v56 = vmul.f32 %v8046_v16, %v3335_v37  ;;  %v8236_v40 = vadd.f32 %v8230_v15, %v626_v4 }
 0x4d8   : > { %v5166_v6 = vpop.eup %5165  ;;  %5185 = vrcp.f32 %v3448_v19  ;;  %v3361_v8 = vmul.f32 %v8046_v16, %v3330_v21  ;;  %v3494_v58 = vmul.f32 %v5164_v10, %v8089_v47  ;;  %v3260_v18 = vadd.f32 %v3244_v2, %v3139_v59  ;;  %v9170_v21 = vld [vmem:[#allocation16_spill] sm:$0xff] }
 0x4d9   : > { %v5168_v57 = vpop.eup %5167  ;;  %v3449_v23 = vadd.f32 1.0, %v5166_v6  ;;  %v8244_v27 = vadd.f32 %v3362_v56, %v3259_v3  ;;  %v627_v4 = vadd.f32 %v9169_v0, %v9168_v36  ;;  %v9171_v6 = vld [vmem:[#allocation40_spill] sm:$0xff] }
 0x4da   : > { %v5170_v50 = vpop.eup %5169  ;;  %v3495_v12 = vmul.f32 %v5168_v57, %v8109_v53  ;;  %v8240_v1 = vadd.f32 %v3361_v8, %v3258_v52  ;;  %v629_v52 = vadd.f32 %v9171_v6, %v9170_v21  ;;  %v4572_v6 = vld [vmem:[%s8504_s1 + $0x14] ss:$24 sps:$4 sm:$0xff]  }
 0x4db   : > { %v5172_v30 = vpop.eup %5171  ;;  %5187 = vrcp.f32 %v3449_v23  ;;  %v3340_v49 = vpop.permute.xlu0 %3339  ;;  %v4329_v10 = vmul.f32 -1.442695, %v8244_v27  ;;  %v8252_v13 = vadd.f32 %v8244_v27, %v628_v41  ;;  %v3492_v51 = vmul.f32 %v5170_v50, %v8113_v60  ;;  %4526 = vmatprep.subr.bf16.mxu1 %v4572_v6 }
 0x4dc   : > { %v5174_v61 = vpop.eup %5173  ;;  %v3514_v20 = vpack.c.bf16 %v3495_v12, %v3494_v58  ;;  %v3454_v38 = vadd.f32 1.0, %v5172_v30  ;;  %5189 = vpow2.f32 %v4327_v25  ;;  %v4328_v47 = vmul.f32 -1.442695, %v8240_v1  ;;  %4527 = vmatpush3.bf16.msra.mxu1 %v4572_v6 }
 0x4dd   : > { %v5176_v53 = vpop.eup %5175  ;;  %v3455_v62 = vadd.f32 1.0, %v5174_v61  ;;  %v3363_v54 = vmul.f32 %v8046_v16, %v3340_v49  ;;  %v8257_v34 = vadd.f32 %v8240_v1, %v627_v4 }
 0x4de   : > { %v5178_v43 = vpop.eup %5177  ;;  %v3493_v19 = vmul.f32 %v5176_v53, %v8129_v22  ;;  %5191 = vrcp.f32 %v3454_v38 }
 0x4df   : > { %v5180_v59 = vpop.eup %5179  ;;  %5193 = vrcp.f32 %v3455_v62  ;;  %v3379_v2 = vadd.f32 %v3363_v54, %v3260_v18  ;;  %v3498_v25 = vmul.f32 %v5178_v43, %v8131_v31 }
 0x4e0   : > { %v5182_v3 = vpop.eup %5181  ;;  %v3452_v16 = vadd.f32 1.0, %v5180_v59  ;;  %5195 = vpow2.f32 %v4328_v47  ;;  %v3513_v8 = vpack.c.bf16 %v3493_v19, %v3492_v51 }
 0x4e1   : > { %v5184_v37 = vpop.eup %5183  ;;  %v3453_v57 = vadd.f32 1.0, %v5182_v3  ;;  %5197 = vpow2.f32 %v4329_v10  ;;  %v4330_v60 = vmul.f32 -1.442695, %v3379_v2  ;;  %v8261_v23 = vadd.f32 %v3379_v2, %v629_v52 }
 0x4e2   : > { %v5186_v22 = vpop.eup %5185  ;;  %v3499_v56 = vmul.f32 %v5184_v37, %v8151_v44  ;;  %5199 = vrcp.f32 %v3452_v16  ;;  %4510 = vmatprep.mubr.msk.bf16.mxu0 %vm492_vm2, %v3513_v8 }
 0x4e3   : > { %5201 = vrcp.f32 %v3453_v57  ;;  %4511 = vmatmul.mubr.msk.bf16.vlgmr.msra.gmra.mrb[32].mxu0 %vm492_vm2, %v3514_v20  ;;  %v3496_v26 = vmul.f32 %v5186_v22, %v8157_v17 }
 0x4e4   : > { %5203 = vpow2.f32 %v4330_v60  ;;  %v3516_v50 = vpack.c.bf16 %v3499_v56, %v3498_v25 }
 0x4e5   : > { %v5188_v58 = vpop.eup %5187 }
 0x4e6   : > { %v5190_v12 = vpop.eup %5189  ;;  %v3497_v28 = vmul.f32 %v5188_v58, %v8171_v5 }
 0x4e7   : > { %v3456_v41 = vadd.f32 1.0, %v5190_v12 }
 0x4e8   : > { %v5192_v30 = vpop.eup %5191  ;;  %v3515_v18 = vpack.c.bf16 %v3497_v28, %v3496_v26 }
 0x4e9   : > { %v5194_v31 = vpop.eup %5193  ;;  %v3502_v44 = vmul.f32 %v5192_v30, %v8175_v46  ;;  %5205 = vrcp.f32 %v3456_v41 }
 0x4ea   : > { %v5196_v49 = vpop.eup %5195  ;;  %v3503_v36 = vmul.f32 %v5194_v31, %v8189_v33  ;;  %4514 = vmatprep.mubr.msk.bf16.mxu0 %vm492_vm2, %v3515_v18 }
 0x4eb   : > { %v5198_v0 = vpop.eup %5197  ;;  %v3457_v4 = vadd.f32 1.0, %v5196_v49  ;;  %4515 = vmatmul.mubr.msk.bf16.gmra.mrb[36].mxu0 %vm492_vm2, %v3516_v50 }
 0x4ec   : > { %v5200_v61 = vpop.eup %5199  ;;  %v3458_v17 = vadd.f32 1.0, %v5198_v0  ;;  %v3518_v20 = vpack.c.bf16 %v3503_v36, %v3502_v44 }
 0x4ed   : > { %v5202_v5 = vpop.eup %5201  ;;  %5207 = vrcp.f32 %v3457_v4  ;;  %v3500_v47 = vmul.f32 %v5200_v61, %v8193_v24 }
 0x4ee   : > { %v5204_v38 = vpop.eup %5203  ;;  %v3501_v53 = vmul.f32 %v5202_v5, %v8205_v11  ;;  %5209 = vrcp.f32 %v3458_v17 }
 0x4ef   : > { %v3459_v46 = vadd.f32 1.0, %v5204_v38 }
 0x4f0   : > { %v3517_v33 = vpack.c.bf16 %v3501_v53, %v3500_v47 }
 0x4f1   : > { %5211 = vrcp.f32 %v3459_v46 }
 0x4f2   : > { %4518 = vmatprep.mubr.msk.bf16.mxu0 %vm492_vm2, %v3517_v33 }
 0x4f3   : > { %4519 = vmatmul.mubr.msk.bf16.gmra.mrb[40].mxu0 %vm492_vm2, %v3518_v20  ;;  %v5206_v62 = vpop.eup %5205 }
 0x4f4   : > { %v3504_v54 = vmul.f32 %v5206_v62, %v8230_v15  ;;  %v8288_v15 = vld [vmem:[%s8505_s2 + $0x6] ss:$0 sm:$0xff] }
 0x4f7   : > { %v5208_v10 = vpop.eup %5207 }
 0x4f8   : > { %v3505_v43 = vmul.f32 %v5208_v10, %v8240_v1  ;;  %v5210_v51 = vpop.eup %5209 }
 0x4f9   : > { %v3506_v24 = vmul.f32 %v5210_v51, %v8244_v27 }
 0x4fa   : > { %v3519_v19 = vpack.c.bf16 %v3505_v43, %v3504_v54 }
 0x4fb   : > { %v5212_v59 = vpop.eup %5211 }
 0x4fc   : > { %v3507_v11 = vmul.f32 %v5212_v59, %v3379_v2  ;;  %4522 = vmatprep.mubr.msk.bf16.mxu0 %vm492_vm2, %v3519_v19 }
 0x4fe   : > { %v3520_v21 = vpack.c.bf16 %v3507_v11, %v3506_v24 }
 0x500   : > { %4523 = vmatmul.mubr.msk.bf16.gmra.mrb[44].mxu0 %vm492_vm2, %v3520_v21  ;;  %vm3875_vm2 = vcmask 130048  }
 0x5b6   : > { %v4512_v1 = vpop.f32.mrb[32].mxu0 }
 0x5b7   : > { %v8291_v27 = vadd.f32 %v4512_v1, %v8288_v15  ;;  %v3597_v2 = vpop.f32.mrb[33].mxu0 }
 0x5b8   : > { %v8294_v52 = vadd.f32 %v8288_v15, %v3597_v2  ;;  %v4513_v3 = vpop.f32.mrb[34].mxu0 }
 0x5b9   : > { %v4344_v16 = vmul.f32 -1.442695, %v8291_v27  ;;  %v8298_v8 = vadd.f32 %v4513_v3, %v8288_v15  ;;  %3680 = vrot.lane.b32.xlu1 %v8291_v27, %s5324_s7  ;;  %v3600_v37 = vpop.f32.mrb[35].mxu0 }
 0x5ba   : > { %v4342_v57 = vmul.f32 -1.442695, %v8294_v52  ;;  %v8304_v60 = vadd.f32 %v8288_v15, %v3600_v37 }
 0x5bb   : > { %5213 = vpow2.f32 %v4344_v16  ;;  %v4345_v22 = vmul.f32 -1.442695, %v8298_v8  ;;  %3682 = vrot.lane.b32.xlu0 %v8298_v8, %s5324_s7 }
 0x5bc   : > { %5215 = vpow2.f32 %v4342_v57  ;;  %v4343_v25 = vmul.f32 -1.442695, %v8304_v60 }
 0x5bd   : > { %5217 = vpow2.f32 %v4345_v22  ;;  %3676 = vrot.lane.b32.xlu1 %v8294_v52, %s5324_s7 }
 0x5be   : > { %5219 = vpow2.f32 %v4343_v25  ;;  %v4516_v56 = vpop.f32.mrb[36].mxu0 }
 0x5bf   : > { %v8313_v50 = vadd.f32 %v4516_v56, %v8288_v15  ;;  %3678 = vrot.lane.b32.xlu0 %v8304_v60, %s5324_s7  ;;  %v3613_v58 = vpop.f32.mrb[37].mxu0 }
 0x5c0   : > { %v8318_v12 = vadd.f32 %v8288_v15, %v3613_v58  ;;  %v4517_v26 = vpop.f32.mrb[38].mxu0 }
 0x5c1   : > { %v4348_v28 = vmul.f32 -1.442695, %v8313_v50  ;;  %v8322_v41 = vadd.f32 %v4517_v26, %v8288_v15  ;;  %3688 = vrot.lane.b32.xlu1 %v8313_v50, %s5324_s7  ;;  %v3616_v30 = vpop.f32.mrb[39].mxu0 }
 0x5c2   : > { %v4346_v18 = vmul.f32 -1.442695, %v8318_v12  ;;  %v8328_v31 = vadd.f32 %v8288_v15, %v3616_v30 }
 0x5c3   : > { %5221 = vpow2.f32 %v4348_v28  ;;  %v4349_v49 = vmul.f32 -1.442695, %v8322_v41  ;;  %3690 = vrot.lane.b32.xlu0 %v8322_v41, %s5324_s7 }
 0x5c4   : > { %5223 = vpow2.f32 %v4346_v18  ;;  %v4347_v44 = vmul.f32 -1.442695, %v8328_v31 }
 0x5c5   : > { %v5214_v36 = vpop.eup %5213  ;;  %5225 = vpow2.f32 %v4349_v49  ;;  %3684 = vrot.lane.b32.xlu1 %v8318_v12, %s5324_s7 }
 0x5c6   : > { %v5216_v0 = vpop.eup %5215  ;;  %v3790_v4 = vadd.f32 1.0, %v5214_v36  ;;  %5227 = vpow2.f32 %v4347_v44  ;;  %v4520_v61 = vpop.f32.mrb[40].mxu0 }
 0x5c7   : > { %v5218_v17 = vpop.eup %5217  ;;  %v3788_v20 = vadd.f32 1.0, %v5216_v0  ;;  %v8337_v5 = vadd.f32 %v4520_v61, %v8288_v15  ;;  %3686 = vrot.lane.b32.xlu0 %v8328_v31, %s5324_s7  ;;  %v3629_v38 = vpop.f32.mrb[41].mxu0 }
 0x5c8   : > { %v5220_v47 = vpop.eup %5219  ;;  %5229 = vrcp.f32 %v3790_v4  ;;  %v3791_v53 = vadd.f32 1.0, %v5218_v17  ;;  %v8342_v46 = vadd.f32 %v8288_v15, %v3629_v38  ;;  %v4521_v33 = vpop.f32.mrb[42].mxu0 }
 0x5c9   : > { %5231 = vrcp.f32 %v3788_v20  ;;  %v3789_v62 = vadd.f32 1.0, %v5220_v47  ;;  %v4352_v10 = vmul.f32 -1.442695, %v8337_v5  ;;  %v8346_v54 = vadd.f32 %v4521_v33, %v8288_v15  ;;  %3696 = vrot.lane.b32.xlu1 %v8337_v5, %s5324_s7  ;;  %v3632_v43 = vpop.f32.mrb[43].mxu0 }
 0x5ca   : > { %5233 = vrcp.f32 %v3791_v53  ;;  %v4350_v51 = vmul.f32 -1.442695, %v8342_v46  ;;  %v8352_v19 = vadd.f32 %v8288_v15, %v3632_v43 }
 0x5cb   : > { %5235 = vrcp.f32 %v3789_v62  ;;  %v4353_v59 = vmul.f32 -1.442695, %v8346_v54  ;;  %3698 = vrot.lane.b32.xlu0 %v8346_v54, %s5324_s7 }
 0x5cc   : > { %5237 = vpow2.f32 %v4352_v10  ;;  %v4351_v24 = vmul.f32 -1.442695, %v8352_v19 }
 0x5cd   : > { %v5222_v11 = vpop.eup %5221  ;;  %5239 = vpow2.f32 %v4350_v51  ;;  %3692 = vrot.lane.b32.xlu1 %v8342_v46, %s5324_s7 }
 0x5ce   : > { %v5224_v21 = vpop.eup %5223  ;;  %v3794_v6 = vadd.f32 1.0, %v5222_v11  ;;  %5241 = vpow2.f32 %v4353_v59 }
 0x5cf   : > { %v5226_v1 = vpop.eup %5225  ;;  %v3792_v2 = vadd.f32 1.0, %v5224_v21  ;;  %5243 = vpow2.f32 %v4351_v24  ;;  %3694 = vrot.lane.b32.xlu0 %v8352_v19, %s5324_s7 }
 0x5d0   : > { %v5228_v3 = vpop.eup %5227  ;;  %5245 = vrcp.f32 %v3794_v6  ;;  %v3795_v16 = vadd.f32 1.0, %v5226_v1 }
 0x5d1   : > { %5247 = vrcp.f32 %v3792_v2  ;;  %v3793_v37 = vadd.f32 1.0, %v5228_v3 }
 0x5d2   : > { %v5230_v57 = vpop.eup %5229  ;;  %5249 = vrcp.f32 %v3795_v16 }
 0x5d3   : > { %v5232_v22 = vpop.eup %5231  ;;  %5251 = vrcp.f32 %v3793_v37  ;;  %v4524_v25 = vpop.f32.mrb[44].mxu0  ;;  %v3838_v30 = vmul.f32 %v5230_v57, %v8291_v27 }
 0x5d4   : > { %v5234_v56 = vpop.eup %5233  ;;  %v8363_v58 = vadd.f32 %v4524_v25, %v8288_v15  ;;  %v3645_v26 = vpop.f32.mrb[45].mxu0  ;;  %v3836_v0 = vmul.f32 %v5232_v22, %v8294_v52 }
 0x5d5   : > { %v5236_v28 = vpop.eup %5235  ;;  %v3839_v18 = vmul.f32 %v5234_v56, %v8298_v8  ;;  %v8368_v49 = vadd.f32 %v8288_v15, %v3645_v26  ;;  %v4525_v44 = vpop.f32.mrb[46].mxu0 }
 0x5d6   : > { %v5238_v36 = vpop.eup %5237  ;;  %v3837_v4 = vmul.f32 %v5236_v28, %v8304_v60  ;;  %v4356_v61 = vmul.f32 -1.442695, %v8363_v58  ;;  %v8374_v17 = vadd.f32 %v4525_v44, %v8288_v15  ;;  %3704 = vrot.lane.b32.xlu1 %v8363_v58, %s5324_s7  ;;  %v3648_v27 = vpop.f32.mrb[47].mxu0 }
 0x5d7   : > { %v5240_v20 = vpop.eup %5239  ;;  %v3856_v8 = vpack.c.bf16 %v3839_v18, %v3838_v30  ;;  %v3798_v38 = vadd.f32 1.0, %v5238_v36  ;;  %v8379_v47 = vadd.f32 %v8288_v15, %v3648_v27  ;;  %v4354_v10 = vmul.f32 -1.442695, %v8368_v49 }
 0x5d8   : > { %v5242_v53 = vpop.eup %5241  ;;  %v3855_v52 = vpack.c.bf16 %v3837_v4, %v3836_v0  ;;  %v3796_v33 = vadd.f32 1.0, %v5240_v20  ;;  %5253 = vpow2.f32 %v4356_v61  ;;  %3706 = vrot.lane.b32.xlu0 %v8374_v17, %s5324_s7  ;;  %v4357_v59 = vmul.f32 -1.442695, %v8374_v17 }
 0x5d9   : > { %v5244_v60 = vpop.eup %5243  ;;  %5255 = vrcp.f32 %v3798_v38  ;;  %v3799_v62 = vadd.f32 1.0, %v5242_v53  ;;  %v4355_v24 = vmul.f32 -1.442695, %v8379_v47 }
 0x5da   : > { %v5246_v43 = vpop.eup %5245  ;;  %5257 = vrcp.f32 %v3796_v33  ;;  %v3797_v51 = vadd.f32 1.0, %v5244_v60  ;;  %3700 = vrot.lane.b32.xlu1 %v8368_v49, %s5324_s7  ;;  %4528 = vmatprep.mubr.msk.bf16.mxu1 %vm3875_vm2, %v3855_v52  ;;  %v4358_v60 = vld [vmem:[%s8505_s2 + $0x7] ss:$0 sm:$0xff] }
 0x5db   : > { %v5248_v15 = vpop.eup %5247  ;;  %5259 = vrcp.f32 %v3799_v62  ;;  %4529 = vmatmul.mubr.msk.bf16.vlgmr.msra.gmra.mrb[32].mxu1 %vm3875_vm2, %v3856_v8  ;;  %v3842_v6 = vmul.f32 %v5246_v43, %v8313_v50 }
 0x5dc   : > { %v5250_v11 = vpop.eup %5249  ;;  %5261 = vrcp.f32 %v3797_v51  ;;  %3702 = vrot.lane.b32.xlu0 %v8379_v47, %s5324_s7  ;;  %v3840_v2 = vmul.f32 %v5248_v15, %v8318_v12 }
 0x5dd   : > { %v5252_v21 = vpop.eup %5251  ;;  %v3843_v1 = vmul.f32 %v5250_v11, %v8322_v41  ;;  %5263 = vpow2.f32 %v4354_v10 }
 0x5de   : > { %v3841_v3 = vmul.f32 %v5252_v21, %v8328_v31  ;;  %5265 = vpow2.f32 %v4357_v59 }
 0x5df   : > { %v3858_v16 = vpack.c.bf16 %v3843_v1, %v3842_v6  ;;  %5267 = vpow2.f32 %v4355_v24 }
 0x5e0   : > { %v3857_v37 = vpack.c.bf16 %v3841_v3, %v3840_v2 }
 0x5e2   : > { %v5254_v57 = vpop.eup %5253  ;;  %4532 = vmatprep.mubr.msk.bf16.mxu1 %vm3875_vm2, %v3857_v37 }
 0x5e3   : > { %v5256_v22 = vpop.eup %5255  ;;  %4533 = vmatmul.mubr.msk.bf16.gmra.mrb[36].mxu1 %vm3875_vm2, %v3858_v16  ;;  %v3802_v50 = vadd.f32 1.0, %v5254_v57 }
 0x5e4   : > { %v5258_v25 = vpop.eup %5257  ;;  %v3846_v41 = vmul.f32 %v5256_v22, %v8337_v5 }
 0x5e5   : > { %v5260_v56 = vpop.eup %5259  ;;  %v3844_v31 = vmul.f32 %v5258_v25, %v8342_v46  ;;  %5269 = vrcp.f32 %v3802_v50 }
 0x5e6   : > { %v5262_v26 = vpop.eup %5261  ;;  %v3847_v12 = vmul.f32 %v5260_v56, %v8346_v54 }
 0x5e7   : > { %v5264_v28 = vpop.eup %5263  ;;  %v3845_v30 = vmul.f32 %v5262_v26, %v8352_v19 }
 0x5e8   : > { %v5266_v18 = vpop.eup %5265  ;;  %v3860_v44 = vpack.c.bf16 %v3847_v12, %v3846_v41  ;;  %v3800_v36 = vadd.f32 1.0, %v5264_v28 }
 0x5e9   : > { %v5268_v0 = vpop.eup %5267  ;;  %v3859_v4 = vpack.c.bf16 %v3845_v30, %v3844_v31  ;;  %v3803_v61 = vadd.f32 1.0, %v5266_v18 }
 0x5ea   : > { %5271 = vrcp.f32 %v3800_v36  ;;  %v3801_v27 = vadd.f32 1.0, %v5268_v0 }
 0x5eb   : > { %5273 = vrcp.f32 %v3803_v61  ;;  %4536 = vmatprep.mubr.msk.bf16.mxu1 %vm3875_vm2, %v3859_v4 }
 0x5ec   : > { %5275 = vrcp.f32 %v3801_v27  ;;  %4537 = vmatmul.mubr.msk.bf16.gmra.mrb[40].mxu1 %vm3875_vm2, %v3860_v44 }
 0x5ef   : > { %v5270_v5 = vpop.eup %5269 }
 0x5f0   : > { %v3850_v19 = vmul.f32 %v5270_v5, %v8363_v58 }
 0x5f4   : > { %v5272_v54 = vpop.eup %5271 }
 0x5f5   : > { %v5274_v46 = vpop.eup %5273  ;;  %v3848_v38 = vmul.f32 %v5272_v54, %v8368_v49 }
 0x5f6   : > { %v5276_v20 = vpop.eup %5275  ;;  %v3851_v8 = vmul.f32 %v5274_v46, %v8374_v17 }
 0x5f7   : > { %v3849_v53 = vmul.f32 %v5276_v20, %v8379_v47 }
 0x5f8   : > { %v3862_v52 = vpack.c.bf16 %v3851_v8, %v3850_v19 }
 0x5f9   : > { %v3861_v33 = vpack.c.bf16 %v3849_v53, %v3848_v38 }
 0x5fb   : > { %4540 = vmatprep.mubr.msk.bf16.mxu1 %vm3875_vm2, %v3861_v33 }
 0x5fc   : > { %4541 = vmatmul.mubr.msk.bf16.gmra.mrb[44].mxu1 %vm3875_vm2, %v3862_v52 }
 0x62b   : > { %v3681_v36 = vpop.permute.xlu1 %3680 }
 0x62d   : > { %v3683_v0 = vpop.permute.xlu0 %3682 }
 0x62f   : > { %v3677_v4 = vpop.permute.xlu1 %3676 }
 0x631   : > { %v3679_v61 = vpop.permute.xlu0 %3678 }
 0x633   : > { %v3689_v27 = vpop.permute.xlu1 %3688 }
 0x635   : > { %v3691_v5 = vpop.permute.xlu0 %3690 }
 0x637   : > { %v3685_v54 = vpop.permute.xlu1 %3684 }
 0x639   : > { %v3687_v46 = vpop.permute.xlu0 %3686 }
 0x63b   : > { %v3697_v20 = vpop.permute.xlu1 %3696 }
 0x63d   : > { %v3699_v19 = vpop.permute.xlu0 %3698 }
 0x63f   : > { %v3693_v8 = vpop.permute.xlu1 %3692 }
 0x641   : > { %v3695_v38 = vpop.permute.xlu0 %3694 }
 0x648   : > { %v3705_v53 = vpop.permute.xlu1 %3704 }
 0x64a   : > { %v3707_v52 = vpop.permute.xlu0 %3706 }
 0x64c   : > { %v3701_v33 = vpop.permute.xlu1 %3700 }
 0x6ae   : > { %v4530_v62 = vpop.f32.mrb[32].mxu1 }
 0x6af   : > { %v3943_v10 = vadd.f32 %v4530_v62, %v4358_v60  ;;  %v3934_v43 = vpop.f32.mrb[33].mxu1  ;;  %v3726_v62 = vadd.f32 %v3681_v36, %v8101_v14  ;;  %v3730_v14 = vadd.f32 %v3689_v27, %v8145_v9  ;;  %v3739_v36 = vadd.f32 %v3707_v52, %v8261_v23 }
 0x6b0   : > { %v4531_v58 = vpop.f32.mrb[34].mxu1  ;;  %v3935_v49 = vadd.f32 %v4358_v60, %v3934_v43  ;;  %v3727_v43 = vadd.f32 %v3683_v0, %v8118_v63 }
 0x6b1   : > { %v3946_v51 = vadd.f32 %v4531_v58, %v4358_v60  ;;  %v3937_v17 = vpop.f32.mrb[35].mxu1  ;;  %4017 = vrot.lane.b32.xlu1 %v3943_v10, %s5325_s10 }
 0x6b2   : > { %v3938_v47 = vadd.f32 %v4358_v60, %v3937_v17  ;;  %v3724_v17 = vadd.f32 %v3677_v4, %v8123_v55 }
 0x6b3   : > { %4019 = vrot.lane.b32.xlu0 %v3946_v51, %s5325_s10 }
 0x6b5   : > { %4013 = vrot.lane.b32.xlu1 %v3935_v49, %s5325_s10 }
 0x6b6   : > { %v4534_v59 = vpop.f32.mrb[36].mxu1 }
 0x6b7   : > { %v3959_v15 = vadd.f32 %v4534_v59, %v4358_v60  ;;  %v3950_v24 = vpop.f32.mrb[37].mxu1  ;;  %4015 = vrot.lane.b32.xlu0 %v3938_v47, %s5325_s10  ;;  %v3725_v59 = vadd.f32 %v3679_v61, %v8138_v29 }
 0x6b8   : > { %v4535_v11 = vpop.f32.mrb[38].mxu1  ;;  %v3951_v1 = vadd.f32 %v4358_v60, %v3950_v24 }
 0x6b9   : > { %v3962_v21 = vadd.f32 %v4535_v11, %v4358_v60  ;;  %v3953_v6 = vpop.f32.mrb[39].mxu1  ;;  %4025 = vrot.lane.b32.xlu1 %v3959_v15, %s5325_s10 }
 0x6ba   : > { %v3954_v2 = vadd.f32 %v4358_v60, %v3953_v6 }
 0x6bb   : > { %4027 = vrot.lane.b32.xlu0 %v3962_v21, %s5325_s10  ;;  %v3731_v21 = vadd.f32 %v3691_v5, %v8163_v35  ;;  %v3734_v35 = vadd.f32 %v3697_v20, %v8187_v32 }
 0x6bd   : > { %4021 = vrot.lane.b32.xlu1 %v3951_v1, %s5325_s10  ;;  %v3728_v1 = vadd.f32 %v3685_v54, %v8169_v45  ;;  %v3735_v45 = vadd.f32 %v3699_v19, %v8200_v48  ;;  %v3736_v48 = vadd.f32 %v3701_v33, %v8236_v40 }
 0x6bf   : > { %v4538_v3 = vpop.f32.mrb[40].mxu1  ;;  %4023 = vrot.lane.b32.xlu0 %v3954_v2, %s5325_s10 }
 0x6c0   : > { %v3975_v16 = vadd.f32 %v4538_v3, %v4358_v60  ;;  %v3966_v37 = vpop.f32.mrb[41].mxu1  ;;  %v3729_v3 = vadd.f32 %v3687_v46, %v8181_v42 }
 0x6c1   : > { %v4539_v57 = vpop.f32.mrb[42].mxu1  ;;  %v3967_v56 = vadd.f32 %v4358_v60, %v3966_v37 }
 0x6c2   : > { %v3978_v22 = vadd.f32 %v4539_v57, %v4358_v60  ;;  %v3969_v25 = vpop.f32.mrb[43].mxu1  ;;  %4033 = vrot.lane.b32.xlu1 %v3975_v16, %s5325_s10 }
 0x6c3   : > { %v3970_v50 = vadd.f32 %v4358_v60, %v3969_v25 }
 0x6c4   : > { %4035 = vrot.lane.b32.xlu0 %v3978_v22, %s5325_s10 }
 0x6c6   : > { %4029 = vrot.lane.b32.xlu1 %v3967_v56, %s5325_s10  ;;  %v3732_v56 = vadd.f32 %v3693_v8, %v8209_v39 }
 0x6c8   : > { %4031 = vrot.lane.b32.xlu0 %v3970_v50, %s5325_s10 }
 0x6cf   : > { %v4542_v26 = vpop.f32.mrb[44].mxu1 }
 0x6d0   : > { %v3982_v41 = vpop.f32.mrb[45].mxu1  ;;  %v3991_v18 = vadd.f32 %v4542_v26, %v4358_v60  ;;  %v3733_v26 = vadd.f32 %v3695_v38, %v8220_v7 }
 0x6d1   : > { %v3983_v12 = vadd.f32 %v4358_v60, %v3982_v41  ;;  %v4543_v28 = vpop.f32.mrb[46].mxu1 }
 0x6d2   : > { %v3985_v31 = vpop.f32.mrb[47].mxu1  ;;  %v3994_v44 = vadd.f32 %v4543_v28, %v4358_v60 }
 0x6d3   : > { %v3986_v30 = vadd.f32 %v4358_v60, %v3985_v31  ;;  %4037 = vrot.lane.b32.xlu1 %v3983_v12, %s5325_s10  ;;  %v3703_v60 = vpop.permute.xlu0 %3702 }
 0x6d4   : > { %v3737_v39 = vadd.f32 %v3703_v60, %v8257_v34 }
 0x6d5   : > { %4039 = vrot.lane.b32.xlu0 %v3986_v30, %s5325_s10 }
 0x6d7   : > { %4041 = vrot.lane.b32.xlu1 %v3991_v18, %s5325_s10  ;;  %v3738_v18 = vadd.f32 %v3705_v53, %v8252_v13 }
 0x6d9   : > { %4043 = vrot.lane.b32.xlu0 %v3994_v44, %s5325_s10 }
 0x723   : > { %v4018_v10 = vpop.permute.xlu1 %4017 }
 0x724   : > { %v4063_v58 = vadd.f32 %v4018_v10, %v3726_v62 }
 0x725   : > { %v4020_v51 = vpop.permute.xlu0 %4019 }
 0x726   : > { %v4064_v49 = vadd.f32 %v4020_v51, %v3727_v43  ;;  %4097 = vrot.lane.b32.xlu1 %v4063_v58, %s5326_s11 }
 0x727   : > { %v4014_v47 = vpop.permute.xlu1 %4013 }
 0x728   : > { %v4061_v15 = vadd.f32 %v4014_v47, %v3724_v17  ;;  %4099 = vrot.lane.b32.xlu0 %v4064_v49, %s5326_s11 }
 0x729   : > { %v4016_v24 = vpop.permute.xlu0 %4015 }
 0x72a   : > { %v4062_v11 = vadd.f32 %v4016_v24, %v3725_v59  ;;  %4093 = vrot.lane.b32.xlu1 %v4061_v15, %s5326_s11 }
 0x72b   : > { %v4026_v63 = vpop.permute.xlu1 %4025 }
 0x72c   : > { %v4067_v55 = vadd.f32 %v4026_v63, %v3730_v14  ;;  %4095 = vrot.lane.b32.xlu0 %v4062_v11, %s5326_s11 }
 0x72d   : > { %v4028_v6 = vpop.permute.xlu0 %4027 }
 0x72e   : > { %v4068_v2 = vadd.f32 %v4028_v6, %v3731_v21  ;;  %4105 = vrot.lane.b32.xlu1 %v4067_v55, %s5326_s11 }
 0x72f   : > { %v4022_v29 = vpop.permute.xlu1 %4021 }
 0x730   : > { %v4065_v16 = vadd.f32 %v4022_v29, %v3728_v1  ;;  %4107 = vrot.lane.b32.xlu0 %v4068_v2, %s5326_s11 }
 0x731   : > { %v4024_v9 = vpop.permute.xlu0 %4023 }
 0x732   : > { %v4066_v37 = vadd.f32 %v4024_v9, %v3729_v3  ;;  %4101 = vrot.lane.b32.xlu1 %v4065_v16, %s5326_s11 }
 0x734   : > { %v4034_v57 = vpop.permute.xlu1 %4033  ;;  %4103 = vrot.lane.b32.xlu0 %v4066_v37, %s5326_s11 }
 0x735   : > { %v4071_v22 = vadd.f32 %v4034_v57, %v3734_v35 }
 0x736   : > { %v4036_v25 = vpop.permute.xlu0 %4035 }
 0x737   : > { %v4072_v50 = vadd.f32 %v4036_v25, %v3735_v45  ;;  %4113 = vrot.lane.b32.xlu1 %v4071_v22, %s5326_s11 }
 0x738   : > { %v4030_v42 = vpop.permute.xlu1 %4029 }
 0x739   : > { %v4069_v41 = vadd.f32 %v4030_v42, %v3732_v56  ;;  %4115 = vrot.lane.b32.xlu0 %v4072_v50, %s5326_s11 }
 0x73a   : > { %v4032_v12 = vpop.permute.xlu0 %4031 }
 0x73b   : > { %v4070_v32 = vadd.f32 %v4032_v12, %v3733_v26  ;;  %4109 = vrot.lane.b32.xlu1 %v4069_v41, %s5326_s11 }
 0x73d   : > { %4111 = vrot.lane.b32.xlu0 %v4070_v32, %s5326_s11 }
 0x745   : > { %v4038_v28 = vpop.permute.xlu1 %4037 }
 0x746   : > { %v4073_v31 = vadd.f32 %v4038_v28, %v3736_v48 }
 0x747   : > { %v4040_v30 = vpop.permute.xlu0 %4039 }
 0x748   : > { %v4074_v7 = vadd.f32 %v4040_v30, %v3737_v39  ;;  %4117 = vrot.lane.b32.xlu1 %v4073_v31, %s5326_s11 }
 0x749   : > { %v4042_v44 = vpop.permute.xlu1 %4041 }
 0x74a   : > { %v4075_v0 = vadd.f32 %v4042_v44, %v3738_v18  ;;  %4119 = vrot.lane.b32.xlu0 %v4074_v7, %s5326_s11 }
 0x74b   : > { %v4044_v4 = vpop.permute.xlu0 %4043 }
 0x74c   : > { %v4076_v61 = vadd.f32 %v4044_v4, %v3739_v36  ;;  %4121 = vrot.lane.b32.xlu1 %v4075_v0, %s5326_s11 }
 0x74e   : > { %4123 = vrot.lane.b32.xlu0 %v4076_v61, %s5326_s11 }
 0x798   : > { %v4098_v40 = vpop.permute.xlu1 %4097 }
 0x799   : > { %4144 = vst.msk [vmem:[%s8466_s15 + $0x10] sm:$0xff] %vm4141_vm10, %v4098_v40 }
 0x79a   : > { %v4100_v13 = vpop.permute.xlu0 %4099 }
 0x79b   : > { %4145 = vst.msk [vmem:[%s8466_s15 + $0x18] sm:$0xff] %vm4141_vm10, %v4100_v13 }
 0x79c   : > { %v4094_v34 = vpop.permute.xlu1 %4093 }
 0x79d   : > { %4142 = vst.msk [vmem:[%s8466_s15] sm:$0xff] %vm4141_vm10, %v4094_v34 }
 0x79e   : > { %v4096_v23 = vpop.permute.xlu0 %4095 }
 0x79f   : > { %4143 = vst.msk [vmem:[%s8466_s15 + $0x8] sm:$0xff] %vm4141_vm10, %v4096_v23 }
 0x7a0   : > { %v4106_v27 = vpop.permute.xlu1 %4105 }
 0x7a1   : > { %4148 = vst.msk [vmem:[%s8466_s15 + $0x30] sm:$0xff] %vm4141_vm10, %v4106_v27 }
 0x7a2   : > { %v4108_v5 = vpop.permute.xlu0 %4107 }
 0x7a3   : > { %4149 = vst.msk [vmem:[%s8466_s15 + $0x38] sm:$0xff] %vm4141_vm10, %v4108_v5 }
 0x7a4   : > { %v4102_v54 = vpop.permute.xlu1 %4101 }
 0x7a5   : > { %4146 = vst.msk [vmem:[%s8466_s15 + $0x20] sm:$0xff] %vm4141_vm10, %v4102_v54 }
 0x7a6   : > { %v4104_v46 = vpop.permute.xlu0 %4103 }
 0x7a7   : > { %4147 = vst.msk [vmem:[%s8466_s15 + $0x28] sm:$0xff] %vm4141_vm10, %v4104_v46 }
 0x7a9   : > { %v4114_v20 = vpop.permute.xlu1 %4113 }
 0x7aa   : > { %4152 = vst.msk [vmem:[%s8466_s15 + $0x50] sm:$0xff] %vm4141_vm10, %v4114_v20 }
 0x7ab   : > { %v4116_v19 = vpop.permute.xlu0 %4115 }
 0x7ac   : > { %4153 = vst.msk [vmem:[%s8466_s15 + $0x58] sm:$0xff] %vm4141_vm10, %v4116_v19 }
 0x7ad   : > { %v4110_v8 = vpop.permute.xlu1 %4109 }
 0x7ae   : > { %4150 = vst.msk [vmem:[%s8466_s15 + $0x40] sm:$0xff] %vm4141_vm10, %v4110_v8 }
 0x7af   : > { %v4112_v38 = vpop.permute.xlu0 %4111 }
 0x7b0   : > { %4151 = vst.msk [vmem:[%s8466_s15 + $0x48] sm:$0xff] %vm4141_vm10, %v4112_v38 }
 0x7ba   : > { %v4118_v53 = vpop.permute.xlu1 %4117 }
 0x7bb   : > { %4154 = vst.msk [vmem:[%s8466_s15 + $0x60] sm:$0xff] %vm4141_vm10, %v4118_v53 }
 0x7bc   : > { %v4120_v52 = vpop.permute.xlu0 %4119 }
 0x7bd   : > { %4155 = vst.msk [vmem:[%s8466_s15 + $0x68] sm:$0xff] %vm4141_vm10, %v4120_v52 }
 0x7be   : > { %v4122_v33 = vpop.permute.xlu1 %4121 }
 0x7bf   : > { %4156 = vst.msk [vmem:[%s8466_s15 + $0x70] sm:$0xff] %vm4141_vm10, %v4122_v33 }
 0x7c0   : > { %v4124_v60 = vpop.permute.xlu0 %4123 }
 0x7c1   : > { %4157 = vst.msk [vmem:[%s8466_s15 + $0x78] sm:$0xff] %vm4141_vm10, %v4124_v60 }
 0x7c2 PF: > { %s13_s12 = sadd.s32 1, %s5316_s12  }
 0x7c3   : > { %p10_p4 = scmp.ge.s32.totalorder %s13_s12, 4  }
 0x7c5   :  { %12 = sbr.rel (!%p10_p4) target bundleno = 1 (0x1), region = 62 }

</bundles_post_ra>
